<compile_context>
chip_gen: v6e
topology: v6e:2x2x1
jax: 0.10.0
libtpu: 0.0.40
codegen_flags: <defaults>
</compile_context>

<pallas_src>
import jax
import jax.numpy as jnp
import numpy as np
from jax.experimental import pallas as pl
from jax.experimental.pallas import tpu as pltpu

K1, PAD1 = 9, 4        # conv1: Conv1d(1, 16, 9, padding=4)
K2, PAD2 = 7, 3        # conv2: Conv1d(16, 32, 7, padding=3)
C1, C2 = 16, 32
POOL_OUT = 10          # AdaptiveMaxPool1d(10)
HIDDEN = 128           # combiner hidden size
BN_EPS = 1e-5
OUT_PAD = 128          # lane-dense padded output head (real logit in column 0)


def _fused_kernel(x_ref, w1_ref, sh1_ref, w2_ref, sh2_ref,
                  wc1_ref, bc1_ref, wc2_ref, bc2_ref, out_ref):
    B, L, C = x_ref.shape
    CF1 = sh1_ref.shape[-1]        # C * 16
    CF2 = sh2_ref.shape[-1]        # C * 32
    BL = B * L

    def shifted_conv(lhs, w_ref, ktaps, pad, width):
        """Conv along time as `ktaps` accumulated matmuls on ONE aligned LHS.

        Output-shifted accumulation: y_k = lhs @ w[k] is rotated by (pad - k)
        along the batch-folded time axis with pltpu.roll (XLU) and the
        wrapped/boundary rows are masked to zero. No padded scratch, no
        sublane-misaligned loads or stores; the matmul LHS is reused as-is.
        """
        # Time index of every row (batch-folded), used to mask wrapped rows.
        t = jax.lax.broadcasted_iota(jnp.int32, (B, L, width), 1).reshape(BL, width)
        # Center tap needs no shift/mask: it initializes the accumulator.
        acc = jnp.dot(lhs, w_ref[pad], preferred_element_type=jnp.float32)
        for k in range(ktaps):
            if k == pad:
                continue
            s = pad - k                                   # static python int
            y = jnp.dot(lhs, w_ref[k], preferred_element_type=jnp.float32)
            y = pltpu.roll(y, shift=s % BL, axis=0)       # XLU sublane rotate
            valid = (t >= max(s, 0)) & (t < L + min(s, 0))
            acc = acc + jnp.where(valid, y, 0.0)
        return acc

    # ---- conv1 (BN1 scale folded into weights) + shift + ReLU ----
    x2 = x_ref[...].reshape(BL, C)
    h1 = jnp.maximum(shifted_conv(x2, w1_ref, K1, PAD1, CF1) + sh1_ref[...], 0.0)

    # ---- conv2 (BN2 scale folded into weights) + shift + ReLU ----
    h1c = h1.astype(w2_ref.dtype)
    h2 = jnp.maximum(shifted_conv(h1c, w2_ref, K2, PAD2, CF2) + sh2_ref[...], 0.0)

    # ---- AdaptiveMaxPool1d(10): VPU maximum tree over the seg static slices ----
    seg = L // POOL_OUT
    h2r = h2.reshape(B * POOL_OUT, seg, CF2)
    pooled = h2r[:, 0, :]
    for si in range(1, seg):
        pooled = jnp.maximum(pooled, h2r[:, si, :])       # (B*10, CF2)
    pooled = pooled.astype(wc1_ref.dtype).reshape(B, POOL_OUT, CF2)

    # ---- combiner Linear1: 10 accumulated (B, CF2) x (CF2, 128) matmuls ----
    # (avoids the sublane->lane repack of a (B, 10*CF2) feature reshape)
    hid = jnp.dot(pooled[:, 0, :], wc1_ref[0], preferred_element_type=jnp.float32)
    for p in range(1, POOL_OUT):
        hid = hid + jnp.dot(pooled[:, p, :], wc1_ref[p],
                            preferred_element_type=jnp.float32)
    hid = jnp.maximum(hid + bc1_ref[...], 0.0).astype(wc2_ref.dtype)

    # ---- lane-dense padded Linear2 head (real logit in column 0) ----
    out_ref[...] = (jnp.dot(hid, wc2_ref[...], preferred_element_type=jnp.float32)
                    + bc2_ref[...]).astype(out_ref.dtype)


def _block_diag(blocks):
    """blocks: (C, r, c) -> (C*r, C*c) block-diagonal matrix (one-time, XLA)."""
    Cn, r, c = blocks.shape
    out = jnp.zeros((Cn * r, Cn * c), blocks.dtype)
    for i in range(Cn):
        out = out.at[i * r:(i + 1) * r, i * c:(i + 1) * c].set(blocks[i])
    return out


def prepare_params(params, num_channels, compute_dtype=jnp.bfloat16):
    """One-time weight packing (hoisted out of the per-call forward).

    Returns packed operands: per-tap block-diagonal conv weights with the
    eval-mode BatchNorm scale folded into their columns, BN shift rows (conv
    bias folded), the pool-position-major Linear1 weight, and the lane-dense
    zero-padded Linear2 head. Matmul operands are cast to `compute_dtype`
    (bf16 recommended on v6e/v7x); shifts/biases stay f32.
    """
    C = num_channels
    CF1, CF2 = C * C1, C * C2
    f32 = jnp.float32

    # conv1: per-tap (C, C*16) block matrices (row c -> cols c*16:(c+1)*16).
    w1_taps = jnp.transpose(params["conv1_w"][:, :, 0, :], (2, 0, 1))       # (9, C, 16)
    w1 = jnp.stack([_block_diag(w1_taps[k][:, None, :]) for k in range(K1)], 0)
    s1 = params["bn1_gamma"] / jnp.sqrt(params["bn1_var"] + BN_EPS)         # (C, 16)
    w1 = (w1 * s1.reshape(1, 1, CF1)).astype(compute_dtype)                 # (9, C, C*16)
    sh1 = (params["bn1_beta"] - params["bn1_mean"] * s1
           + params["conv1_b"] * s1).reshape(1, CF1).astype(f32)

    # conv2: per-tap (C*16, C*32) block-diagonal matrices.
    w2_taps = jnp.transpose(params["conv2_w"], (3, 0, 2, 1))                # (7, C, 16, 32)
    w2 = jnp.stack([_block_diag(w2_taps[k]) for k in range(K2)], 0)         # (7, C*16, C*32)
    s2 = params["bn2_gamma"] / jnp.sqrt(params["bn2_var"] + BN_EPS)         # (C, 32)
    w2 = (w2 * s2.reshape(1, 1, CF2)).astype(compute_dtype)
    sh2 = (params["bn2_beta"] - params["bn2_mean"] * s2
           + params["conv2_b"] * s2).reshape(1, CF2).astype(f32)

    # Linear1: PyTorch flatten order [channel][conv-out][pool-pos] -> per-pool-pos
    # (10, C*32, 128) so the kernel can accumulate matmuls without a repack.
    wc1 = (params["lin1_w"].T.reshape(C, C2, POOL_OUT, HIDDEN)
           .transpose(2, 0, 1, 3).reshape(POOL_OUT, CF2, HIDDEN)).astype(compute_dtype)
    bc1 = params["lin1_b"].reshape(1, HIDDEN).astype(f32)

    # Lane-dense padded Linear2 head: real column 0, zeros elsewhere.
    wc2 = (jnp.zeros((HIDDEN, OUT_PAD), f32)
           .at[:, 0:1].set(params["lin2_w"].T)).astype(compute_dtype)
    bc2 = jnp.zeros((1, OUT_PAD), f32).at[:, 0:1].set(params["lin2_b"].reshape(1, 1))

    return dict(w1=w1, sh1=sh1, w2=w2, sh2=sh2, wc1=wc1, bc1=bc1, wc2=wc2, bc2=bc2)


def consciousness_classifier_forward(x, packed):
    """x: (B, num_channels, L) float32 (PyTorch NCL layout). Returns (B, 1)."""
    B, C, L = x.shape
    assert L % POOL_OUT == 0, "kernel implements AdaptiveMaxPool1d(10) for L % 10 == 0"
    CF1 = packed["sh1"].shape[-1]
    CF2 = packed["sh2"].shape[-1]
    cdt = packed["w1"].dtype

    # Only layout plumbing left per call: NCL -> NLC + compute-dtype cast.
    x3 = jnp.transpose(x, (0, 2, 1)).astype(cdt)                            # (B, L, C)

    operands = (x3, packed["w1"], packed["sh1"], packed["w2"], packed["sh2"],
                packed["wc1"], packed["bc1"], packed["wc2"], packed["bc2"])

    flops = int(2 * B * L * (C * CF1 * K1 + CF1 * CF2 * K2)
                + 2 * B * (POOL_OUT * CF2 * HIDDEN + HIDDEN * OUT_PAD))
    bytes_accessed = int(sum(int(o.size) * o.dtype.itemsize for o in operands)
                         + B * OUT_PAD * 4)

    out_full = pl.pallas_call(
        _fused_kernel,
        out_shape=jax.ShapeDtypeStruct((B, OUT_PAD), jnp.float32),
        in_specs=[pl.BlockSpec(memory_space=pltpu.MemorySpace.VMEM)] * len(operands),
        out_specs=pl.BlockSpec(memory_space=pltpu.MemorySpace.VMEM),
        cost_estimate=pl.CostEstimate(flops=flops, transcendentals=0,
                                      bytes_accessed=bytes_accessed),
    )(*operands)
    return out_full[:, :1]                                                  # (B, 1)


def reference_forward(x, params):
    """Plain-JAX reference mirroring the PyTorch forward (eval-mode BN)."""
    B, C, L = x.shape
    feats = []
    for c in range(C):
        xi = x[:, c:c + 1, :]                                               # (B, 1, L)
        h = jax.lax.conv_general_dilated(xi, params["conv1_w"][c], (1,),
                                         [(PAD1, PAD1)],
                                         dimension_numbers=("NCH", "OIH", "NCH"))
        h = h + params["conv1_b"][c][None, :, None]
        s1 = params["bn1_gamma"][c] / jnp.sqrt(params["bn1_var"][c] + BN_EPS)
        t1 = params["bn1_beta"][c] - params["bn1_mean"][c] * s1
        h = jnp.maximum(h * s1[None, :, None] + t1[None, :, None], 0.0)
        h = jax.lax.conv_general_dilated(h, params["conv2_w"][c], (1,),
                                         [(PAD2, PAD2)],
                                         dimension_numbers=("NCH", "OIH", "NCH"))
        h = h + params["conv2_b"][c][None, :, None]
        s2 = params["bn2_gamma"][c] / jnp.sqrt(params["bn2_var"][c] + BN_EPS)
        t2 = params["bn2_beta"][c] - params["bn2_mean"][c] * s2
        h = jnp.maximum(h * s2[None, :, None] + t2[None, :, None], 0.0)     # (B, 32, L)
        pooled = jnp.max(h.reshape(B, C2, POOL_OUT, L // POOL_OUT), axis=-1)
        feats.append(pooled.reshape(B, -1))                                 # (B, 320)
    combined = jnp.concatenate(feats, axis=1)
    h = jnp.maximum(combined @ params["lin1_w"].T + params["lin1_b"], 0.0)
    return h @ params["lin2_w"].T + params["lin2_b"]


def init_params(key, num_channels):
    """Deterministic synthetic weights with the PyTorch module's shapes."""
    F = C2 * num_channels * POOL_OUT
    ks = jax.random.split(key, 16)

    def nrm(k, shape, std=0.1):
        return std * jax.random.normal(k, shape, jnp.float32)

    return dict(
        conv1_w=nrm(ks[0], (num_channels, C1, 1, K1)),
        conv1_b=nrm(ks[1], (num_channels, C1)),
        bn1_gamma=1.0 + nrm(ks[2], (num_channels, C1)),
        bn1_beta=nrm(ks[3], (num_channels, C1)),
        bn1_mean=nrm(ks[4], (num_channels, C1)),
        bn1_var=0.5 + jax.random.uniform(ks[5], (num_channels, C1), jnp.float32),
        conv2_w=nrm(ks[6], (num_channels, C2, C1, K2)),
        conv2_b=nrm(ks[7], (num_channels, C2)),
        bn2_gamma=1.0 + nrm(ks[8], (num_channels, C2)),
        bn2_beta=nrm(ks[9], (num_channels, C2)),
        bn2_mean=nrm(ks[10], (num_channels, C2)),
        bn2_var=0.5 + jax.random.uniform(ks[11], (num_channels, C2), jnp.float32),
        lin1_w=nrm(ks[12], (HIDDEN, F), std=0.05),
        lin1_b=nrm(ks[13], (HIDDEN,)),
        lin2_w=nrm(ks[14], (1, HIDDEN), std=0.05),
        lin2_b=nrm(ks[15], (1,)),
    )


if __name__ == "__main__":
    # Small shapes consistent with the module: batch=2, num_channels=4, input_dim=40.
    # (For throughput, callers should batch >=128 rows so the matmul M dim fills
    #  the MXU; the fused kernel itself is batch-agnostic.)
    B, C, L = 2, 4, 40
    key = jax.random.PRNGKey(0)
    kx, kp = jax.random.split(key)
    x = jax.random.normal(kx, (B, C, L), jnp.float32)
    params = init_params(kp, C)
    ref = np.asarray(reference_forward(x, params))

    # f32 matmul-operand path: exact-parity check against the f32 reference.
    packed_f32 = prepare_params(params, C, compute_dtype=jnp.float32)
    out_f32 = jax.block_until_ready(consciousness_classifier_forward(x, packed_f32))
    assert out_f32.shape == (B, 1), out_f32.shape
    assert bool(jnp.all(jnp.isfinite(out_f32)))
    if not np.allclose(np.asarray(out_f32), ref, rtol=2e-2, atol=2e-2):
        raise AssertionError(
            f"f32 kernel/reference mismatch:\nkernel={np.asarray(out_f32)}\nref={ref}")

    # bf16 matmul-operand path (native MXU dtype on v6e/v7x), f32 accumulation.
    packed_bf16 = prepare_params(params, C, compute_dtype=jnp.bfloat16)
    out_bf16 = jax.block_until_ready(consciousness_classifier_forward(x, packed_bf16))
    assert out_bf16.shape == (B, 1), out_bf16.shape
    assert bool(jnp.all(jnp.isfinite(out_bf16)))
    if not np.allclose(np.asarray(out_bf16), ref, rtol=5e-2, atol=5e-2):
        raise AssertionError(
            f"bf16 kernel/reference mismatch:\nkernel={np.asarray(out_bf16)}\nref={ref}")

    print("KERNEL_OK")
</pallas_src>

<mosaic_0001>
module attributes {stable_mosaic.version = 11 : i64} {
  func.func @_fused_kernel(%arg0: memref<2x40x4xf32, #tpu.memory_space<vmem>>, %arg1: memref<9x4x64xf32, #tpu.memory_space<vmem>>, %arg2: memref<1x64xf32, #tpu.memory_space<vmem>>, %arg3: memref<7x64x128xf32, #tpu.memory_space<vmem>>, %arg4: memref<1x128xf32, #tpu.memory_space<vmem>>, %arg5: memref<10x128x128xf32, #tpu.memory_space<vmem>>, %arg6: memref<1x128xf32, #tpu.memory_space<vmem>>, %arg7: memref<128x128xf32, #tpu.memory_space<vmem>>, %arg8: memref<1x128xf32, #tpu.memory_space<vmem>>, %arg9: memref<2x128xf32, #tpu.memory_space<vmem>>) attributes {dimension_semantics = [], scalar_prefetch = 0 : i64, scratch_operands = 0 : i64, tpu.core_type = #tpu.core_type<tc>} {
    %c0 = arith.constant 0 : index
    %c0_0 = arith.constant 0 : index
    %c0_1 = arith.constant 0 : index
    %0 = vector.load %arg0[%c0, %c0_0, %c0_1] : memref<2x40x4xf32, #tpu.memory_space<vmem>>, vector<2x40x4xf32>
    %1 = vector.shape_cast %0 : vector<2x40x4xf32> to vector<80x4xf32>
    %2 = tpu.iota {dimensions = array<i32: 1>} : vector<2x40x64xi32>
    %3 = vector.shape_cast %2 : vector<2x40x64xi32> to vector<80x64xi32>
    %c4 = arith.constant 4 : index
    %c0_2 = arith.constant 0 : index
    %c0_3 = arith.constant 0 : index
    %4 = vector.load %arg1[%c4, %c0_2, %c0_3] : memref<9x4x64xf32, #tpu.memory_space<vmem>>, vector<1x4x64xf32>
    %5 = vector.shape_cast %4 : vector<1x4x64xf32> to vector<4x64xf32>
    %cst = arith.constant dense<0.000000e+00> : vector<80x64xf32>
    %6 = tpu.matmul %1, %5, %cst {dimension_numbers = #tpu.dot_dimension_numbers<[1], [0], [0], [1], [0, 0, 1, 1], [], []>} : vector<80x4xf32>, vector<4x64xf32>, vector<80x64xf32> -> vector<80x64xf32>
    %c0_4 = arith.constant 0 : index
    %c0_5 = arith.constant 0 : index
    %c0_6 = arith.constant 0 : index
    %7 = vector.load %arg1[%c0_4, %c0_5, %c0_6] : memref<9x4x64xf32, #tpu.memory_space<vmem>>, vector<1x4x64xf32>
    %8 = vector.shape_cast %7 : vector<1x4x64xf32> to vector<4x64xf32>
    %cst_7 = arith.constant dense<0.000000e+00> : vector<80x64xf32>
    %9 = tpu.matmul %1, %8, %cst_7 {dimension_numbers = #tpu.dot_dimension_numbers<[1], [0], [0], [1], [0, 0, 1, 1], [], []>} : vector<80x4xf32>, vector<4x64xf32>, vector<80x64xf32> -> vector<80x64xf32>
    %c4_i32 = arith.constant 4 : i32
    %10 = tpu.dynamic_rotate %9 by %c4_i32 dim 0 : vector<80x64xf32>, i32 -> vector<80x64xf32>
    %c4_i32_8 = arith.constant 4 : i32
    %11 = vector.broadcast %c4_i32_8 : i32 to vector<80x64xi32>
    %12 = arith.cmpi sge, %3, %11 : vector<80x64xi32>
    %c40_i32 = arith.constant 40 : i32
    %13 = vector.broadcast %c40_i32 : i32 to vector<80x64xi32>
    %14 = arith.cmpi slt, %3, %13 : vector<80x64xi32>
    %15 = arith.andi %12, %14 : vector<80x64xi1>
    %cst_9 = arith.constant 0.000000e+00 : f32
    %16 = vector.broadcast %cst_9 : f32 to vector<80x64xf32>
    %17 = arith.select %15, %10, %16 : vector<80x64xi1>, vector<80x64xf32>
    %18 = arith.addf %6, %17 : vector<80x64xf32>
    %c1 = arith.constant 1 : index
    %c0_10 = arith.constant 0 : index
    %c0_11 = arith.constant 0 : index
    %19 = vector.load %arg1[%c1, %c0_10, %c0_11] : memref<9x4x64xf32, #tpu.memory_space<vmem>>, vector<1x4x64xf32>
    %20 = vector.shape_cast %19 : vector<1x4x64xf32> to vector<4x64xf32>
    %cst_12 = arith.constant dense<0.000000e+00> : vector<80x64xf32>
    %21 = tpu.matmul %1, %20, %cst_12 {dimension_numbers = #tpu.dot_dimension_numbers<[1], [0], [0], [1], [0, 0, 1, 1], [], []>} : vector<80x4xf32>, vector<4x64xf32>, vector<80x64xf32> -> vector<80x64xf32>
    %c3_i32 = arith.constant 3 : i32
    %22 = tpu.dynamic_rotate %21 by %c3_i32 dim 0 : vector<80x64xf32>, i32 -> vector<80x64xf32>
    %c3_i32_13 = arith.constant 3 : i32
    %23 = vector.broadcast %c3_i32_13 : i32 to vector<80x64xi32>
    %24 = arith.cmpi sge, %3, %23 : vector<80x64xi32>
    %c40_i32_14 = arith.constant 40 : i32
    %25 = vector.broadcast %c40_i32_14 : i32 to vector<80x64xi32>
    %26 = arith.cmpi slt, %3, %25 : vector<80x64xi32>
    %27 = arith.andi %24, %26 : vector<80x64xi1>
    %cst_15 = arith.constant 0.000000e+00 : f32
    %28 = vector.broadcast %cst_15 : f32 to vector<80x64xf32>
    %29 = arith.select %27, %22, %28 : vector<80x64xi1>, vector<80x64xf32>
    %30 = arith.addf %18, %29 : vector<80x64xf32>
    %c2 = arith.constant 2 : index
    %c0_16 = arith.constant 0 : index
    %c0_17 = arith.constant 0 : index
    %31 = vector.load %arg1[%c2, %c0_16, %c0_17] : memref<9x4x64xf32, #tpu.memory_space<vmem>>, vector<1x4x64xf32>
    %32 = vector.shape_cast %31 : vector<1x4x64xf32> to vector<4x64xf32>
    %cst_18 = arith.constant dense<0.000000e+00> : vector<80x64xf32>
    %33 = tpu.matmul %1, %32, %cst_18 {dimension_numbers = #tpu.dot_dimension_numbers<[1], [0], [0], [1], [0, 0, 1, 1], [], []>} : vector<80x4xf32>, vector<4x64xf32>, vector<80x64xf32> -> vector<80x64xf32>
    %c2_i32 = arith.constant 2 : i32
    %34 = tpu.dynamic_rotate %33 by %c2_i32 dim 0 : vector<80x64xf32>, i32 -> vector<80x64xf32>
    %c2_i32_19 = arith.constant 2 : i32
    %35 = vector.broadcast %c2_i32_19 : i32 to vector<80x64xi32>
    %36 = arith.cmpi sge, %3, %35 : vector<80x64xi32>
    %c40_i32_20 = arith.constant 40 : i32
    %37 = vector.broadcast %c40_i32_20 : i32 to vector<80x64xi32>
    %38 = arith.cmpi slt, %3, %37 : vector<80x64xi32>
    %39 = arith.andi %36, %38 : vector<80x64xi1>
    %cst_21 = arith.constant 0.000000e+00 : f32
    %40 = vector.broadcast %cst_21 : f32 to vector<80x64xf32>
    %41 = arith.select %39, %34, %40 : vector<80x64xi1>, vector<80x64xf32>
    %42 = arith.addf %30, %41 : vector<80x64xf32>
    %c3 = arith.constant 3 : index
    %c0_22 = arith.constant 0 : index
    %c0_23 = arith.constant 0 : index
    %43 = vector.load %arg1[%c3, %c0_22, %c0_23] : memref<9x4x64xf32, #tpu.memory_space<vmem>>, vector<1x4x64xf32>
    %44 = vector.shape_cast %43 : vector<1x4x64xf32> to vector<4x64xf32>
    %cst_24 = arith.constant dense<0.000000e+00> : vector<80x64xf32>
    %45 = tpu.matmul %1, %44, %cst_24 {dimension_numbers = #tpu.dot_dimension_numbers<[1], [0], [0], [1], [0, 0, 1, 1], [], []>} : vector<80x4xf32>, vector<4x64xf32>, vector<80x64xf32> -> vector<80x64xf32>
    %c1_i32 = arith.constant 1 : i32
    %46 = tpu.dynamic_rotate %45 by %c1_i32 dim 0 : vector<80x64xf32>, i32 -> vector<80x64xf32>
    %c1_i32_25 = arith.constant 1 : i32
    %47 = vector.broadcast %c1_i32_25 : i32 to vector<80x64xi32>
    %48 = arith.cmpi sge, %3, %47 : vector<80x64xi32>
    %c40_i32_26 = arith.constant 40 : i32
    %49 = vector.broadcast %c40_i32_26 : i32 to vector<80x64xi32>
    %50 = arith.cmpi slt, %3, %49 : vector<80x64xi32>
    %51 = arith.andi %48, %50 : vector<80x64xi1>
    %cst_27 = arith.constant 0.000000e+00 : f32
    %52 = vector.broadcast %cst_27 : f32 to vector<80x64xf32>
    %53 = arith.select %51, %46, %52 : vector<80x64xi1>, vector<80x64xf32>
    %54 = arith.addf %42, %53 : vector<80x64xf32>
    %c5 = arith.constant 5 : index
    %c0_28 = arith.constant 0 : index
    %c0_29 = arith.constant 0 : index
    %55 = vector.load %arg1[%c5, %c0_28, %c0_29] : memref<9x4x64xf32, #tpu.memory_space<vmem>>, vector<1x4x64xf32>
    %56 = vector.shape_cast %55 : vector<1x4x64xf32> to vector<4x64xf32>
    %cst_30 = arith.constant dense<0.000000e+00> : vector<80x64xf32>
    %57 = tpu.matmul %1, %56, %cst_30 {dimension_numbers = #tpu.dot_dimension_numbers<[1], [0], [0], [1], [0, 0, 1, 1], [], []>} : vector<80x4xf32>, vector<4x64xf32>, vector<80x64xf32> -> vector<80x64xf32>
    %c79_i32 = arith.constant 79 : i32
    %58 = tpu.dynamic_rotate %57 by %c79_i32 dim 0 : vector<80x64xf32>, i32 -> vector<80x64xf32>
    %c0_i32 = arith.constant 0 : i32
    %59 = vector.broadcast %c0_i32 : i32 to vector<80x64xi32>
    %60 = arith.cmpi sge, %3, %59 : vector<80x64xi32>
    %c39_i32 = arith.constant 39 : i32
    %61 = vector.broadcast %c39_i32 : i32 to vector<80x64xi32>
    %62 = arith.cmpi slt, %3, %61 : vector<80x64xi32>
    %63 = arith.andi %60, %62 : vector<80x64xi1>
    %cst_31 = arith.constant 0.000000e+00 : f32
    %64 = vector.broadcast %cst_31 : f32 to vector<80x64xf32>
    %65 = arith.select %63, %58, %64 : vector<80x64xi1>, vector<80x64xf32>
    %66 = arith.addf %54, %65 : vector<80x64xf32>
    %c6 = arith.constant 6 : index
    %c0_32 = arith.constant 0 : index
    %c0_33 = arith.constant 0 : index
    %67 = vector.load %arg1[%c6, %c0_32, %c0_33] : memref<9x4x64xf32, #tpu.memory_space<vmem>>, vector<1x4x64xf32>
    %68 = vector.shape_cast %67 : vector<1x4x64xf32> to vector<4x64xf32>
    %cst_34 = arith.constant dense<0.000000e+00> : vector<80x64xf32>
    %69 = tpu.matmul %1, %68, %cst_34 {dimension_numbers = #tpu.dot_dimension_numbers<[1], [0], [0], [1], [0, 0, 1, 1], [], []>} : vector<80x4xf32>, vector<4x64xf32>, vector<80x64xf32> -> vector<80x64xf32>
    %c78_i32 = arith.constant 78 : i32
    %70 = tpu.dynamic_rotate %69 by %c78_i32 dim 0 : vector<80x64xf32>, i32 -> vector<80x64xf32>
    %c0_i32_35 = arith.constant 0 : i32
    %71 = vector.broadcast %c0_i32_35 : i32 to vector<80x64xi32>
    %72 = arith.cmpi sge, %3, %71 : vector<80x64xi32>
    %c38_i32 = arith.constant 38 : i32
    %73 = vector.broadcast %c38_i32 : i32 to vector<80x64xi32>
    %74 = arith.cmpi slt, %3, %73 : vector<80x64xi32>
    %75 = arith.andi %72, %74 : vector<80x64xi1>
    %cst_36 = arith.constant 0.000000e+00 : f32
    %76 = vector.broadcast %cst_36 : f32 to vector<80x64xf32>
    %77 = arith.select %75, %70, %76 : vector<80x64xi1>, vector<80x64xf32>
    %78 = arith.addf %66, %77 : vector<80x64xf32>
    %c7 = arith.constant 7 : index
    %c0_37 = arith.constant 0 : index
    %c0_38 = arith.constant 0 : index
    %79 = vector.load %arg1[%c7, %c0_37, %c0_38] : memref<9x4x64xf32, #tpu.memory_space<vmem>>, vector<1x4x64xf32>
    %80 = vector.shape_cast %79 : vector<1x4x64xf32> to vector<4x64xf32>
    %cst_39 = arith.constant dense<0.000000e+00> : vector<80x64xf32>
    %81 = tpu.matmul %1, %80, %cst_39 {dimension_numbers = #tpu.dot_dimension_numbers<[1], [0], [0], [1], [0, 0, 1, 1], [], []>} : vector<80x4xf32>, vector<4x64xf32>, vector<80x64xf32> -> vector<80x64xf32>
    %c77_i32 = arith.constant 77 : i32
    %82 = tpu.dynamic_rotate %81 by %c77_i32 dim 0 : vector<80x64xf32>, i32 -> vector<80x64xf32>
    %c0_i32_40 = arith.constant 0 : i32
    %83 = vector.broadcast %c0_i32_40 : i32 to vector<80x64xi32>
    %84 = arith.cmpi sge, %3, %83 : vector<80x64xi32>
    %c37_i32 = arith.constant 37 : i32
    %85 = vector.broadcast %c37_i32 : i32 to vector<80x64xi32>
    %86 = arith.cmpi slt, %3, %85 : vector<80x64xi32>
    %87 = arith.andi %84, %86 : vector<80x64xi1>
    %cst_41 = arith.constant 0.000000e+00 : f32
    %88 = vector.broadcast %cst_41 : f32 to vector<80x64xf32>
    %89 = arith.select %87, %82, %88 : vector<80x64xi1>, vector<80x64xf32>
    %90 = arith.addf %78, %89 : vector<80x64xf32>
    %c8 = arith.constant 8 : index
    %c0_42 = arith.constant 0 : index
    %c0_43 = arith.constant 0 : index
    %91 = vector.load %arg1[%c8, %c0_42, %c0_43] : memref<9x4x64xf32, #tpu.memory_space<vmem>>, vector<1x4x64xf32>
    %92 = vector.shape_cast %91 : vector<1x4x64xf32> to vector<4x64xf32>
    %cst_44 = arith.constant dense<0.000000e+00> : vector<80x64xf32>
    %93 = tpu.matmul %1, %92, %cst_44 {dimension_numbers = #tpu.dot_dimension_numbers<[1], [0], [0], [1], [0, 0, 1, 1], [], []>} : vector<80x4xf32>, vector<4x64xf32>, vector<80x64xf32> -> vector<80x64xf32>
    %c76_i32 = arith.constant 76 : i32
    %94 = tpu.dynamic_rotate %93 by %c76_i32 dim 0 : vector<80x64xf32>, i32 -> vector<80x64xf32>
    %c0_i32_45 = arith.constant 0 : i32
    %95 = vector.broadcast %c0_i32_45 : i32 to vector<80x64xi32>
    %96 = arith.cmpi sge, %3, %95 : vector<80x64xi32>
    %c36_i32 = arith.constant 36 : i32
    %97 = vector.broadcast %c36_i32 : i32 to vector<80x64xi32>
    %98 = arith.cmpi slt, %3, %97 : vector<80x64xi32>
    %99 = arith.andi %96, %98 : vector<80x64xi1>
    %cst_46 = arith.constant 0.000000e+00 : f32
    %100 = vector.broadcast %cst_46 : f32 to vector<80x64xf32>
    %101 = arith.select %99, %94, %100 : vector<80x64xi1>, vector<80x64xf32>
    %102 = arith.addf %90, %101 : vector<80x64xf32>
    %c0_47 = arith.constant 0 : index
    %c0_48 = arith.constant 0 : index
    %103 = vector.load %arg2[%c0_47, %c0_48] : memref<1x64xf32, #tpu.memory_space<vmem>>, vector<1x64xf32>
    %104 = vector.broadcast %103 : vector<1x64xf32> to vector<80x64xf32>
    %105 = arith.addf %102, %104 : vector<80x64xf32>
    %cst_49 = arith.constant 0.000000e+00 : f32
    %106 = vector.broadcast %cst_49 : f32 to vector<80x64xf32>
    %107 = arith.maximumf %105, %106 : vector<80x64xf32>
    %108 = tpu.iota {dimensions = array<i32: 1>} : vector<2x40x128xi32>
    %109 = vector.shape_cast %108 : vector<2x40x128xi32> to vector<80x128xi32>
    %c3_50 = arith.constant 3 : index
    %c0_51 = arith.constant 0 : index
    %c0_52 = arith.constant 0 : index
    %110 = vector.load %arg3[%c3_50, %c0_51, %c0_52] : memref<7x64x128xf32, #tpu.memory_space<vmem>>, vector<1x64x128xf32>
    %111 = vector.shape_cast %110 : vector<1x64x128xf32> to vector<64x128xf32>
    %cst_53 = arith.constant dense<0.000000e+00> : vector<80x128xf32>
    %112 = tpu.matmul %107, %111, %cst_53 {dimension_numbers = #tpu.dot_dimension_numbers<[1], [0], [0], [1], [0, 0, 1, 1], [], []>} : vector<80x64xf32>, vector<64x128xf32>, vector<80x128xf32> -> vector<80x128xf32>
    %c0_54 = arith.constant 0 : index
    %c0_55 = arith.constant 0 : index
    %c0_56 = arith.constant 0 : index
    %113 = vector.load %arg3[%c0_54, %c0_55, %c0_56] : memref<7x64x128xf32, #tpu.memory_space<vmem>>, vector<1x64x128xf32>
    %114 = vector.shape_cast %113 : vector<1x64x128xf32> to vector<64x128xf32>
    %cst_57 = arith.constant dense<0.000000e+00> : vector<80x128xf32>
    %115 = tpu.matmul %107, %114, %cst_57 {dimension_numbers = #tpu.dot_dimension_numbers<[1], [0], [0], [1], [0, 0, 1, 1], [], []>} : vector<80x64xf32>, vector<64x128xf32>, vector<80x128xf32> -> vector<80x128xf32>
    %c3_i32_58 = arith.constant 3 : i32
    %116 = tpu.dynamic_rotate %115 by %c3_i32_58 dim 0 : vector<80x128xf32>, i32 -> vector<80x128xf32>
    %c3_i32_59 = arith.constant 3 : i32
    %117 = vector.broadcast %c3_i32_59 : i32 to vector<80x128xi32>
    %118 = arith.cmpi sge, %109, %117 : vector<80x128xi32>
    %c40_i32_60 = arith.constant 40 : i32
    %119 = vector.broadcast %c40_i32_60 : i32 to vector<80x128xi32>
    %120 = arith.cmpi slt, %109, %119 : vector<80x128xi32>
    %121 = arith.andi %118, %120 : vector<80x128xi1>
    %cst_61 = arith.constant 0.000000e+00 : f32
    %122 = vector.broadcast %cst_61 : f32 to vector<80x128xf32>
    %123 = arith.select %121, %116, %122 : vector<80x128xi1>, vector<80x128xf32>
    %124 = arith.addf %112, %123 : vector<80x128xf32>
    %c1_62 = arith.constant 1 : index
    %c0_63 = arith.constant 0 : index
    %c0_64 = arith.constant 0 : index
    %125 = vector.load %arg3[%c1_62, %c0_63, %c0_64] : memref<7x64x128xf32, #tpu.memory_space<vmem>>, vector<1x64x128xf32>
    %126 = vector.shape_cast %125 : vector<1x64x128xf32> to vector<64x128xf32>
    %cst_65 = arith.constant dense<0.000000e+00> : vector<80x128xf32>
    %127 = tpu.matmul %107, %126, %cst_65 {dimension_numbers = #tpu.dot_dimension_numbers<[1], [0], [0], [1], [0, 0, 1, 1], [], []>} : vector<80x64xf32>, vector<64x128xf32>, vector<80x128xf32> -> vector<80x128xf32>
    %c2_i32_66 = arith.constant 2 : i32
    %128 = tpu.dynamic_rotate %127 by %c2_i32_66 dim 0 : vector<80x128xf32>, i32 -> vector<80x128xf32>
    %c2_i32_67 = arith.constant 2 : i32
    %129 = vector.broadcast %c2_i32_67 : i32 to vector<80x128xi32>
    %130 = arith.cmpi sge, %109, %129 : vector<80x128xi32>
    %c40_i32_68 = arith.constant 40 : i32
    %131 = vector.broadcast %c40_i32_68 : i32 to vector<80x128xi32>
    %132 = arith.cmpi slt, %109, %131 : vector<80x128xi32>
    %133 = arith.andi %130, %132 : vector<80x128xi1>
    %cst_69 = arith.constant 0.000000e+00 : f32
    %134 = vector.broadcast %cst_69 : f32 to vector<80x128xf32>
    %135 = arith.select %133, %128, %134 : vector<80x128xi1>, vector<80x128xf32>
    %136 = arith.addf %124, %135 : vector<80x128xf32>
    %c2_70 = arith.constant 2 : index
    %c0_71 = arith.constant 0 : index
    %c0_72 = arith.constant 0 : index
    %137 = vector.load %arg3[%c2_70, %c0_71, %c0_72] : memref<7x64x128xf32, #tpu.memory_space<vmem>>, vector<1x64x128xf32>
    %138 = vector.shape_cast %137 : vector<1x64x128xf32> to vector<64x128xf32>
    %cst_73 = arith.constant dense<0.000000e+00> : vector<80x128xf32>
    %139 = tpu.matmul %107, %138, %cst_73 {dimension_numbers = #tpu.dot_dimension_numbers<[1], [0], [0], [1], [0, 0, 1, 1], [], []>} : vector<80x64xf32>, vector<64x128xf32>, vector<80x128xf32> -> vector<80x128xf32>
    %c1_i32_74 = arith.constant 1 : i32
    %140 = tpu.dynamic_rotate %139 by %c1_i32_74 dim 0 : vector<80x128xf32>, i32 -> vector<80x128xf32>
    %c1_i32_75 = arith.constant 1 : i32
    %141 = vector.broadcast %c1_i32_75 : i32 to vector<80x128xi32>
    %142 = arith.cmpi sge, %109, %141 : vector<80x128xi32>
    %c40_i32_76 = arith.constant 40 : i32
    %143 = vector.broadcast %c40_i32_76 : i32 to vector<80x128xi32>
    %144 = arith.cmpi slt, %109, %143 : vector<80x128xi32>
    %145 = arith.andi %142, %144 : vector<80x128xi1>
    %cst_77 = arith.constant 0.000000e+00 : f32
    %146 = vector.broadcast %cst_77 : f32 to vector<80x128xf32>
    %147 = arith.select %145, %140, %146 : vector<80x128xi1>, vector<80x128xf32>
    %148 = arith.addf %136, %147 : vector<80x128xf32>
    %c4_78 = arith.constant 4 : index
    %c0_79 = arith.constant 0 : index
    %c0_80 = arith.constant 0 : index
    %149 = vector.load %arg3[%c4_78, %c0_79, %c0_80] : memref<7x64x128xf32, #tpu.memory_space<vmem>>, vector<1x64x128xf32>
    %150 = vector.shape_cast %149 : vector<1x64x128xf32> to vector<64x128xf32>
    %cst_81 = arith.constant dense<0.000000e+00> : vector<80x128xf32>
    %151 = tpu.matmul %107, %150, %cst_81 {dimension_numbers = #tpu.dot_dimension_numbers<[1], [0], [0], [1], [0, 0, 1, 1], [], []>} : vector<80x64xf32>, vector<64x128xf32>, vector<80x128xf32> -> vector<80x128xf32>
    %c79_i32_82 = arith.constant 79 : i32
    %152 = tpu.dynamic_rotate %151 by %c79_i32_82 dim 0 : vector<80x128xf32>, i32 -> vector<80x128xf32>
    %c0_i32_83 = arith.constant 0 : i32
    %153 = vector.broadcast %c0_i32_83 : i32 to vector<80x128xi32>
    %154 = arith.cmpi sge, %109, %153 : vector<80x128xi32>
    %c39_i32_84 = arith.constant 39 : i32
    %155 = vector.broadcast %c39_i32_84 : i32 to vector<80x128xi32>
    %156 = arith.cmpi slt, %109, %155 : vector<80x128xi32>
    %157 = arith.andi %154, %156 : vector<80x128xi1>
    %cst_85 = arith.constant 0.000000e+00 : f32
    %158 = vector.broadcast %cst_85 : f32 to vector<80x128xf32>
    %159 = arith.select %157, %152, %158 : vector<80x128xi1>, vector<80x128xf32>
    %160 = arith.addf %148, %159 : vector<80x128xf32>
    %c5_86 = arith.constant 5 : index
    %c0_87 = arith.constant 0 : index
    %c0_88 = arith.constant 0 : index
    %161 = vector.load %arg3[%c5_86, %c0_87, %c0_88] : memref<7x64x128xf32, #tpu.memory_space<vmem>>, vector<1x64x128xf32>
    %162 = vector.shape_cast %161 : vector<1x64x128xf32> to vector<64x128xf32>
    %cst_89 = arith.constant dense<0.000000e+00> : vector<80x128xf32>
    %163 = tpu.matmul %107, %162, %cst_89 {dimension_numbers = #tpu.dot_dimension_numbers<[1], [0], [0], [1], [0, 0, 1, 1], [], []>} : vector<80x64xf32>, vector<64x128xf32>, vector<80x128xf32> -> vector<80x128xf32>
    %c78_i32_90 = arith.constant 78 : i32
    %164 = tpu.dynamic_rotate %163 by %c78_i32_90 dim 0 : vector<80x128xf32>, i32 -> vector<80x128xf32>
    %c0_i32_91 = arith.constant 0 : i32
    %165 = vector.broadcast %c0_i32_91 : i32 to vector<80x128xi32>
    %166 = arith.cmpi sge, %109, %165 : vector<80x128xi32>
    %c38_i32_92 = arith.constant 38 : i32
    %167 = vector.broadcast %c38_i32_92 : i32 to vector<80x128xi32>
    %168 = arith.cmpi slt, %109, %167 : vector<80x128xi32>
    %169 = arith.andi %166, %168 : vector<80x128xi1>
    %cst_93 = arith.constant 0.000000e+00 : f32
    %170 = vector.broadcast %cst_93 : f32 to vector<80x128xf32>
    %171 = arith.select %169, %164, %170 : vector<80x128xi1>, vector<80x128xf32>
    %172 = arith.addf %160, %171 : vector<80x128xf32>
    %c6_94 = arith.constant 6 : index
    %c0_95 = arith.constant 0 : index
    %c0_96 = arith.constant 0 : index
    %173 = vector.load %arg3[%c6_94, %c0_95, %c0_96] : memref<7x64x128xf32, #tpu.memory_space<vmem>>, vector<1x64x128xf32>
    %174 = vector.shape_cast %173 : vector<1x64x128xf32> to vector<64x128xf32>
    %cst_97 = arith.constant dense<0.000000e+00> : vector<80x128xf32>
    %175 = tpu.matmul %107, %174, %cst_97 {dimension_numbers = #tpu.dot_dimension_numbers<[1], [0], [0], [1], [0, 0, 1, 1], [], []>} : vector<80x64xf32>, vector<64x128xf32>, vector<80x128xf32> -> vector<80x128xf32>
    %c77_i32_98 = arith.constant 77 : i32
    %176 = tpu.dynamic_rotate %175 by %c77_i32_98 dim 0 : vector<80x128xf32>, i32 -> vector<80x128xf32>
    %c0_i32_99 = arith.constant 0 : i32
    %177 = vector.broadcast %c0_i32_99 : i32 to vector<80x128xi32>
    %178 = arith.cmpi sge, %109, %177 : vector<80x128xi32>
    %c37_i32_100 = arith.constant 37 : i32
    %179 = vector.broadcast %c37_i32_100 : i32 to vector<80x128xi32>
    %180 = arith.cmpi slt, %109, %179 : vector<80x128xi32>
    %181 = arith.andi %178, %180 : vector<80x128xi1>
    %cst_101 = arith.constant 0.000000e+00 : f32
    %182 = vector.broadcast %cst_101 : f32 to vector<80x128xf32>
    %183 = arith.select %181, %176, %182 : vector<80x128xi1>, vector<80x128xf32>
    %184 = arith.addf %172, %183 : vector<80x128xf32>
    %c0_102 = arith.constant 0 : index
    %c0_103 = arith.constant 0 : index
    %185 = vector.load %arg4[%c0_102, %c0_103] : memref<1x128xf32, #tpu.memory_space<vmem>>, vector<1x128xf32>
    %186 = vector.broadcast %185 : vector<1x128xf32> to vector<80x128xf32>
    %187 = arith.addf %184, %186 : vector<80x128xf32>
    %cst_104 = arith.constant 0.000000e+00 : f32
    %188 = vector.broadcast %cst_104 : f32 to vector<80x128xf32>
    %189 = arith.maximumf %187, %188 : vector<80x128xf32>
    %190 = vector.shape_cast %189 : vector<80x128xf32> to vector<20x4x128xf32>
    %191 = vector.extract_strided_slice %190 {offsets = [0, 0, 0], sizes = [20, 1, 128], strides = [1, 1, 1]} : vector<20x4x128xf32> to vector<20x1x128xf32>
    %192 = vector.shape_cast %191 : vector<20x1x128xf32> to vector<20x128xf32>
    %193 = vector.extract_strided_slice %190 {offsets = [0, 1, 0], sizes = [20, 1, 128], strides = [1, 1, 1]} : vector<20x4x128xf32> to vector<20x1x128xf32>
    %194 = vector.shape_cast %193 : vector<20x1x128xf32> to vector<20x128xf32>
    %195 = arith.maximumf %192, %194 : vector<20x128xf32>
    %196 = vector.extract_strided_slice %190 {offsets = [0, 2, 0], sizes = [20, 1, 128], strides = [1, 1, 1]} : vector<20x4x128xf32> to vector<20x1x128xf32>
    %197 = vector.shape_cast %196 : vector<20x1x128xf32> to vector<20x128xf32>
    %198 = arith.maximumf %195, %197 : vector<20x128xf32>
    %199 = vector.extract_strided_slice %190 {offsets = [0, 3, 0], sizes = [20, 1, 128], strides = [1, 1, 1]} : vector<20x4x128xf32> to vector<20x1x128xf32>
    %200 = vector.shape_cast %199 : vector<20x1x128xf32> to vector<20x128xf32>
    %201 = arith.maximumf %198, %200 : vector<20x128xf32>
    %202 = vector.shape_cast %201 : vector<20x128xf32> to vector<2x10x128xf32>
    %203 = vector.extract_strided_slice %202 {offsets = [0, 0, 0], sizes = [2, 1, 128], strides = [1, 1, 1]} : vector<2x10x128xf32> to vector<2x1x128xf32>
    %204 = vector.shape_cast %203 : vector<2x1x128xf32> to vector<2x128xf32>
    %c0_105 = arith.constant 0 : index
    %c0_106 = arith.constant 0 : index
    %c0_107 = arith.constant 0 : index
    %205 = vector.load %arg5[%c0_105, %c0_106, %c0_107] : memref<10x128x128xf32, #tpu.memory_space<vmem>>, vector<1x128x128xf32>
    %206 = vector.shape_cast %205 : vector<1x128x128xf32> to vector<128x128xf32>
    %cst_108 = arith.constant dense<0.000000e+00> : vector<2x128xf32>
    %207 = tpu.matmul %204, %206, %cst_108 {dimension_numbers = #tpu.dot_dimension_numbers<[1], [0], [0], [1], [0, 0, 1, 1], [], []>} : vector<2x128xf32>, vector<128x128xf32>, vector<2x128xf32> -> vector<2x128xf32>
    %208 = vector.extract_strided_slice %202 {offsets = [0, 1, 0], sizes = [2, 1, 128], strides = [1, 1, 1]} : vector<2x10x128xf32> to vector<2x1x128xf32>
    %209 = vector.shape_cast %208 : vector<2x1x128xf32> to vector<2x128xf32>
    %c1_109 = arith.constant 1 : index
    %c0_110 = arith.constant 0 : index
    %c0_111 = arith.constant 0 : index
    %210 = vector.load %arg5[%c1_109, %c0_110, %c0_111] : memref<10x128x128xf32, #tpu.memory_space<vmem>>, vector<1x128x128xf32>
    %211 = vector.shape_cast %210 : vector<1x128x128xf32> to vector<128x128xf32>
    %cst_112 = arith.constant dense<0.000000e+00> : vector<2x128xf32>
    %212 = tpu.matmul %209, %211, %cst_112 {dimension_numbers = #tpu.dot_dimension_numbers<[1], [0], [0], [1], [0, 0, 1, 1], [], []>} : vector<2x128xf32>, vector<128x128xf32>, vector<2x128xf32> -> vector<2x128xf32>
    %213 = arith.addf %207, %212 : vector<2x128xf32>
    %214 = vector.extract_strided_slice %202 {offsets = [0, 2, 0], sizes = [2, 1, 128], strides = [1, 1, 1]} : vector<2x10x128xf32> to vector<2x1x128xf32>
    %215 = vector.shape_cast %214 : vector<2x1x128xf32> to vector<2x128xf32>
    %c2_113 = arith.constant 2 : index
    %c0_114 = arith.constant 0 : index
    %c0_115 = arith.constant 0 : index
    %216 = vector.load %arg5[%c2_113, %c0_114, %c0_115] : memref<10x128x128xf32, #tpu.memory_space<vmem>>, vector<1x128x128xf32>
    %217 = vector.shape_cast %216 : vector<1x128x128xf32> to vector<128x128xf32>
    %cst_116 = arith.constant dense<0.000000e+00> : vector<2x128xf32>
    %218 = tpu.matmul %215, %217, %cst_116 {dimension_numbers = #tpu.dot_dimension_numbers<[1], [0], [0], [1], [0, 0, 1, 1], [], []>} : vector<2x128xf32>, vector<128x128xf32>, vector<2x128xf32> -> vector<2x128xf32>
    %219 = arith.addf %213, %218 : vector<2x128xf32>
    %220 = vector.extract_strided_slice %202 {offsets = [0, 3, 0], sizes = [2, 1, 128], strides = [1, 1, 1]} : vector<2x10x128xf32> to vector<2x1x128xf32>
    %221 = vector.shape_cast %220 : vector<2x1x128xf32> to vector<2x128xf32>
    %c3_117 = arith.constant 3 : index
    %c0_118 = arith.constant 0 : index
    %c0_119 = arith.constant 0 : index
    %222 = vector.load %arg5[%c3_117, %c0_118, %c0_119] : memref<10x128x128xf32, #tpu.memory_space<vmem>>, vector<1x128x128xf32>
    %223 = vector.shape_cast %222 : vector<1x128x128xf32> to vector<128x128xf32>
    %cst_120 = arith.constant dense<0.000000e+00> : vector<2x128xf32>
    %224 = tpu.matmul %221, %223, %cst_120 {dimension_numbers = #tpu.dot_dimension_numbers<[1], [0], [0], [1], [0, 0, 1, 1], [], []>} : vector<2x128xf32>, vector<128x128xf32>, vector<2x128xf32> -> vector<2x128xf32>
    %225 = arith.addf %219, %224 : vector<2x128xf32>
    %226 = vector.extract_strided_slice %202 {offsets = [0, 4, 0], sizes = [2, 1, 128], strides = [1, 1, 1]} : vector<2x10x128xf32> to vector<2x1x128xf32>
    %227 = vector.shape_cast %226 : vector<2x1x128xf32> to vector<2x128xf32>
    %c4_121 = arith.constant 4 : index
    %c0_122 = arith.constant 0 : index
    %c0_123 = arith.constant 0 : index
    %228 = vector.load %arg5[%c4_121, %c0_122, %c0_123] : memref<10x128x128xf32, #tpu.memory_space<vmem>>, vector<1x128x128xf32>
    %229 = vector.shape_cast %228 : vector<1x128x128xf32> to vector<128x128xf32>
    %cst_124 = arith.constant dense<0.000000e+00> : vector<2x128xf32>
    %230 = tpu.matmul %227, %229, %cst_124 {dimension_numbers = #tpu.dot_dimension_numbers<[1], [0], [0], [1], [0, 0, 1, 1], [], []>} : vector<2x128xf32>, vector<128x128xf32>, vector<2x128xf32> -> vector<2x128xf32>
    %231 = arith.addf %225, %230 : vector<2x128xf32>
    %232 = vector.extract_strided_slice %202 {offsets = [0, 5, 0], sizes = [2, 1, 128], strides = [1, 1, 1]} : vector<2x10x128xf32> to vector<2x1x128xf32>
    %233 = vector.shape_cast %232 : vector<2x1x128xf32> to vector<2x128xf32>
    %c5_125 = arith.constant 5 : index
    %c0_126 = arith.constant 0 : index
    %c0_127 = arith.constant 0 : index
    %234 = vector.load %arg5[%c5_125, %c0_126, %c0_127] : memref<10x128x128xf32, #tpu.memory_space<vmem>>, vector<1x128x128xf32>
    %235 = vector.shape_cast %234 : vector<1x128x128xf32> to vector<128x128xf32>
    %cst_128 = arith.constant dense<0.000000e+00> : vector<2x128xf32>
    %236 = tpu.matmul %233, %235, %cst_128 {dimension_numbers = #tpu.dot_dimension_numbers<[1], [0], [0], [1], [0, 0, 1, 1], [], []>} : vector<2x128xf32>, vector<128x128xf32>, vector<2x128xf32> -> vector<2x128xf32>
    %237 = arith.addf %231, %236 : vector<2x128xf32>
    %238 = vector.extract_strided_slice %202 {offsets = [0, 6, 0], sizes = [2, 1, 128], strides = [1, 1, 1]} : vector<2x10x128xf32> to vector<2x1x128xf32>
    %239 = vector.shape_cast %238 : vector<2x1x128xf32> to vector<2x128xf32>
    %c6_129 = arith.constant 6 : index
    %c0_130 = arith.constant 0 : index
    %c0_131 = arith.constant 0 : index
    %240 = vector.load %arg5[%c6_129, %c0_130, %c0_131] : memref<10x128x128xf32, #tpu.memory_space<vmem>>, vector<1x128x128xf32>
    %241 = vector.shape_cast %240 : vector<1x128x128xf32> to vector<128x128xf32>
    %cst_132 = arith.constant dense<0.000000e+00> : vector<2x128xf32>
    %242 = tpu.matmul %239, %241, %cst_132 {dimension_numbers = #tpu.dot_dimension_numbers<[1], [0], [0], [1], [0, 0, 1, 1], [], []>} : vector<2x128xf32>, vector<128x128xf32>, vector<2x128xf32> -> vector<2x128xf32>
    %243 = arith.addf %237, %242 : vector<2x128xf32>
    %244 = vector.extract_strided_slice %202 {offsets = [0, 7, 0], sizes = [2, 1, 128], strides = [1, 1, 1]} : vector<2x10x128xf32> to vector<2x1x128xf32>
    %245 = vector.shape_cast %244 : vector<2x1x128xf32> to vector<2x128xf32>
    %c7_133 = arith.constant 7 : index
    %c0_134 = arith.constant 0 : index
    %c0_135 = arith.constant 0 : index
    %246 = vector.load %arg5[%c7_133, %c0_134, %c0_135] : memref<10x128x128xf32, #tpu.memory_space<vmem>>, vector<1x128x128xf32>
    %247 = vector.shape_cast %246 : vector<1x128x128xf32> to vector<128x128xf32>
    %cst_136 = arith.constant dense<0.000000e+00> : vector<2x128xf32>
    %248 = tpu.matmul %245, %247, %cst_136 {dimension_numbers = #tpu.dot_dimension_numbers<[1], [0], [0], [1], [0, 0, 1, 1], [], []>} : vector<2x128xf32>, vector<128x128xf32>, vector<2x128xf32> -> vector<2x128xf32>
    %249 = arith.addf %243, %248 : vector<2x128xf32>
    %250 = vector.extract_strided_slice %202 {offsets = [0, 8, 0], sizes = [2, 1, 128], strides = [1, 1, 1]} : vector<2x10x128xf32> to vector<2x1x128xf32>
    %251 = vector.shape_cast %250 : vector<2x1x128xf32> to vector<2x128xf32>
    %c8_137 = arith.constant 8 : index
    %c0_138 = arith.constant 0 : index
    %c0_139 = arith.constant 0 : index
    %252 = vector.load %arg5[%c8_137, %c0_138, %c0_139] : memref<10x128x128xf32, #tpu.memory_space<vmem>>, vector<1x128x128xf32>
    %253 = vector.shape_cast %252 : vector<1x128x128xf32> to vector<128x128xf32>
    %cst_140 = arith.constant dense<0.000000e+00> : vector<2x128xf32>
    %254 = tpu.matmul %251, %253, %cst_140 {dimension_numbers = #tpu.dot_dimension_numbers<[1], [0], [0], [1], [0, 0, 1, 1], [], []>} : vector<2x128xf32>, vector<128x128xf32>, vector<2x128xf32> -> vector<2x128xf32>
    %255 = arith.addf %249, %254 : vector<2x128xf32>
    %256 = vector.extract_strided_slice %202 {offsets = [0, 9, 0], sizes = [2, 1, 128], strides = [1, 1, 1]} : vector<2x10x128xf32> to vector<2x1x128xf32>
    %257 = vector.shape_cast %256 : vector<2x1x128xf32> to vector<2x128xf32>
    %c9 = arith.constant 9 : index
    %c0_141 = arith.constant 0 : index
    %c0_142 = arith.constant 0 : index
    %258 = vector.load %arg5[%c9, %c0_141, %c0_142] : memref<10x128x128xf32, #tpu.memory_space<vmem>>, vector<1x128x128xf32>
    %259 = vector.shape_cast %258 : vector<1x128x128xf32> to vector<128x128xf32>
    %cst_143 = arith.constant dense<0.000000e+00> : vector<2x128xf32>
    %260 = tpu.matmul %257, %259, %cst_143 {dimension_numbers = #tpu.dot_dimension_numbers<[1], [0], [0], [1], [0, 0, 1, 1], [], []>} : vector<2x128xf32>, vector<128x128xf32>, vector<2x128xf32> -> vector<2x128xf32>
    %261 = arith.addf %255, %260 : vector<2x128xf32>
    %c0_144 = arith.constant 0 : index
    %c0_145 = arith.constant 0 : index
    %262 = vector.load %arg6[%c0_144, %c0_145] : memref<1x128xf32, #tpu.memory_space<vmem>>, vector<1x128xf32>
    %263 = vector.broadcast %262 : vector<1x128xf32> to vector<2x128xf32>
    %264 = arith.addf %261, %263 : vector<2x128xf32>
    %cst_146 = arith.constant 0.000000e+00 : f32
    %265 = vector.broadcast %cst_146 : f32 to vector<2x128xf32>
    %266 = arith.maximumf %264, %265 : vector<2x128xf32>
    %c0_147 = arith.constant 0 : index
    %c0_148 = arith.constant 0 : index
    %267 = vector.load %arg7[%c0_147, %c0_148] : memref<128x128xf32, #tpu.memory_space<vmem>>, vector<128x128xf32>
    %cst_149 = arith.constant dense<0.000000e+00> : vector<2x128xf32>
    %268 = tpu.matmul %266, %267, %cst_149 {dimension_numbers = #tpu.dot_dimension_numbers<[1], [0], [0], [1], [0, 0, 1, 1], [], []>} : vector<2x128xf32>, vector<128x128xf32>, vector<2x128xf32> -> vector<2x128xf32>
    %c0_150 = arith.constant 0 : index
    %c0_151 = arith.constant 0 : index
    %269 = vector.load %arg8[%c0_150, %c0_151] : memref<1x128xf32, #tpu.memory_space<vmem>>, vector<1x128xf32>
    %270 = vector.broadcast %269 : vector<1x128xf32> to vector<2x128xf32>
    %271 = arith.addf %268, %270 : vector<2x128xf32>
    %c0_152 = arith.constant 0 : index
    %c0_153 = arith.constant 0 : index
    %272 = vector.load %arg9[%c0_152, %c0_153] : memref<2x128xf32, #tpu.memory_space<vmem>>, vector<2x128xf32>
    tpu.vector_store %arg9[%c0_152, %c0_153], %271 {strides = array<i32>} : memref<2x128xf32, #tpu.memory_space<vmem>>, vector<2x128xf32>,
    return
  }
}

</mosaic_0001>

<bundles_post_ra>
// kernel: tpu_custom_call.1
= control target key start
LH: loop header
LB: loop body
LE: loop exit
PB: predicated region body
PF: predicated region fallthrough
CT: control target
= control target key end

     0   :  { %14 = vsyncpa [#allocation3], 0  ;;  %s7350_s0 = inlined_call_operand.vmem [shape: f32[2,40,4], index: 0, kind: input, shape index: {}]   ;;  %s7351_s1 = inlined_call_operand.vmem [shape: f32[9,4,64], index: 1, kind: input, shape index: {}]   ;;  %s7352_s2 = inlined_call_operand.vmem [shape: f32[1,64], index: 2, kind: input, shape index: {}]   ;;  %s7353_s3 = inlined_call_operand.hbm [shape: f32[7,64,128], index: 3, kind: input, shape index: {}]   ;;  %s7354_s4 = inlined_call_operand.vmem [shape: f32[1,128], index: 4, kind: input, shape index: {}]   ;;  %s7355_s5 = inlined_call_operand.hbm [shape: f32[10,128,128], index: 5, kind: input, shape index: {}]   ;;  %s7356_s6 = inlined_call_operand.vmem [shape: f32[1,128], index: 6, kind: input, shape index: {}]   ;;  %s7357_s7 = inlined_call_operand.hbm [shape: f32[128,128], index: 7, kind: input, shape index: {}]   ;;  %s7358_s8 = inlined_call_operand.vmem [shape: f32[1,128], index: 8, kind: input, shape index: {}]   ;;  %s7359_s9 = inlined_call_operand.hbm [shape: f32[2,128], index: 9, kind: output, shape index: {}]  }
   0x1   :  { %15 = vsyncpa [#allocation6], 0 }
   0x2   :  { %16 = vsyncpa [#allocation4], 0  ;;  %s5681_s30 = smov [#allocation5]   ;;  %s5682_s11 = smov [#allocation2]  }
   0x3   :  { %s42_s10 = sshll.u32 %s5681_s30, 4  ;;  %s28_s12 = sshll.u32 %s5682_s11, 4  ;;  %s43_s10 = int_to_ptr.vmem [resolvable:$true] %s42_s10  ;;  %s29_s12 = int_to_ptr.vmem [resolvable:$true] %s28_s12 }
   0x4   :  { %s5603_s13 = scalar_lea.vmem %s43_s10, 20480  ;;  %p5608_p1 = scmp.lt.s32.totalorder %s43_s10, %s43_s10 }
   0x5   :  { %p5604_p0 = scmp.ne.s32.totalorder %s43_s10, %s5603_s13  ;;  %p5609_p2 = scmp.lt.s32.totalorder %s5603_s13, %s5603_s13 }
   0x7   :  { %p5610_p3 = por %p5609_p2, %p5608_p1 }
   0x9   :  { %p5611_p4 = pnand %p5610_p3, %p5604_p0 }
   0xb   :  { %5614 = shalt.err (!%p5611_p4)
}
   0xc   :  { %s5683_s14 = smov 128   ;;  %s5684_s15 = smov 8  }
   0xd   :  { %48 = dma.hbm_to_vmem [thread:$0]  %s7355_s5, 20480, %s43_s10, [#allocation6], %s5683_s14, %s5683_s14, %s5684_s15  }
   0xe   :  { %s5623_s18 = scalar_lea.vmem %s29_s12, 7168  ;;  %p5628_p6 = scmp.lt.s32.totalorder %s29_s12, %s29_s12 }
   0xf   :  { %p5624_p5 = scmp.ne.s32.totalorder %s29_s12, %s5623_s18  ;;  %p5629_p7 = scmp.lt.s32.totalorder %s5623_s18, %s5623_s18 }
  0x11   :  { %p5630_p8 = por %p5629_p7, %p5628_p6 }
  0x13   :  { %p5631_p9 = pnand %p5630_p8, %p5624_p5 }
  0x15   :  { %5634 = shalt.err (!%p5631_p9)
}
  0x16   :  { %34 = dma.hbm_to_vmem [thread:$0]  %s7353_s3, 7168, %s29_s12, [#allocation3], %s5683_s14, %s5683_s14, %s5684_s15  }
  0x17   :  { %s5685_s21 = smov [#allocation7]  }
  0x18   :  { %s56_s22 = sshll.u32 %s5685_s21, 4  ;;  %s57_s22 = int_to_ptr.vmem [resolvable:$true] %s56_s22 }
  0x19   :  { %s5643_s23 = scalar_lea.vmem %s57_s22, 2048  ;;  %p5648_p11 = scmp.lt.s32.totalorder %s57_s22, %s57_s22 }
  0x1a   :  { %p5644_p10 = scmp.ne.s32.totalorder %s57_s22, %s5643_s23  ;;  %p5649_p12 = scmp.lt.s32.totalorder %s5643_s23, %s5643_s23 }
  0x1c   :  { %p5650_p13 = por %p5649_p12, %p5648_p11 }
  0x1e   :  { %p5651_p0 = pnand %p5650_p13, %p5644_p10 }
  0x20   :  { %5654 = shalt.err (!%p5651_p0)
}
  0x21   :  { %62 = dma.hbm_to_vmem [thread:$0]  %s7357_s7, 2048, %s57_s22, [#allocation6], %s5683_s14, %s5683_s14, %s5684_s15  }
  0x22   :  { %5675 = dma.done.wait [#allocation3], 7168  }
  0x23   :  { %5676 = vsyncadd [#allocation3], 4294960128 }
  0x24   :  { %5677 = dma.done.wait [#allocation6], 22528  }
  0x25   :  { %5678 = vsyncadd [#allocation6], 4294944768  ;;  %vm124_vm0 = vcmask 1043456   ;;  %v92_v0 = vld [vmem:[%s7351_s1] sm:$0xf]  ;;  %vm93_vm1 = vcmask 31744   ;;  %v84_v37 = vlaneseq }
  0x26   :  { %v5754_v1 = vld [vmem:[%s7350_s0] sm:$0xff]  ;;  %v5759_v2 = vld [vmem:[%s7350_s0 + $0x10] sm:$0xff]  ;;  %4830 = vmatprep.subr.msk.mxu0 %vm124_vm0, %v92_v0  ;;  %5585 = vmatprep.subr.msk.mxu1 %vm124_vm0, %v92_v0  ;;  %v5766_v3 = vld [vmem:[%s7350_s0 + $0x8] sm:$0xff]  ;;  %s5688_s20 = smov [#allocation8]  }
  0x27   :  { %v5771_v4 = vld [vmem:[%s7350_s0 + $0x18] sm:$0xff]  ;;  %4831 = vmatpush3.msk.msra.mxu0 %vm124_vm0, %v92_v0  ;;  %5586 = vmatpush3.msk.msra.mxu1 %vm124_vm0, %v92_v0  ;;  %v4177_v5 = vld [vmem:[%s7351_s1 + $0x10] sm:$0xf]  ;;  %v4200_v6 = vld [vmem:[%s7351_s1 + $0x4] sm:$0xf]  ;;  %v6031_v38 = vshrl.u32 %v84_v37, 7 }
  0x28   :  { %4832 = vmatprep.mubr.msk.f32.mxu0 %vm93_vm1, %v5754_v1  ;;  %4835 = vmatprep.mubr.msk.f32.mxu1 %vm93_vm1, %v5759_v2  ;;  %v5788_v7 = vld [vmem:[%s7350_s0 + $0x20] sm:$0xff]  ;;  %v5799_v8 = vld [vmem:[%s7350_s0 + $0x28] sm:$0xff]  ;;  %v5807_v9 = vld [vmem:[%s7350_s0 + $0x30] sm:$0xff]  ;;  %s4167_s21 = sshll.u32 %s5688_s20, 4  ;;  %s4168_s21 = int_to_ptr.vmem [resolvable:$true] %s4167_s21 }
  0x29   :  { %4833 = vmatmul.mubr.msk.f32.vlgmr.msra.gmra.mxu0 %vm93_vm1, %v5766_v3  ;;  %4836 = vmatmul.mubr.msk.f32.vlgmr.msra.gmra.mxu1 %vm93_vm1, %v5771_v4  ;;  %v4212_v10 = vld [vmem:[%s7351_s1 + $0x8] sm:$0xf]  ;;  %v4224_v11 = vld [vmem:[%s7351_s1 + $0xc] sm:$0xf]  ;;  %v5829_v12 = vld [vmem:[%s7350_s0 + $0x38] sm:$0xff]  ;;  %vm253_vm2 = vcmp.lt.s32.totalorder %v6031_v38, 4  ;;  %p5660_p2 = scmp.lt.s32.totalorder %s4168_s21, %s4168_s21 }
  0x2a   :  { %4847 = vmatprep.subr.msk.mxu1 %vm124_vm0, %v4177_v5  ;;  %4864 = vmatprep.subr.msk.mxu0 %vm124_vm0, %v4200_v6  ;;  %v5834_v13 = vld [vmem:[%s7350_s0 + $0x40] sm:$0xff]  ;;  %v4248_v14 = vld [vmem:[%s7351_s1 + $0x18] sm:$0xf]  ;;  %v5853_v15 = vld [vmem:[%s7350_s0 + $0x48] sm:$0xff]  ;;  %vm537_vm3 = vcmp.lt.s32.totalorder %v6031_v38, 3  ;;  %vm264_vm4 = vcmp.ge.s32.totalorder %v6031_v38, 4 }
  0x2b   :  { %4848 = vmatpush3.msk.msra.mxu1 %vm124_vm0, %v4177_v5  ;;  %4838 = vmatprep.mubr.msk.f32.mxu1 %vm93_vm1, %v5788_v7  ;;  %v4236_v16 = vld [vmem:[%s7351_s1 + $0x14] sm:$0xf]  ;;  %v4272_v17 = vld [vmem:[%s7351_s1 + $0x20] sm:$0xf]  ;;  %v4260_v18 = vld [vmem:[%s7351_s1 + $0x1c] sm:$0xf] }
  0x2c   :  { %4865 = vmatpush3.msk.msra.mxu0 %vm124_vm0, %v4200_v6  ;;  %4866 = vmatprep.mubr.msk.f32.mxu0 %vm93_vm1, %v5754_v1  ;;  %v1651_v19 = vld [vmem:[#allocation2 + $0x38] sm:$0xff]  ;;  %v1650_v20 = vld [vmem:[#allocation2 + $0x30] sm:$0xff]  ;;  %v1649_v23 = vld [vmem:[#allocation2 + $0x28] sm:$0xff]  ;;  %vm548_vm5 = vcmp.ge.s32.totalorder %v6031_v38, 3  ;;  %vm879_vm6 = vcmp.lt.s32.totalorder %v6031_v38, 1  ;;  %vm708_vm7 = vcmp.lt.s32.totalorder %v6031_v38, 2 }
  0x2d   :  { %4839 = vmatmul.mubr.msk.f32.gmra.mxu1 %vm93_vm1, %v5799_v8  ;;  %4867 = vmatmul.mubr.msk.f32.vlgmr.msra.gmra.mxu0 %vm93_vm1, %v5766_v3  ;;  %v1643_v21 = vld [vmem:[#allocation2 + $0xf8] sm:$0xff]  ;;  %v1642_v22 = vld [vmem:[#allocation2 + $0xf0] sm:$0xff]  ;;  %v1641_v24 = vld [vmem:[#allocation2 + $0xe8] sm:$0xff]  ;;  %vm890_vm8 = vcmp.ge.s32.totalorder %v6031_v38, 1  ;;  %vm719_vm9 = vcmp.ge.s32.totalorder %v6031_v38, 2  ;;  %vm1226_vm10 = vcmp.lt.s32.totalorder %v6031_v38, 6 }
  0x2e   :  { %4841 = vmatprep.mubr.msk.f32.mxu1 %vm93_vm1, %v5807_v9  ;;  %4869 = vmatprep.mubr.msk.f32.mxu0 %vm93_vm1, %v5759_v2  ;;  %v1648_v25 = vld [vmem:[#allocation2 + $0x20] sm:$0xff]  ;;  %v1647_v27 = vld [vmem:[#allocation2 + $0x18] sm:$0xff]  ;;  %v1646_v29 = vld [vmem:[#allocation2 + $0x10] sm:$0xff]  ;;  %vm1050_vm11 = vcmp.lt.s32.totalorder %v6031_v38, 7  ;;  %vm1397_vm14 = vcmp.lt.s32.totalorder %v6031_v38, 5  ;;  %s5655_s22 = scalar_lea.vmem %s4168_s21, 32 }
  0x2f   :  { %4881 = vmatprep.subr.msk.mxu1 %vm124_vm0, %v4212_v10  ;;  %4898 = vmatprep.subr.msk.mxu0 %vm124_vm0, %v4224_v11  ;;  %v1640_v26 = vld [vmem:[#allocation2 + $0xe0] sm:$0xff]  ;;  %v1639_v28 = vld [vmem:[#allocation2 + $0xd8] sm:$0xff]  ;;  %v1638_v30 = vld [vmem:[#allocation2 + $0xd0] sm:$0xff]  ;;  %p5656_p1 = scmp.ne.s32.totalorder %s4168_s21, %s5655_s22  ;;  %p5661_p3 = scmp.lt.s32.totalorder %s5655_s22, %s5655_s22 }
  0x30   :  { %4899 = vmatpush3.msk.msra.mxu0 %vm124_vm0, %v4224_v11  ;;  %v1645_v31 = vld [vmem:[#allocation2 + $0x8] sm:$0xff]  ;;  %v1644_v33 = vld [vmem:[#allocation2] sm:$0xff]  ;;  %v6025_v35 = vld [vmem:[#allocation2 + $0x78] sm:$0xff] }
  0x31   :  { %4842 = vmatmul.mubr.msk.f32.gmra.mxu1 %vm93_vm1, %v5829_v12  ;;  %4870 = vmatmul.mubr.msk.f32.gmra.mxu0 %vm93_vm1, %v5771_v4  ;;  %v1637_v32 = vld [vmem:[#allocation2 + $0xc8] sm:$0xff]  ;;  %v1636_v34 = vld [vmem:[#allocation2 + $0xc0] sm:$0xff]  ;;  %v6027_v36 = vld [vmem:[#allocation2 + $0xb8] sm:$0xff]  ;;  %p5662_p4 = por %p5661_p3, %p5660_p2 }
  0x32   :  { %4844 = vmatprep.mubr.msk.f32.mxu1 %vm93_vm1, %v5834_v13  ;;  %4872 = vmatprep.mubr.msk.f32.mxu0 %vm93_vm1, %v5788_v7 }
  0x33   :  { %4932 = vmatprep.subr.msk.mxu0 %vm124_vm0, %v4248_v14  ;;  %p5663_p5 = pnand %p5662_p4, %p5656_p1 }
  0x35   :  { %4845 = vmatmul.mubr.msk.f32.gmra.mxu1 %vm93_vm1, %v5853_v15  ;;  %4873 = vmatmul.mubr.msk.f32.gmra.mxu0 %vm93_vm1, %v5799_v8 }
  0x36   :  { %4849 = vmatprep.mubr.msk.f32.mxu1 %vm93_vm1, %v5754_v1  ;;  %4875 = vmatprep.mubr.msk.f32.mxu0 %vm93_vm1, %v5807_v9 }
  0x39   :  { %4850 = vmatmul.mubr.msk.f32.vlgmr.msra.gmra.mxu1 %vm93_vm1, %v5766_v3  ;;  %4876 = vmatmul.mubr.msk.f32.gmra.mxu0 %vm93_vm1, %v5829_v12 }
  0x3a   :  { %4882 = vmatpush3.msk.msra.mxu1 %vm124_vm0, %v4212_v10  ;;  %4852 = vmatprep.mubr.msk.f32.mxu1 %vm93_vm1, %v5759_v2 }
  0x3b   :  { %4878 = vmatprep.mubr.msk.f32.mxu0 %vm93_vm1, %v5834_v13  ;;  %4915 = vmatprep.subr.msk.mxu1 %vm124_vm0, %v4236_v16 }
  0x3d   :  { %4853 = vmatmul.mubr.msk.f32.gmra.mxu1 %vm93_vm1, %v5771_v4  ;;  %4879 = vmatmul.mubr.msk.f32.gmra.mxu0 %vm93_vm1, %v5853_v15 }
  0x3e   :  { %4855 = vmatprep.mubr.msk.f32.mxu1 %vm93_vm1, %v5788_v7  ;;  %4900 = vmatprep.mubr.msk.f32.mxu0 %vm93_vm1, %v5754_v1 }
  0x41   :  { %4856 = vmatmul.mubr.msk.f32.gmra.mxu1 %vm93_vm1, %v5799_v8  ;;  %4901 = vmatmul.mubr.msk.f32.vlgmr.msra.gmra.mxu0 %vm93_vm1, %v5766_v3 }
  0x42   :  { %4858 = vmatprep.mubr.msk.f32.mxu1 %vm93_vm1, %v5807_v9  ;;  %4903 = vmatprep.mubr.msk.f32.mxu0 %vm93_vm1, %v5759_v2 }
  0x43   :  { %4933 = vmatpush3.msk.msra.mxu0 %vm124_vm0, %v4248_v14 }
  0x44   :  { %4966 = vmatprep.subr.msk.mxu0 %vm124_vm0, %v4272_v17 }
  0x45   :  { %4859 = vmatmul.mubr.msk.f32.gmra.mxu1 %vm93_vm1, %v5829_v12  ;;  %4904 = vmatmul.mubr.msk.f32.gmra.mxu0 %vm93_vm1, %v5771_v4 }
  0x46   :  { %4861 = vmatprep.mubr.msk.f32.mxu1 %vm93_vm1, %v5834_v13  ;;  %4906 = vmatprep.mubr.msk.f32.mxu0 %vm93_vm1, %v5788_v7 }
  0x49   :  { %4862 = vmatmul.mubr.msk.f32.gmra.mxu1 %vm93_vm1, %v5853_v15  ;;  %4907 = vmatmul.mubr.msk.f32.gmra.mxu0 %vm93_vm1, %v5799_v8 }
  0x4a   :  { %4883 = vmatprep.mubr.msk.f32.mxu1 %vm93_vm1, %v5754_v1  ;;  %4909 = vmatprep.mubr.msk.f32.mxu0 %vm93_vm1, %v5807_v9 }
  0x4d   :  { %4884 = vmatmul.mubr.msk.f32.vlgmr.msra.gmra.mxu1 %vm93_vm1, %v5766_v3  ;;  %4910 = vmatmul.mubr.msk.f32.gmra.mxu0 %vm93_vm1, %v5829_v12 }
  0x4e   :  { %4916 = vmatpush3.msk.msra.mxu1 %vm124_vm0, %v4236_v16  ;;  %4886 = vmatprep.mubr.msk.f32.mxu1 %vm93_vm1, %v5759_v2 }
  0x4f   :  { %4912 = vmatprep.mubr.msk.f32.mxu0 %vm93_vm1, %v5834_v13  ;;  %4949 = vmatprep.subr.msk.mxu1 %vm124_vm0, %v4260_v18 }
  0x51   :  { %4887 = vmatmul.mubr.msk.f32.gmra.mxu1 %vm93_vm1, %v5771_v4  ;;  %4913 = vmatmul.mubr.msk.f32.gmra.mxu0 %vm93_vm1, %v5853_v15 }
  0x52   :  { %4889 = vmatprep.mubr.msk.f32.mxu1 %vm93_vm1, %v5788_v7  ;;  %4934 = vmatprep.mubr.msk.f32.mxu0 %vm93_vm1, %v5754_v1 }
  0x55   :  { %4890 = vmatmul.mubr.msk.f32.gmra.mxu1 %vm93_vm1, %v5799_v8  ;;  %4935 = vmatmul.mubr.msk.f32.vlgmr.msra.gmra.mxu0 %vm93_vm1, %v5766_v3 }
  0x56   :  { %4892 = vmatprep.mubr.msk.f32.mxu1 %vm93_vm1, %v5807_v9  ;;  %4937 = vmatprep.mubr.msk.f32.mxu0 %vm93_vm1, %v5759_v2 }
  0x57   :  { %4967 = vmatpush3.msk.msra.mxu0 %vm124_vm0, %v4272_v17 }
  0x58   :  { %5014 = vmatprep.subr.mxu0 %v1643_v21 }
  0x59   :  { %4893 = vmatmul.mubr.msk.f32.gmra.mxu1 %vm93_vm1, %v5829_v12  ;;  %4938 = vmatmul.mubr.msk.f32.gmra.mxu0 %vm93_vm1, %v5771_v4 }
  0x5a   :  { %4895 = vmatprep.mubr.msk.f32.mxu1 %vm93_vm1, %v5834_v13  ;;  %4940 = vmatprep.mubr.msk.f32.mxu0 %vm93_vm1, %v5788_v7 }
  0x5d   :  { %4896 = vmatmul.mubr.msk.f32.gmra.mxu1 %vm93_vm1, %v5853_v15  ;;  %4941 = vmatmul.mubr.msk.f32.gmra.mxu0 %vm93_vm1, %v5799_v8 }
  0x5e   :  { %4917 = vmatprep.mubr.msk.f32.mxu1 %vm93_vm1, %v5754_v1  ;;  %4943 = vmatprep.mubr.msk.f32.mxu0 %vm93_vm1, %v5807_v9 }
  0x61   :  { %4918 = vmatmul.mubr.msk.f32.vlgmr.msra.gmra.mxu1 %vm93_vm1, %v5766_v3  ;;  %4944 = vmatmul.mubr.msk.f32.gmra.mxu0 %vm93_vm1, %v5829_v12 }
  0x62   :  { %4950 = vmatpush3.msk.msra.mxu1 %vm124_vm0, %v4260_v18  ;;  %4920 = vmatprep.mubr.msk.f32.mxu1 %vm93_vm1, %v5759_v2 }
  0x63   :  { %4946 = vmatprep.mubr.msk.f32.mxu0 %vm93_vm1, %v5834_v13  ;;  %4983 = vmatprep.subr.mxu1 %v1651_v19 }
  0x65   :  { %4921 = vmatmul.mubr.msk.f32.gmra.mxu1 %vm93_vm1, %v5771_v4  ;;  %4947 = vmatmul.mubr.msk.f32.gmra.mxu0 %vm93_vm1, %v5853_v15 }
  0x66   :  { %4923 = vmatprep.mubr.msk.f32.mxu1 %vm93_vm1, %v5788_v7  ;;  %4968 = vmatprep.mubr.msk.f32.mxu0 %vm93_vm1, %v5754_v1 }
  0x69   :  { %4924 = vmatmul.mubr.msk.f32.gmra.mxu1 %vm93_vm1, %v5799_v8  ;;  %4969 = vmatmul.mubr.msk.f32.vlgmr.msra.gmra.mxu0 %vm93_vm1, %v5766_v3 }
  0x6a   :  { %4926 = vmatprep.mubr.msk.f32.mxu1 %vm93_vm1, %v5807_v9  ;;  %4971 = vmatprep.mubr.msk.f32.mxu0 %vm93_vm1, %v5759_v2 }
  0x6b   :  { %5015 = vmatpush3.msra.mxu0 %v1643_v21 }
  0x6c   :  { %5016 = vmatprep.subr.mxu0 %v1642_v22 }
  0x6d   :  { %4927 = vmatmul.mubr.msk.f32.gmra.mxu1 %vm93_vm1, %v5829_v12  ;;  %4972 = vmatmul.mubr.msk.f32.gmra.mxu0 %vm93_vm1, %v5771_v4 }
  0x6e   :  { %4929 = vmatprep.mubr.msk.f32.mxu1 %vm93_vm1, %v5834_v13  ;;  %4974 = vmatprep.mubr.msk.f32.mxu0 %vm93_vm1, %v5788_v7 }
  0x6f   :  { %5017 = vmatpush3.msra.mxu0 %v1642_v22 }
  0x70   :  { %5018 = vmatprep.subr.mxu0 %v1641_v24 }
  0x71   :  { %4930 = vmatmul.mubr.msk.f32.gmra.mxu1 %vm93_vm1, %v5853_v15  ;;  %4975 = vmatmul.mubr.msk.f32.gmra.mxu0 %vm93_vm1, %v5799_v8 }
  0x72   :  { %4951 = vmatprep.mubr.msk.f32.mxu1 %vm93_vm1, %v5754_v1  ;;  %4977 = vmatprep.mubr.msk.f32.mxu0 %vm93_vm1, %v5807_v9 }
  0x73   :  { %5019 = vmatpush3.msra.mxu0 %v1641_v24 }
  0x74   :  { %5020 = vmatprep.subr.mxu0 %v1640_v26 }
  0x75   :  { %4952 = vmatmul.mubr.msk.f32.vlgmr.msra.gmra.mxu1 %vm93_vm1, %v5766_v3  ;;  %4978 = vmatmul.mubr.msk.f32.gmra.mxu0 %vm93_vm1, %v5829_v12 }
  0x76   :  { %4954 = vmatprep.mubr.msk.f32.mxu1 %vm93_vm1, %v5759_v2  ;;  %4980 = vmatprep.mubr.msk.f32.mxu0 %vm93_vm1, %v5834_v13 }
  0x77   :  { %4984 = vmatpush3.msra.mxu1 %v1651_v19  ;;  %5021 = vmatpush3.msra.mxu0 %v1640_v26 }
  0x78   :  { %4985 = vmatprep.subr.mxu1 %v1650_v20  ;;  %5022 = vmatprep.subr.mxu0 %v1639_v28 }
  0x79   :  { %4955 = vmatmul.mubr.msk.f32.gmra.mxu1 %vm93_vm1, %v5771_v4  ;;  %4981 = vmatmul.mubr.msk.f32.gmra.mxu0 %vm93_vm1, %v5853_v15 }
  0x7a   :  { %4957 = vmatprep.mubr.msk.f32.mxu1 %vm93_vm1, %v5788_v7  ;;  %4986 = vmatpush3.msra.mxu1 %v1650_v20 }
  0x7b   :  { %4987 = vmatprep.subr.mxu1 %v1649_v23  ;;  %5023 = vmatpush3.msra.mxu0 %v1639_v28 }
  0x7c   :  { %4988 = vmatpush3.msra.mxu1 %v1649_v23  ;;  %5024 = vmatprep.subr.mxu0 %v1638_v30 }
  0x7d   :  { %4958 = vmatmul.mubr.msk.f32.gmra.mxu1 %vm93_vm1, %v5799_v8  ;;  %4989 = vmatprep.subr.mxu1 %v1648_v25 }
  0x7e   :  { %4960 = vmatprep.mubr.msk.f32.mxu1 %vm93_vm1, %v5807_v9  ;;  %4990 = vmatpush3.msra.mxu1 %v1648_v25 }
  0x7f   :  { %4991 = vmatprep.subr.mxu1 %v1647_v27  ;;  %5025 = vmatpush3.msra.mxu0 %v1638_v30 }
  0x80   :  { %4992 = vmatpush3.msra.mxu1 %v1647_v27  ;;  %5026 = vmatprep.subr.mxu0 %v1637_v32 }
  0x81   :  { %4961 = vmatmul.mubr.msk.f32.gmra.mxu1 %vm93_vm1, %v5829_v12  ;;  %4993 = vmatprep.subr.mxu1 %v1646_v29 }
  0x82   :  { %4963 = vmatprep.mubr.msk.f32.mxu1 %vm93_vm1, %v5834_v13  ;;  %4994 = vmatpush3.msra.mxu1 %v1646_v29 }
  0x83   :  { %4995 = vmatprep.subr.mxu1 %v1645_v31  ;;  %5027 = vmatpush3.msra.mxu0 %v1637_v32 }
  0x84   :  { %4996 = vmatpush3.msra.mxu1 %v1645_v31  ;;  %5028 = vmatprep.subr.mxu0 %v1636_v34 }
  0x85   :  { %4964 = vmatmul.mubr.msk.f32.gmra.mxu1 %vm93_vm1, %v5853_v15  ;;  %4997 = vmatprep.subr.mxu1 %v1644_v33  ;;  %vm1652_vm1 = vcmask 523264  }
  0x86   :  { %4998 = vmatpush3.msra.mxu1 %v1644_v33  ;;  %5029 = vmatpush3.msra.mxu0 %v1636_v34 }
  0x87   :  { %5045 = vmatprep.subr.mxu1 %v6025_v35  ;;  %5076 = vmatprep.subr.mxu0 %v6027_v36 }
  0xe9   :  { %v6033_v39 = vpop.f32.mrf.mxu0  ;;  %v4837_v40 = vpop.f32.mrf.mxu1 }
  0xea   :  { %v246_v43 = vrot.slane %v4837_v40, 4  ;;  %v244_v23 = vrot.slane %v6033_v39, 4 }
  0xeb   :  { %v6035_v41 = vpop.f32.mrf.mxu0  ;;  %v6037_v42 = vpop.f32.mrf.mxu1 }
  0xec   :  { %v245_v44 = vrot.slane %v6037_v42, 4  ;;  %v243_v20 = vrot.slane %v6035_v41, 4 }
  0xed   :  { %v4840_v45 = vpop.f32.mrf.mxu1  ;;  %v6041_v46 = vpop.f32.mrf.mxu0 }
  0xee   :  { %v6047_v47 = vsel %vm253_vm2, %v245_v44, %v246_v43  ;;  %v248_v50 = vrot.slane %v4840_v45, 4  ;;  %v262_v29 = vsel %vm253_vm2, %v243_v20, %v244_v23  ;;  %v528_v33 = vrot.slane %v6041_v46, 5 }
  0xef   :  { %v214_v48 = vpop.f32.mrf.mxu1  ;;  %v6049_v49 = vpop.f32.mrf.mxu0  ;;  %v6144_v46 = vadd.s32 32, %v6031_v38 }
  0xf0   :  { %v247_v51 = vrot.slane %v214_v48, 4  ;;  %v527_v34 = vrot.slane %v6049_v49, 5 }
  0xf1   :  { %v4843_v52 = vpop.f32.mrf.mxu1  ;;  %v6051_v53 = vpop.f32.mrf.mxu0  ;;  %vm1241_vm12 = vcmp.lt.s32.totalorder %v6144_v46, 38  ;;  %vm1070_vm13 = vcmp.lt.s32.totalorder %v6144_v46, 39  ;;  %vm1582_vm15 = vcmp.lt.s32.totalorder %v6144_v46, 36  ;;  %vm1412_vm0 = vcmp.lt.s32.totalorder %v6144_v46, 37 }
  0xf2   :  { %v6055_v54 = vsel %vm253_vm2, %v247_v51, %v248_v50  ;;  %v6061_v57 = vsel %vm253_vm2, %v246_v43, %v247_v51  ;;  %v250_v59 = vrot.slane %v4843_v52, 4  ;;  %v530_v37 = vrot.slane %v6051_v53, 5 }
  0xf3   :  { %v224_v55 = vpop.f32.mrf.mxu1  ;;  %v6057_v56 = vpop.f32.mrf.mxu0 }
  0xf4   :  { %v249_v58 = vrot.slane %v224_v55, 4  ;;  %v529_v39 = vrot.slane %v6057_v56, 5  ;;  %v546_v55 = vsel %vm537_vm3, %v527_v34, %v528_v33 }
  0xf5   :  { %v6063_v60 = vpop.f32.mrf.mxu1  ;;  %v6065_v61 = vpop.f32.mrf.mxu0 }
  0xf6   :  { %v6073_v0 = vsel %vm253_vm2, %v249_v58, %v250_v59  ;;  %v6077_v1 = vsel %vm253_vm2, %v248_v50, %v249_v58  ;;  %v252_v26 = vrot.slane %v6063_v60, 4  ;;  %v532_v27 = vrot.slane %v6065_v61, 5 }
  0xf7   :  { %v6067_v62 = vpop.f32.mrf.mxu1  ;;  %v6069_v63 = vpop.f32.mrf.mxu0  ;;  %v544_v56 = vsel %vm537_vm3, %v529_v39, %v530_v37  ;;  %v261_v58 = vsel %vm253_vm2, %v244_v23, %v245_v44 }
  0xf8   :  { %v251_v2 = vrot.slane %v6067_v62, 4  ;;  %v531_v28 = vrot.slane %v6069_v63, 5  ;;  %v263_v45 = vsel %vm253_vm2, %v252_v26, %v243_v20  ;;  %v545_v63 = vsel %vm537_vm3, %v528_v33, %v529_v39 }
  0xf9   :  { %v4851_v3 = vpop.f32.mrf.mxu1  ;;  %v6080_v4 = vpop.f32.mrf.mxu0  ;;  %v279_v60 = vsel %vm264_vm4, %v263_v45, 0.0 }
  0xfa   :  { %v6090_v7 = vsel %vm253_vm2, %v250_v59, %v251_v2  ;;  %v364_v43 = vadd.f32 %v4851_v3, %v262_v29  ;;  %v534_v48 = vrot.slane %v6080_v4, 5  ;;  %v542_v51 = vsel %vm537_vm3, %v531_v28, %v532_v27 }
  0xfb   :  { %v6082_v5 = vpop.f32.mrf.mxu1  ;;  %v6084_v6 = vpop.f32.mrf.mxu0  ;;  %v284_v59 = vsel %vm264_vm4, %v6055_v54, 0.0  ;;  %v543_v3 = vsel %vm537_vm3, %v530_v37, %v531_v28  ;;  %v254_v23 = vsel %vm253_vm2, %v251_v2, %v252_v26 }
  0xfc   :  { %v533_v49 = vrot.slane %v6084_v6, 5 }
  0xfd   :  { %v4854_v8 = vpop.f32.mrf.mxu1  ;;  %v6092_v9 = vpop.f32.mrf.mxu0 }
  0xfe   :  { %v536_v30 = vrot.slane %v6092_v9, 5  ;;  %v374_v61 = vadd.f32 %v4854_v8, %v6047_v47  ;;  %v563_v9 = vsel %vm548_vm5, %v542_v51, 0.0  ;;  %v569_v47 = vadd.f32 %v546_v55, %v364_v43 }
  0xff   :  { %v368_v10 = vpop.f32.mrf.mxu1  ;;  %v6094_v11 = vpop.f32.mrf.mxu0  ;;  %v359_v8 = vadd.f32 %v6082_v5, %v279_v60  ;;  %v540_v20 = vsel %vm537_vm3, %v533_v49, %v534_v48  ;;  %v541_v62 = vsel %vm537_vm3, %v532_v27, %v533_v49 }
 0x100   :  { %v547_v50 = vsel %vm537_vm3, %v536_v30, %v527_v34  ;;  %v369_v6 = vadd.f32 %v368_v10, %v261_v58  ;;  %v535_v54 = vrot.slane %v6094_v11, 5  ;;  %v6197_v5 = vadd.f32 %v544_v56, %v374_v61 }
 0x101   :  { %v4857_v12 = vpop.f32.mrf.mxu1  ;;  %v6096_v13 = vpop.f32.mrf.mxu0  ;;  %v558_v44 = vsel %vm548_vm5, %v547_v50, 0.0 }
 0x102   :  { %v384_v10 = vadd.f32 %v4857_v12, %v284_v59  ;;  %v870_v11 = vrot.slane %v6096_v13, 7  ;;  %v6199_v37 = vadd.f32 %v558_v44, %v359_v8  ;;  %v570_v12 = vadd.f32 %v545_v63, %v369_v6 }
 0x103   :  { %v378_v14 = vpop.f32.mrf.mxu1  ;;  %v6098_v15 = vpop.f32.mrf.mxu0 }
 0x104   :  { %v379_v33 = vadd.f32 %v378_v14, %v6061_v57  ;;  %v869_v34 = vrot.slane %v6098_v15, 7  ;;  %v538_v14 = vsel %vm537_vm3, %v535_v54, %v536_v30 }
 0x105   :  { %v6100_v16 = vpop.f32.mrf.mxu1  ;;  %v6102_v17 = vpop.f32.mrf.mxu0 }
 0x106   :  { %v394_v13 = vadd.f32 %v6100_v16, %v6073_v0  ;;  %v872_v15 = vrot.slane %v6102_v17, 7  ;;  %v6223_v0 = vadd.f32 %v563_v9, %v384_v10  ;;  %v888_v16 = vsel %vm879_vm6, %v869_v34, %v870_v11 }
 0x107   :  { %v6104_v18 = vpop.f32.mrf.mxu1  ;;  %v6106_v19 = vpop.f32.mrf.mxu0  ;;  %v539_v17 = vsel %vm537_vm3, %v534_v48, %v535_v54 }
 0x108   :  { %v389_v57 = vadd.f32 %v6104_v18, %v6077_v1  ;;  %v871_v27 = vrot.slane %v6106_v19, 7  ;;  %v6225_v1 = vadd.f32 %v543_v3, %v379_v33  ;;  %v6240_v51 = vadd.f32 %v540_v20, %v394_v13 }
 0x109   :  { %v6109_v21 = vpop.f32.mrf.mxu1  ;;  %v6111_v22 = vpop.f32.mrf.mxu0 }
 0x10a   :  { %v404_v18 = vadd.f32 %v6109_v21, %v254_v23  ;;  %v6242_v55 = vadd.f32 %v541_v62, %v389_v57  ;;  %v886_v21 = vsel %vm879_vm6, %v871_v27, %v872_v15 }
 0x10b   :  { %v6114_v24 = vpop.f32.mrf.mxu1  ;;  %v6116_v25 = vpop.f32.mrf.mxu0 }
 0x10c   :  { %v399_v19 = vadd.f32 %v6114_v24, %v6090_v7  ;;  %v887_v7 = vsel %vm879_vm6, %v870_v11, %v871_v27  ;;  %v6259_v3 = vadd.f32 %v538_v14, %v404_v18 }
 0x10d   :  { %v6124_v31 = vpop.f32.mrf.mxu1  ;;  %v6126_v32 = vpop.f32.mrf.mxu0 }
 0x10e   :  { %v699_v43 = vrot.slane %v6124_v31, 6 }
 0x10f   :  { %v6136_v40 = vpop.f32.mrf.mxu1  ;;  %v6138_v41 = vpop.f32.mrf.mxu0 }
 0x110   :  { %v698_v2 = vrot.slane %v6136_v40, 6  ;;  %v874_v40 = vrot.slane %v6111_v22, 7  ;;  %v873_v22 = vrot.slane %v6116_v25, 7  ;;  %v876_v25 = vrot.slane %v6126_v32, 7 }
 0x111   :  { %v6152_v52 = vpop.f32.mrf.mxu1  ;;  %v6154_v53 = vpop.f32.mrf.mxu0 }
 0x112   :  { %v717_v30 = vsel %vm708_vm7, %v698_v2, %v699_v43  ;;  %v878_v48 = vrot.slane %v6154_v53, 7  ;;  %v884_v24 = vsel %vm879_vm6, %v873_v22, %v874_v40  ;;  %v875_v53 = vrot.slane %v6138_v41, 7 }
 0x113   :  { %v6174_v4 = vpop.f32.mrf.mxu1  ;;  %v6176_v42 = vpop.f32.mrf.mxu0  ;;  %v740_v60 = vadd.f32 %v717_v30, %v569_v47  ;;  %v701_v61 = vrot.slane %v6152_v52, 6  ;;  %v885_v44 = vsel %vm879_vm6, %v872_v15, %v873_v22  ;;  %v6276_v8 = vsel %vm890_vm8, %v884_v24, 0.0 }
 0x114   :  { %v700_v56 = vrot.slane %v6174_v4, 6  ;;  %v6261_v4 = vadd.f32 %v539_v17, %v399_v19  ;;  %v889_v9 = vsel %vm879_vm6, %v878_v48, %v869_v34  ;;  %v6280_v20 = vsel %vm879_vm6, %v875_v53, %v876_v25 }
 0x115   :  { %v6190_v28 = vpop.f32.mrf.mxu1  ;;  %v6192_v29 = vpop.f32.mrf.mxu0  ;;  %v877_v34 = vrot.slane %v6176_v42, 7  ;;  %v900_v13 = vsel %vm890_vm8, %v889_v9, 0.0 }
 0x116   :  { %v715_v41 = vsel %vm708_vm7, %v700_v56, %v701_v61  ;;  %v716_v52 = vsel %vm708_vm7, %v699_v43, %v700_v56  ;;  %v703_v47 = vrot.slane %v6190_v28, 6  ;;  %v883_v28 = vsel %vm879_vm6, %v874_v40, %v875_v53 }
 0x117   :  { %v6204_v26 = vpop.f32.mrf.mxu1  ;;  %v6206_v39 = vpop.f32.mrf.mxu0  ;;  %v742_v57 = vadd.f32 %v715_v41, %v6197_v5  ;;  %v1217_v42 = vrot.slane %v6192_v29, 2 }
 0x118   :  { %v702_v63 = vrot.slane %v6204_v26, 6  ;;  %v6294_v26 = vadd.f32 %v888_v16, %v740_v60  ;;  %v1216_v40 = vrot.slane %v6206_v39, 2  ;;  %v881_v39 = vsel %vm879_vm6, %v876_v25, %v877_v34 }
 0x119   :  { %v6219_v45 = vpop.f32.mrf.mxu1  ;;  %v6221_v49 = vpop.f32.mrf.mxu0  ;;  %v6331_v60 = vadd.f32 %v886_v21, %v742_v57 }
 0x11a   :  { %v713_v62 = vsel %vm708_vm7, %v702_v63, %v703_v47  ;;  %v714_v14 = vsel %vm708_vm7, %v701_v61, %v702_v63  ;;  %v705_v43 = vrot.slane %v6219_v45, 6  ;;  %v1219_v22 = vrot.slane %v6221_v49, 2 }
 0x11b   :  { %v679_v31 = vpop.f32.mrf.mxu1  ;;  %v6238_v50 = vpop.f32.mrf.mxu0  ;;  %v734_v5 = vsel %vm719_vm9, %v713_v62, 0.0  ;;  %v743_v45 = vadd.f32 %v714_v14, %v6225_v1  ;;  %v1235_v49 = vsel %vm1226_vm10, %v1216_v40, %v1217_v42 }
 0x11c   :  { %v704_v23 = vrot.slane %v679_v31, 6  ;;  %v1218_v31 = vrot.slane %v6238_v50, 2  ;;  %v744_v25 = vadd.f32 %v734_v5, %v6223_v0 }
 0x11d   :  { %v4897_v58 = vpop.f32.mrf.mxu1  ;;  %v6254_v59 = vpop.f32.mrf.mxu0  ;;  %v6347_v0 = vadd.f32 %v885_v44, %v743_v45 }
 0x11e   :  { %v707_v32 = vrot.slane %v4897_v58, 6  ;;  %v712_v17 = vsel %vm708_vm7, %v703_v47, %v704_v23  ;;  %v711_v30 = vsel %vm708_vm7, %v704_v23, %v705_v43 }
 0x11f   :  { %v689_v6 = vpop.f32.mrf.mxu1  ;;  %v6265_v54 = vpop.f32.mrf.mxu0  ;;  %v745_v1 = vadd.f32 %v712_v17, %v6242_v55  ;;  %v746_v50 = vadd.f32 %v711_v30, %v6240_v51  ;;  %v6351_v55 = vsel %vm1226_vm10, %v1218_v31, %v1219_v22 }
 0x120   :  { %v718_v10 = vsel %vm708_vm7, %v707_v32, %v698_v2  ;;  %v741_v2 = vadd.f32 %v716_v52, %v570_v12  ;;  %v880_v12 = vsel %vm879_vm6, %v877_v34, %v878_v48  ;;  %v706_v18 = vrot.slane %v689_v6, 6 }
 0x121   :  { %v6284_v11 = vpop.f32.mrf.mxu1  ;;  %v6286_v33 = vpop.f32.mrf.mxu0  ;;  %v729_v16 = vsel %vm719_vm9, %v718_v10, 0.0  ;;  %v1220_v6 = vrot.slane %v6265_v54, 2 }
 0x122   :  { %v739_v48 = vadd.f32 %v729_v16, %v6199_v37  ;;  %v912_v56 = vadd.f32 %v887_v7, %v741_v2  ;;  %v1221_v37 = vrot.slane %v6254_v59, 2  ;;  %v709_v7 = vsel %vm708_vm7, %v706_v18, %v707_v32 }
 0x123   :  { %v6301_v15 = vpop.f32.mrf.mxu1  ;;  %v6303_v27 = vpop.f32.mrf.mxu0  ;;  %v710_v21 = vsel %vm708_vm7, %v705_v43, %v706_v18  ;;  %v1041_v51 = vrot.slane %v6284_v11, 1  ;;  %v1234_v32 = vsel %vm1226_vm10, %v1217_v42, %v1218_v31  ;;  %v748_v23 = vadd.f32 %v709_v7, %v6259_v3 }
 0x124   :  { %v1040_v53 = vrot.slane %v6301_v15, 1  ;;  %v910_v9 = vadd.f32 %v900_v13, %v739_v48  ;;  %v747_v44 = vadd.f32 %v710_v21, %v6261_v4  ;;  %v915_v11 = vadd.f32 %v6276_v8, %v744_v25 }
 0x125   :  { %v6316_v19 = vpop.f32.mrf.mxu1  ;;  %v6318_v29 = vpop.f32.mrf.mxu0  ;;  %v1231_v54 = vsel %vm1226_vm10, %v1220_v6, %v1221_v37  ;;  %v916_v2 = vadd.f32 %v883_v28, %v745_v1  ;;  %v6374_v4 = vadd.f32 %v6280_v20, %v746_v50  ;;  %v1223_v3 = vrot.slane %v6286_v33, 2 }
 0x126   :  { %v1225_v41 = vrot.slane %v6318_v29, 2  ;;  %v1059_v10 = vsel %vm1050_vm11, %v1040_v53, %v1041_v51  ;;  %v1222_v57 = vrot.slane %v6303_v27, 2  ;;  %v1043_v14 = vrot.slane %v6316_v19, 1 }
 0x127   :  { %v1001_v24 = vpop.f32.mrf.mxu1  ;;  %v6329_v58 = vpop.f32.mrf.mxu0  ;;  %v1232_v42 = vsel %vm1226_vm10, %v1219_v22, %v1220_v6  ;;  %v1086_v43 = vadd.f32 %v1059_v10, %v910_v9  ;;  %v919_v33 = vadd.f32 %v880_v12, %v748_v23  ;;  %v1251_v27 = vsel %vm1241_vm12, %v1231_v54, 0.0 }
 0x128   :  { %v1042_v59 = vrot.slane %v1001_v24, 1  ;;  %v1236_v16 = vsel %vm1226_vm10, %v1225_v41, %v1216_v40  ;;  %v6390_v18 = vadd.f32 %v881_v39, %v747_v44  ;;  %v1224_v29 = vrot.slane %v6329_v58, 2 }
 0x129   :  { %v4925_v61 = vpop.f32.mrf.mxu1  ;;  %v6344_v63 = vpop.f32.mrf.mxu0  ;;  %v1229_v12 = vsel %vm1226_vm10, %v1222_v57, %v1223_v3  ;;  %v1230_v31 = vsel %vm1226_vm10, %v1221_v37, %v1222_v57  ;;  %v6404_v39 = vsel %vm1241_vm12, %v1236_v16, 0.0  ;;  %v1257_v50 = vadd.f32 %v1235_v49, %v1086_v43 }
 0x12a   :  { %v1058_v8 = vsel %vm1050_vm11, %v1041_v51, %v1042_v59  ;;  %v1045_v28 = vrot.slane %v4925_v61, 1  ;;  %v1057_v17 = vsel %vm1050_vm11, %v1042_v59, %v1043_v14  ;;  %v6410_v24 = vsel %vm1226_vm10, %v1224_v29, %v1225_v41 }
 0x12b   :  { %v1011_v52 = vpop.f32.mrf.mxu1  ;;  %v6358_v47 = vpop.f32.mrf.mxu0  ;;  %v1087_v19 = vadd.f32 %v1058_v8, %v6294_v26  ;;  %v1088_v48 = vadd.f32 %v1057_v17, %v912_v56  ;;  %v1559_v7 = vrot.slane %v6344_v63, 4  ;;  %v6419_v56 = vsel %vm1226_vm10, %v1223_v3, %v1224_v29 }
 0x12c   :  { %v1044_v34 = vrot.slane %v1011_v52, 1  ;;  %v1558_v21 = vrot.slane %v6358_v47, 4  ;;  %v1949_v47 = vld [vmem:[#allocation2 + $0x68] sm:$0xff] }
 0x12d   :  { %v6369_v62 = vpop.f32.mrf.mxu1  ;;  %v6371_v13 = vpop.f32.mrf.mxu0  ;;  %v1258_v63 = vadd.f32 %v1234_v32, %v1087_v19  ;;  %v1259_v32 = vadd.f32 %v6351_v55, %v1088_v48  ;;  %v6466_v19 = vld [vmem:[%s7352_s2] ss:$0 sm:$0xff] }
 0x12e   :  { %v1055_v40 = vsel %vm1050_vm11, %v1044_v34, %v1045_v28  ;;  %v1056_v26 = vsel %vm1050_vm11, %v1043_v14, %v1044_v34  ;;  %v1047_v61 = vrot.slane %v6369_v62, 1  ;;  %v1561_v6 = vrot.slane %v6371_v13, 4 }
 0x12f   :  { %v1021_v5 = vpop.f32.mrf.mxu1  ;;  %v1519_v20 = vpop.f32.mrf.mxu0  ;;  %v1080_v37 = vsel %vm1070_vm13, %v1055_v40, 0.0  ;;  %v1089_v51 = vadd.f32 %v1056_v26, %v6331_v60  ;;  %v1576_v15 = vsel %vm253_vm2, %v1558_v21, %v1559_v7 }
 0x130   :  { %v1046_v45 = vrot.slane %v1021_v5, 1  ;;  %v1090_v60 = vadd.f32 %v1080_v37, %v6347_v0  ;;  %v1560_v44 = vrot.slane %v1519_v20, 4 }
 0x131   :  { %v4931_v22 = vpop.f32.mrf.mxu1  ;;  %v6396_v30 = vpop.f32.mrf.mxu0  ;;  %v1260_v14 = vadd.f32 %v1232_v42, %v1089_v51 }
 0x132   :  { %v1049_v58 = vrot.slane %v4931_v22, 1  ;;  %v1054_v59 = vsel %vm1050_vm11, %v1045_v28, %v1046_v45  ;;  %v1053_v9 = vsel %vm1050_vm11, %v1046_v45, %v1047_v61  ;;  %v1563_v23 = vrot.slane %v6396_v30, 4 }
 0x133   :  { %v1031_v25 = vpop.f32.mrf.mxu1  ;;  %v1529_v1 = vpop.f32.mrf.mxu0  ;;  %v1091_v34 = vadd.f32 %v1054_v59, %v915_v11  ;;  %v1092_v0 = vadd.f32 %v1053_v9, %v916_v2  ;;  %v1574_v55 = vsel %vm253_vm2, %v1560_v44, %v1561_v6  ;;  %v1575_v43 = vsel %vm253_vm2, %v1559_v7, %v1560_v44 }
 0x134   :  { %v1060_v41 = vsel %vm1050_vm11, %v1049_v58, %v1040_v53  ;;  %v1048_v52 = vrot.slane %v1031_v25, 1  ;;  %v1562_v3 = vrot.slane %v1529_v1, 4  ;;  %v1261_v20 = vadd.f32 %v1251_v27, %v1090_v60 }
 0x135   :  { %v4953_v49 = vpop.f32.mrf.mxu1  ;;  %v6434_v10 = vpop.f32.mrf.mxu0  ;;  %v1085_v13 = vsel %vm1070_vm13, %v1060_v41, 0.0  ;;  %v1262_v45 = vadd.f32 %v1230_v31, %v1091_v34  ;;  %v1263_v25 = vadd.f32 %v1229_v12, %v1092_v0 }
 0x136   :  { %v1388_v62 = vrot.slane %v4953_v49, 3  ;;  %v1051_v8 = vsel %vm1050_vm11, %v1048_v52, %v1049_v58  ;;  %v1052_v11 = vsel %vm1050_vm11, %v1047_v61, %v1048_v52  ;;  %v1572_v42 = vsel %vm253_vm2, %v1562_v3, %v1563_v23 }
 0x137   :  { %v6436_v54 = vpop.f32.mrf.mxu1  ;;  %v1539_v28 = vpop.f32.mrf.mxu0  ;;  %v1095_v17 = vadd.f32 %v1085_v13, %v919_v33  ;;  %v1093_v22 = vadd.f32 %v1052_v11, %v6374_v4  ;;  %v1094_v26 = vadd.f32 %v1051_v8, %v6390_v18  ;;  %v1573_v1 = vsel %vm253_vm2, %v1561_v6, %v1562_v3 }
 0x138   :  { %v1387_v53 = vrot.slane %v6436_v54, 3  ;;  %v1592_v33 = vsel %vm1582_vm15, %v1572_v42, 0.0  ;;  %v1565_v31 = vrot.slane %v6434_v10, 4  ;;  %v1564_v61 = vrot.slane %v1539_v28, 4  ;;  %v1948_v10 = vld [vmem:[#allocation2 + $0x60] sm:$0xff] }
 0x139   :  { %v4956_v57 = vpop.f32.mrf.mxu1  ;;  %v6480_v18 = vpop.f32.mrf.mxu0  ;;  %v6483_v49 = vadd.f32 %v6404_v39, %v1095_v17  ;;  %v1264_v60 = vadd.f32 %v6419_v56, %v1093_v22 }
 0x13a   :  { %v1406_v2 = vsel %vm1397_vm14, %v1387_v53, %v1388_v62  ;;  %v1390_v29 = vrot.slane %v4956_v57, 3  ;;  %v1567_v44 = vrot.slane %v6480_v18, 4 }
 0x13b   :  { %v1428_v16 = vadd.f32 %v1406_v2, %v1257_v50  ;;  %v1348_v5 = vpop.f32.mrf.mxu1  ;;  %v1549_v2 = vpop.f32.mrf.mxu0 }
 0x13c   :  { %v1389_v40 = vrot.slane %v1348_v5, 3  ;;  %v1577_v54 = vsel %vm253_vm2, %v1567_v44, %v1558_v21 }
 0x13d   :  { %v1598_v48 = vadd.f32 %v1576_v15, %v1428_v16  ;;  %v4959_v58 = vpop.f32.mrf.mxu1  ;;  %v1265_v15 = vadd.f32 %v6410_v24, %v1094_v26  ;;  %v1570_v24 = vsel %vm253_vm2, %v1564_v61, %v1565_v31  ;;  %v1566_v26 = vrot.slane %v1549_v2, 4  ;;  %v2442_v2 = vld [vmem:[#allocation2 + $0x170] sm:$0xff] }
 0x13e   :  { %v1404_v27 = vsel %vm1397_vm14, %v1389_v40, %v1390_v29  ;;  %v1405_v50 = vsel %vm1397_vm14, %v1388_v62, %v1389_v40  ;;  %v1392_v51 = vrot.slane %v4959_v58, 3  ;;  %v2114_v40 = vld [vmem:[#allocation2 + $0xb0] sm:$0xff] }
 0x13f   :  { %v1615_v4 = vadd.f32 %v6466_v19, %v1598_v48  ;;  %v1429_v7 = vadd.f32 %v1405_v50, %v1258_v63  ;;  %v1430_v12 = vadd.f32 %v1404_v27, %v1259_v32  ;;  %v1358_v37 = vpop.f32.mrf.mxu1  ;;  %v1568_v21 = vsel %vm253_vm2, %v1566_v26, %v1567_v44 }
 0x140   :  { %v1391_v59 = vrot.slane %v1358_v37, 3  ;;  %v2113_v37 = vld [vmem:[#allocation2 + $0xa8] sm:$0xff] }
 0x141   :  { %v6485_v6 = vmax.f32 %v1615_v4, 0.0  ;;  %v1599_v9 = vadd.f32 %v1575_v43, %v1429_v7  ;;  %v1600_v41 = vadd.f32 %v1574_v55, %v1430_v12  ;;  %v4962_v52 = vpop.f32.mrf.mxu1  ;;  %v1569_v7 = vsel %vm253_vm2, %v1565_v31, %v1566_v26  ;;  %v2606_v26 = vld [vmem:[#allocation2 + $0x1b0] sm:$0xff] }
 0x142   :  { %v1402_v63 = vsel %vm1397_vm14, %v1391_v59, %v1392_v51  ;;  %v1403_v32 = vsel %vm1397_vm14, %v1390_v29, %v1391_v59  ;;  %v1394_v3 = vrot.slane %v4962_v52, 3  ;;  %v1950_v29 = vld [vmem:[#allocation2 + $0x70] sm:$0xff]  ;;  %v1947_v52 = vld [vmem:[#allocation2 + $0x58] sm:$0xff] }
 0x143   :  { %v1616_v39 = vadd.f32 %v6466_v19, %v1599_v9  ;;  %v1617_v34 = vadd.f32 %v6466_v19, %v1600_v41  ;;  %v1422_v62 = vsel %vm1412_vm0, %v1402_v63, 0.0  ;;  %v1431_v0 = vadd.f32 %v1403_v32, %v1260_v14  ;;  %v1368_v13 = vpop.f32.mrf.mxu1  ;;  %4999 = vmatprep.mubr.msk.f32.mxu1 %vm1652_vm1, %v6485_v6  ;;  %5030 = vmatprep.mubr.msk.f32.mxu0 %vm1652_vm1, %v6485_v6  ;;  %v2112_v63 = vld [vmem:[#allocation2 + $0xa0] sm:$0xff] }
 0x144   :  { %v1432_v56 = vadd.f32 %v1422_v62, %v1261_v20  ;;  %v1393_v57 = vrot.slane %v1368_v13, 3  ;;  %v1571_v14 = vsel %vm253_vm2, %v1563_v23, %v1564_v61  ;;  %v1597_v41 = vsel %vm1582_vm15, %v1577_v54, 0.0  ;;  %v2110_v62 = vld [vmem:[#allocation2 + $0x90] sm:$0xff]  ;;  %v2109_v13 = vld [vmem:[#allocation2 + $0x88] sm:$0xff]  ;;  %v2600_v54 = vld [vmem:[#allocation2 + $0x180] sm:$0xff] }
 0x145   :  { %v6510_v55 = vmax.f32 %v1616_v39, 0.0  ;;  %v6512_v8 = vmax.f32 %v1617_v34, 0.0  ;;  %v1601_v11 = vadd.f32 %v1573_v1, %v1431_v0  ;;  %v4965_v43 = vpop.f32.mrf.mxu1  ;;  %v1946_v34 = vld [vmem:[#allocation2 + $0x50] sm:$0xff]  ;;  %v1945_v0 = vld [vmem:[#allocation2 + $0x48] sm:$0xff]  ;;  %vm5687_vm2 = vmmov 0  }
 0x146   :  { %v1602_v42 = vadd.f32 %v1592_v33, %v1432_v56  ;;  %v1400_v16 = vsel %vm1397_vm14, %v1393_v57, %v1394_v3  ;;  %v1401_v28 = vsel %vm1397_vm14, %v1392_v51, %v1393_v57  ;;  %v1396_v5 = vrot.slane %v4965_v43, 3  ;;  %v2108_v56 = vld [vmem:[#allocation2 + $0x80] sm:$0xff]  ;;  %v2443_v57 = vld [vmem:[#allocation2 + $0x178] sm:$0xff] }
 0x147   :  { %v1618_v30 = vadd.f32 %v6466_v19, %v1601_v11  ;;  %v1433_v20 = vadd.f32 %v1401_v28, %v1262_v45  ;;  %v1434_v17 = vadd.f32 %v1400_v16, %v1263_v25  ;;  %v1378_v23 = vpop.f32.mrf.mxu1  ;;  %5000 = vmatmul.mubr.msk.f32.vlgmr.msra.gmra.mxu1 %vm1652_vm1, %v6510_v55  ;;  %5031 = vmatmul.mubr.msk.f32.vlgmr.msra.gmra.mxu0 %vm1652_vm1, %v6510_v55  ;;  %v2277_v11 = vld [vmem:[#allocation2 + $0x128] sm:$0xff]  ;;  %v2276_v43 = vld [vmem:[#allocation2 + $0x120] sm:$0xff]  ;;  %v2275_v16 = vld [vmem:[#allocation2 + $0x118] sm:$0xff] }
 0x148   :  { %v1619_v22 = vadd.f32 %v6466_v19, %v1602_v42  ;;  %v1407_v48 = vsel %vm1397_vm14, %v1396_v5, %v1387_v53  ;;  %v1395_v58 = vrot.slane %v1378_v23, 3  ;;  %5002 = vmatprep.mubr.msk.f32.mxu1 %vm1652_vm1, %v6512_v8  ;;  %5033 = vmatprep.mubr.msk.f32.mxu0 %vm1652_vm1, %v6512_v8  ;;  %v2441_v42 = vld [vmem:[#allocation2 + $0x168] sm:$0xff]  ;;  %v2440_v28 = vld [vmem:[#allocation2 + $0x160] sm:$0xff] }
 0x149   :  { %v6532_v45 = vmax.f32 %v1618_v30, 0.0  ;;  %v1603_v25 = vadd.f32 %v1571_v14, %v1433_v20  ;;  %v1604_v1 = vadd.f32 %v1570_v24, %v1434_v17  ;;  %v1427_v33 = vsel %vm1412_vm0, %v1407_v48, 0.0  ;;  %5046 = vmatpush3.msra.mxu1 %v6025_v35  ;;  %5077 = vmatpush3.msra.mxu0 %v6027_v36  ;;  %v1944_v24 = vld [vmem:[#allocation2 + $0x40] sm:$0xff]  ;;  %v2278_v14 = vld [vmem:[#allocation2 + $0x130] sm:$0xff]  ;;  %v2273_v17 = vld [vmem:[#allocation2 + $0x108] sm:$0xff] }
 0x14a   :  { %v6542_v53 = vmax.f32 %v1619_v22, 0.0  ;;  %v1398_v27 = vsel %vm1397_vm14, %v1395_v58, %v1396_v5  ;;  %v1399_v50 = vsel %vm1397_vm14, %v1394_v3, %v1395_v58  ;;  %5047 = vmatprep.subr.mxu1 %v1950_v29  ;;  %5078 = vmatprep.subr.mxu0 %v2114_v40  ;;  %v1437_v12 = vadd.f32 %v1427_v33, %v6483_v49  ;;  %v2279_v3 = vld [vmem:[#allocation2 + $0x138] sm:$0xff]  ;;  %v2274_v30 = vld [vmem:[#allocation2 + $0x110] sm:$0xff]  ;;  %v2437_v23 = vld [vmem:[#allocation2 + $0x148] sm:$0xff] }
 0x14b   :  { %v1620_v4 = vadd.f32 %v6466_v19, %v1603_v25  ;;  %v1621_v35 = vadd.f32 %v6466_v19, %v1604_v1  ;;  %v1435_v36 = vadd.f32 %v1399_v50, %v1264_v60  ;;  %v1436_v18 = vadd.f32 %v1398_v27, %v1265_v15  ;;  %5003 = vmatmul.mubr.msk.f32.gmra.mxu1 %vm1652_vm1, %v6532_v45  ;;  %v2111_v15 = vld [vmem:[#allocation2 + $0x98] sm:$0xff]  ;;  %v2438_v20 = vld [vmem:[#allocation2 + $0x150] sm:$0xff]  ;;  %v2605_v48 = vld [vmem:[#allocation2 + $0x1a8] sm:$0xff] }
 0x14c   :  { %5034 = vmatmul.mubr.msk.f32.gmra.mxu0 %vm1652_vm1, %v6532_v45  ;;  %5048 = vmatpush3.msra.mxu1 %v1950_v29  ;;  %v1607_v60 = vadd.f32 %v1597_v41, %v1437_v12  ;;  %v2439_v5 = vld [vmem:[#allocation2 + $0x158] sm:$0xff]  ;;  %v2272_v29 = vld [vmem:[#allocation2 + $0x100] sm:$0xff]  ;;  %v2602_v1 = vld [vmem:[#allocation2 + $0x190] sm:$0xff] }
 0x14d   :  { %v6561_v61 = vmax.f32 %v1620_v4, 0.0  ;;  %v6563_v51 = vmax.f32 %v1621_v35, 0.0  ;;  %v1605_v59 = vadd.f32 %v1569_v7, %v1435_v36  ;;  %v1606_v9 = vadd.f32 %v1568_v21, %v1436_v18  ;;  %5005 = vmatprep.mubr.msk.f32.mxu1 %vm1652_vm1, %v6542_v53  ;;  %5036 = vmatprep.mubr.msk.f32.mxu0 %vm1652_vm1, %v6542_v53  ;;  %v2607_v22 = vld [vmem:[#allocation2 + $0x1b8] sm:$0xff]  ;;  %v2604_v58 = vld [vmem:[#allocation2 + $0x1a0] sm:$0xff]  ;;  %v2601_v33 = vld [vmem:[#allocation2 + $0x188] sm:$0xff] }
 0x14e   :  { %5049 = vmatprep.subr.mxu1 %v1949_v47  ;;  %5079 = vmatpush3.msra.mxu0 %v2114_v40  ;;  %v1624_v39 = vadd.f32 %v6466_v19, %v1607_v60  ;;  %v2436_v40 = vld [vmem:[#allocation2 + $0x140] sm:$0xff]  ;;  %v2603_v25 = vld [vmem:[#allocation2 + $0x198] sm:$0xff]  ;;  %v3073_v27 = vld [vmem:[#allocation5 + $0x68] sm:$0xff] }
 0x14f   :  { %v1622_v31 = vadd.f32 %v6466_v19, %v1605_v59  ;;  %v1623_v49 = vadd.f32 %v6466_v19, %v1606_v9  ;;  %5050 = vmatpush3.msra.mxu1 %v1949_v47  ;;  %5080 = vmatprep.subr.mxu0 %v2113_v37  ;;  %v3090_v50 = vld [vmem:[#allocation5 + $0xe8] sm:$0xff]  ;;  %v3072_v4 = vld [vmem:[#allocation5 + $0x60] sm:$0xff]  ;;  %v3071_v36 = vld [vmem:[#allocation5 + $0x58] sm:$0xff] }
 0x150   :  { %5006 = vmatmul.mubr.msk.f32.gmra.mxu1 %vm1652_vm1, %v6561_v61  ;;  %5037 = vmatmul.mubr.msk.f32.gmra.mxu0 %vm1652_vm1, %v6561_v61  ;;  %v6594_v19 = vmax.f32 %v1624_v39, 0.0  ;;  %v3089_v35 = vld [vmem:[#allocation5 + $0xe0] sm:$0xff]  ;;  %v3088_v18 = vld [vmem:[#allocation5 + $0xd8] sm:$0xff]  ;;  %v3070_v47 = vld [vmem:[#allocation5 + $0x50] sm:$0xff] }
 0x151   :  { %v6577_v44 = vmax.f32 %v1622_v31, 0.0  ;;  %5051 = vmatprep.subr.mxu1 %v1948_v10  ;;  %5008 = vmatprep.mubr.msk.f32.mxu1 %vm1652_vm1, %v6563_v51  ;;  %v6583_v32 = vmax.f32 %v1623_v49, 0.0  ;;  %v3087_v21 = vld [vmem:[#allocation5 + $0xd0] sm:$0xff]  ;;  %v3069_v7 = vld [vmem:[#allocation5 + $0x48] sm:$0xff]  ;;  %v3084_v59 = vld [vmem:[#allocation5 + $0xb8] sm:$0xff] }
 0x152   :  { %5039 = vmatprep.mubr.msk.f32.mxu0 %vm1652_vm1, %v6563_v51  ;;  %5052 = vmatpush3.msra.mxu1 %v1948_v10  ;;  %v3086_v12 = vld [vmem:[#allocation5 + $0xc8] sm:$0xff]  ;;  %v3066_v9 = vld [vmem:[#allocation5 + $0x30] sm:$0xff]  ;;  %v3064_v41 = vld [vmem:[#allocation5 + $0x20] sm:$0xff] }
 0x153   :  { %5081 = vmatpush3.msra.mxu0 %v2113_v37  ;;  %5053 = vmatprep.subr.mxu1 %v1947_v52  ;;  %v3068_v37 = vld [vmem:[#allocation5 + $0x40] sm:$0xff]  ;;  %v3083_v10 = vld [vmem:[#allocation5 + $0xb0] sm:$0xff]  ;;  %v3065_v31 = vld [vmem:[#allocation5 + $0x28] sm:$0xff] }
 0x154   :  { %5082 = vmatprep.subr.mxu0 %v2112_v63  ;;  %5054 = vmatpush3.msra.mxu1 %v1947_v52  ;;  %v3082_v49 = vld [vmem:[#allocation5 + $0xa8] sm:$0xff]  ;;  %v3081_v52 = vld [vmem:[#allocation5 + $0xa0] sm:$0xff]  ;;  %v3063_v60 = vld [vmem:[#allocation5 + $0x18] sm:$0xff] }
 0x155   :  { %5083 = vmatpush3.msra.mxu0 %v2112_v63  ;;  %5009 = vmatmul.mubr.msk.f32.gmra.mxu1 %vm1652_vm1, %v6577_v44  ;;  %v3062_v63 = vld [vmem:[#allocation5 + $0x10] sm:$0xff]  ;;  %v3078_v39 = vld [vmem:[#allocation5 + $0x88] sm:$0xff] }
 0x156   :  { %5040 = vmatmul.mubr.msk.f32.gmra.mxu0 %vm1652_vm1, %v6577_v44  ;;  %5084 = vmatprep.subr.mxu0 %v2111_v15 }
 0x157   :  { %5011 = vmatprep.mubr.msk.f32.mxu1 %vm1652_vm1, %v6583_v32  ;;  %5042 = vmatprep.mubr.msk.f32.mxu0 %vm1652_vm1, %v6583_v32 }
 0x158   :  { %5055 = vmatprep.subr.mxu1 %v1946_v34  ;;  %5085 = vmatpush3.msra.mxu0 %v2111_v15  ;;  %v3061_v15 = vld [vmem:[#allocation5 + $0x8] sm:$0xff] }
 0x159   :  { %5056 = vmatpush3.msra.mxu1 %v1946_v34  ;;  %5086 = vmatprep.subr.mxu0 %v2110_v62  ;;  %v3060_v34 = vld [vmem:[#allocation5] sm:$0xff] }
 0x15a   :  { %5057 = vmatprep.subr.mxu1 %v1945_v0  ;;  %5087 = vmatpush3.msra.mxu0 %v2110_v62  ;;  %v3077_v62 = vld [vmem:[#allocation5 + $0x80] sm:$0xff] }
 0x15b   :  { %5012 = vmatmul.mubr.msk.f32.gmra.mxu1 %vm1652_vm1, %v6594_v19  ;;  %5043 = vmatmul.mubr.msk.f32.gmra.mxu0 %vm1652_vm1, %v6594_v19 }
 0x15c   :  { %5058 = vmatpush3.msra.mxu1 %v1945_v0  ;;  %5088 = vmatprep.subr.mxu0 %v2109_v13 }
 0x15d   :  { %5061 = vmatprep.mubr.msk.f32.mxu1 %vm1652_vm1, %v6485_v6  ;;  %5089 = vmatpush3.msra.mxu0 %v2109_v13 }
 0x15e   :  { %5092 = vmatprep.mubr.msk.f32.mxu0 %vm1652_vm1, %v6485_v6  ;;  %5059 = vmatprep.subr.mxu1 %v1944_v24 }
 0x15f   :  { %5090 = vmatprep.subr.mxu0 %v2108_v56  ;;  %5060 = vmatpush3.msra.mxu1 %v1944_v24 }
 0x160   :  { %5091 = vmatpush3.msra.mxu0 %v2108_v56  ;;  %5062 = vmatmul.mubr.msk.f32.vlgmr.msra.gmra.mxu1 %vm1652_vm1, %v6510_v55 }
 0x161   :  { %5093 = vmatmul.mubr.msk.f32.vlgmr.msra.gmra.mxu0 %vm1652_vm1, %v6510_v55  ;;  %5107 = vmatprep.subr.mxu1 %v2279_v3 }
 0x162   :  { %5064 = vmatprep.mubr.msk.f32.mxu1 %vm1652_vm1, %v6512_v8  ;;  %5095 = vmatprep.mubr.msk.f32.mxu0 %vm1652_vm1, %v6512_v8 }
 0x163   :  { %5108 = vmatpush3.msra.mxu1 %v2279_v3  ;;  %5138 = vmatprep.subr.mxu0 %v2443_v57 }
 0x164   :  { %5109 = vmatprep.subr.mxu1 %v2278_v14  ;;  %5065 = vmatmul.mubr.msk.f32.gmra.mxu1 %vm1652_vm1, %v6532_v45 }
 0x165   :  { %5096 = vmatmul.mubr.msk.f32.gmra.mxu0 %vm1652_vm1, %v6532_v45  ;;  %5110 = vmatpush3.msra.mxu1 %v2278_v14 }
 0x166   :  { %5067 = vmatprep.mubr.msk.f32.mxu1 %vm1652_vm1, %v6542_v53  ;;  %5098 = vmatprep.mubr.msk.f32.mxu0 %vm1652_vm1, %v6542_v53 }
 0x167   :  { %5111 = vmatprep.subr.mxu1 %v2277_v11  ;;  %5139 = vmatpush3.msra.mxu0 %v2443_v57 }
 0x168   :  { %5112 = vmatpush3.msra.mxu1 %v2277_v11  ;;  %5140 = vmatprep.subr.mxu0 %v2442_v2 }
 0x169   :  { %5141 = vmatpush3.msra.mxu0 %v2442_v2  ;;  %5068 = vmatmul.mubr.msk.f32.gmra.mxu1 %vm1652_vm1, %v6561_v61 }
 0x16a   :  { %5099 = vmatmul.mubr.msk.f32.gmra.mxu0 %vm1652_vm1, %v6561_v61  ;;  %5113 = vmatprep.subr.mxu1 %v2276_v43 }
 0x16b   :  { %5142 = vmatprep.subr.mxu0 %v2441_v42  ;;  %5070 = vmatprep.mubr.msk.f32.mxu1 %vm1652_vm1, %v6563_v51 }
 0x16c   :  { %5101 = vmatprep.mubr.msk.f32.mxu0 %vm1652_vm1, %v6563_v51  ;;  %5114 = vmatpush3.msra.mxu1 %v2276_v43 }
 0x16d   :  { %5143 = vmatpush3.msra.mxu0 %v2441_v42  ;;  %5115 = vmatprep.subr.mxu1 %v2275_v16 }
 0x16e   :  { %5144 = vmatprep.subr.mxu0 %v2440_v28  ;;  %5116 = vmatpush3.msra.mxu1 %v2275_v16 }
 0x16f   :  { %5145 = vmatpush3.msra.mxu0 %v2440_v28  ;;  %5071 = vmatmul.mubr.msk.f32.gmra.mxu1 %vm1652_vm1, %v6577_v44 }
 0x170   :  { %5102 = vmatmul.mubr.msk.f32.gmra.mxu0 %vm1652_vm1, %v6577_v44  ;;  %5146 = vmatprep.subr.mxu0 %v2439_v5 }
 0x171   :  { %5073 = vmatprep.mubr.msk.f32.mxu1 %vm1652_vm1, %v6583_v32  ;;  %5104 = vmatprep.mubr.msk.f32.mxu0 %vm1652_vm1, %v6583_v32 }
 0x172   :  { %5117 = vmatprep.subr.mxu1 %v2274_v30  ;;  %5147 = vmatpush3.msra.mxu0 %v2439_v5 }
 0x173   :  { %5118 = vmatpush3.msra.mxu1 %v2274_v30  ;;  %5148 = vmatprep.subr.mxu0 %v2438_v20 }
 0x174   :  { %5119 = vmatprep.subr.mxu1 %v2273_v17  ;;  %5149 = vmatpush3.msra.mxu0 %v2438_v20 }
 0x175   :  { %5074 = vmatmul.mubr.msk.f32.gmra.mxu1 %vm1652_vm1, %v6594_v19  ;;  %5105 = vmatmul.mubr.msk.f32.gmra.mxu0 %vm1652_vm1, %v6594_v19 }
 0x176   :  { %5120 = vmatpush3.msra.mxu1 %v2273_v17  ;;  %5150 = vmatprep.subr.mxu0 %v2437_v23 }
 0x177   :  { %5123 = vmatprep.mubr.msk.f32.mxu1 %vm1652_vm1, %v6485_v6  ;;  %5151 = vmatpush3.msra.mxu0 %v2437_v23 }
 0x178   :  { %5154 = vmatprep.mubr.msk.f32.mxu0 %vm1652_vm1, %v6485_v6  ;;  %5121 = vmatprep.subr.mxu1 %v2272_v29 }
 0x179   :  { %5152 = vmatprep.subr.mxu0 %v2436_v40  ;;  %5122 = vmatpush3.msra.mxu1 %v2272_v29 }
 0x17a   :  { %5153 = vmatpush3.msra.mxu0 %v2436_v40  ;;  %5124 = vmatmul.mubr.msk.f32.vlgmr.msra.gmra.mxu1 %vm1652_vm1, %v6510_v55 }
 0x17b   :  { %5155 = vmatmul.mubr.msk.f32.vlgmr.msra.gmra.mxu0 %vm1652_vm1, %v6510_v55  ;;  %5169 = vmatprep.subr.mxu1 %v2607_v22 }
 0x17c   :  { %5126 = vmatprep.mubr.msk.f32.mxu1 %vm1652_vm1, %v6512_v8  ;;  %5157 = vmatprep.mubr.msk.f32.mxu0 %vm1652_vm1, %v6512_v8 }
 0x17d   :  { %5170 = vmatpush3.msra.mxu1 %v2607_v22 }
 0x17e   :  { %5171 = vmatprep.subr.mxu1 %v2606_v26  ;;  %5127 = vmatmul.mubr.msk.f32.gmra.mxu1 %vm1652_vm1, %v6532_v45 }
 0x17f   :  { %5158 = vmatmul.mubr.msk.f32.gmra.mxu0 %vm1652_vm1, %v6532_v45  ;;  %5172 = vmatpush3.msra.mxu1 %v2606_v26 }
 0x180   :  { %5129 = vmatprep.mubr.msk.f32.mxu1 %vm1652_vm1, %v6542_v53  ;;  %5160 = vmatprep.mubr.msk.f32.mxu0 %vm1652_vm1, %v6542_v53 }
 0x181   :  { %5173 = vmatprep.subr.mxu1 %v2605_v48 }
 0x182   :  { %5174 = vmatpush3.msra.mxu1 %v2605_v48 }
 0x183   :  { %5130 = vmatmul.mubr.msk.f32.gmra.mxu1 %vm1652_vm1, %v6561_v61  ;;  %5161 = vmatmul.mubr.msk.f32.gmra.mxu0 %vm1652_vm1, %v6561_v61 }
 0x184   :  { %5175 = vmatprep.subr.mxu1 %v2604_v58  ;;  %5132 = vmatprep.mubr.msk.f32.mxu1 %vm1652_vm1, %v6563_v51 }
 0x185   :  { %5163 = vmatprep.mubr.msk.f32.mxu0 %vm1652_vm1, %v6563_v51  ;;  %5176 = vmatpush3.msra.mxu1 %v2604_v58 }
 0x186   :  { %5177 = vmatprep.subr.mxu1 %v2603_v25 }
 0x187   :  { %5178 = vmatpush3.msra.mxu1 %v2603_v25  ;;  %5164 = vmatmul.mubr.msk.f32.gmra.mxu0 %vm1652_vm1, %v6577_v44 }
 0x188   :  { %5133 = vmatmul.mubr.msk.f32.gmra.mxu1 %vm1652_vm1, %v6577_v44  ;;  %5166 = vmatprep.mubr.msk.f32.mxu0 %vm1652_vm1, %v6583_v32 }
 0x189   :  { %5135 = vmatprep.mubr.msk.f32.mxu1 %vm1652_vm1, %v6583_v32  ;;  %5179 = vmatprep.subr.mxu1 %v2602_v1 }
 0x18a   :  { %5180 = vmatpush3.msra.mxu1 %v2602_v1 }
 0x18b   :  { %5181 = vmatprep.subr.mxu1 %v2601_v33  ;;  %5167 = vmatmul.mubr.msk.f32.gmra.mxu0 %vm1652_vm1, %v6594_v19 }
 0x18c   :  { %5136 = vmatmul.mubr.msk.f32.gmra.mxu1 %vm1652_vm1, %v6594_v19 }
 0x18d   :  { %5182 = vmatpush3.msra.mxu1 %v2601_v33  ;;  %5185 = vmatprep.mubr.msk.f32.mxu1 %vm1652_vm1, %v6485_v6  ;;  %v5686_v6 = vmov 0.0  }
 0x18e   :  { %5183 = vmatprep.subr.mxu1 %v2600_v54  ;;  %5200 = vmatprep.subr.mxu0 %v5686_v6 }
 0x18f   :  { %5184 = vmatpush3.msra.mxu1 %v2600_v54  ;;  %5232 = vmatprep.mubr.msk.f32.mxu0 %vm5687_vm2, %v5686_v6 }
 0x190   :  { %5186 = vmatmul.mubr.msk.f32.vlgmr.msra.gmra.mxu1 %vm1652_vm1, %v6510_v55  ;;  %5235 = vmatprep.subr.mxu1 %v5686_v6  ;;  %v3075_v55 = vld [vmem:[#allocation5 + $0x78] sm:$0xff] }
 0x191   :  { %5188 = vmatprep.mubr.msk.f32.mxu1 %vm1652_vm1, %v6512_v8  ;;  %5236 = vmatpush3.msra.mxu1 %v3075_v55  ;;  %v3092_v8 = vld [vmem:[#allocation5 + $0xf8] sm:$0xff] }
 0x192   :  { %5237 = vmatprep.subr.mxu1 %v5686_v6  ;;  %5201 = vmatpush3.msra.mxu0 %v3092_v8 }
 0x193   :  { %5202 = vmatprep.subr.mxu0 %v5686_v6 }
 0x194   :  { %5189 = vmatmul.mubr.msk.f32.gmra.mxu1 %vm1652_vm1, %v6532_v45  ;;  %v3074_v45 = vld [vmem:[#allocation5 + $0x70] sm:$0xff] }
 0x195   :  { %5191 = vmatprep.mubr.msk.f32.mxu1 %vm1652_vm1, %v6542_v53  ;;  %5238 = vmatpush3.msra.mxu1 %v3074_v45  ;;  %v3091_v53 = vld [vmem:[#allocation5 + $0xf0] sm:$0xff] }
 0x196   :  { %5239 = vmatprep.subr.mxu1 %v5686_v6  ;;  %5203 = vmatpush3.msra.mxu0 %v3091_v53 }
 0x197   :  { %5240 = vmatpush3.msra.mxu1 %v3073_v27  ;;  %5204 = vmatprep.subr.mxu0 %v5686_v6 }
 0x198   :  { %5192 = vmatmul.mubr.msk.f32.gmra.mxu1 %vm1652_vm1, %v6561_v61  ;;  %5241 = vmatprep.subr.mxu1 %v5686_v6  ;;  %v3085_v61 = vld [vmem:[#allocation5 + $0xc0] sm:$0xff] }
 0x199   :  { %5194 = vmatprep.mubr.msk.f32.mxu1 %vm1652_vm1, %v6563_v51  ;;  %5205 = vmatpush3.msra.mxu0 %v3090_v50  ;;  %v3067_v51 = vld [vmem:[#allocation5 + $0x38] sm:$0xff] }
 0x19a   :  { %5242 = vmatpush3.msra.mxu1 %v3072_v4  ;;  %5206 = vmatprep.subr.mxu0 %v5686_v6 }
 0x19b   :  { %5243 = vmatprep.subr.mxu1 %v5686_v6  ;;  %5207 = vmatpush3.msra.mxu0 %v3089_v35 }
 0x19c   :  { %5195 = vmatmul.mubr.msk.f32.gmra.mxu1 %vm1652_vm1, %v6577_v44  ;;  %5208 = vmatprep.subr.mxu0 %v5686_v6  ;;  %v3080_v44 = vld [vmem:[#allocation5 + $0x98] sm:$0xff] }
 0x19d   :  { %5197 = vmatprep.mubr.msk.f32.mxu1 %vm1652_vm1, %v6583_v32  ;;  %5244 = vmatpush3.msra.mxu1 %v3071_v36  ;;  %v3079_v32 = vld [vmem:[#allocation5 + $0x90] sm:$0xff] }
 0x19e   :  { %5245 = vmatprep.subr.mxu1 %v5686_v6  ;;  %5209 = vmatpush3.msra.mxu0 %v3088_v18 }
 0x19f   :  { %5246 = vmatpush3.msra.mxu1 %v3070_v47  ;;  %5210 = vmatprep.subr.mxu0 %v5686_v6 }
 0x1a0   :  { %5198 = vmatmul.mubr.msk.f32.gmra.mxu1 %vm1652_vm1, %v6594_v19  ;;  %5247 = vmatprep.subr.mxu1 %v5686_v6 }
 0x1a1   :  { %5211 = vmatpush3.msra.mxu0 %v3087_v21  ;;  %5248 = vmatpush3.msra.mxu1 %v3069_v7 }
 0x1a2   :  { %5212 = vmatprep.subr.mxu0 %v5686_v6  ;;  %5249 = vmatprep.subr.mxu1 %v5686_v6 }
 0x1a3   :  { %5213 = vmatpush3.msra.mxu0 %v3086_v12  ;;  %5250 = vmatpush3.msra.mxu1 %v3068_v37 }
 0x1a4   :  { %5214 = vmatprep.subr.mxu0 %v5686_v6  ;;  %5251 = vmatprep.subr.mxu1 %v5686_v6 }
 0x1a5   :  { %5215 = vmatpush3.msra.mxu0 %v3085_v61  ;;  %5252 = vmatpush3.msra.mxu1 %v3067_v51 }
 0x1a6   :  { %5216 = vmatprep.subr.mxu0 %v5686_v6  ;;  %5253 = vmatprep.subr.mxu1 %v5686_v6 }
 0x1a7   :  { %5217 = vmatpush3.msra.mxu0 %v3084_v59  ;;  %5254 = vmatpush3.msra.mxu1 %v3066_v9 }
 0x1a8   :  { %5218 = vmatprep.subr.mxu0 %v5686_v6  ;;  %5255 = vmatprep.subr.mxu1 %v5686_v6 }
 0x1a9   :  { %5219 = vmatpush3.msra.mxu0 %v3083_v10  ;;  %5256 = vmatpush3.msra.mxu1 %v3065_v31 }
 0x1aa   :  { %5220 = vmatprep.subr.mxu0 %v5686_v6  ;;  %5257 = vmatprep.subr.mxu1 %v5686_v6 }
 0x1ab   :  { %5221 = vmatpush3.msra.mxu0 %v3082_v49  ;;  %5258 = vmatpush3.msra.mxu1 %v3064_v41 }
 0x1ac   :  { %5222 = vmatprep.subr.mxu0 %v5686_v6  ;;  %5259 = vmatprep.subr.mxu1 %v5686_v6 }
 0x1ad   :  { %5223 = vmatpush3.msra.mxu0 %v3081_v52  ;;  %5260 = vmatpush3.msra.mxu1 %v3063_v60 }
 0x1ae   :  { %5224 = vmatprep.subr.mxu0 %v5686_v6  ;;  %5261 = vmatprep.subr.mxu1 %v5686_v6 }
 0x1af   :  { %5225 = vmatpush3.msra.mxu0 %v3080_v44  ;;  %5262 = vmatpush3.msra.mxu1 %v3062_v63 }
 0x1b0   :  { %5226 = vmatprep.subr.mxu0 %v5686_v6  ;;  %5263 = vmatprep.subr.mxu1 %v5686_v6 }
 0x1b1   :  { %5227 = vmatpush3.msra.mxu0 %v3079_v32  ;;  %5264 = vmatpush3.msra.mxu1 %v3061_v15 }
 0x1b2   :  { %5228 = vmatprep.subr.mxu0 %v5686_v6  ;;  %5265 = vmatprep.subr.mxu1 %v5686_v6 }
 0x1b3   :  { %5229 = vmatpush3.msra.mxu0 %v3078_v39  ;;  %5266 = vmatpush3.msra.mxu1 %v3060_v34 }
 0x1b4   :  { %5230 = vmatprep.subr.mxu0 %v5686_v6  ;;  %5267 = vmatprep.mubr.msk.f32.mxu1 %vm5687_vm2, %v5686_v6 }
 0x1b5   :  { %5305 = vmatprep.subr.mxu1 %v5686_v6  ;;  %5231 = vmatpush3.msra.mxu0 %v3077_v62 }
 0x1b6   :  { %5270 = vmatprep.subr.mxu0 %v5686_v6 }
 0x207   :  { %v5001_v0 = vpop.f32.mrf.mxu1  ;;  %v5032_v19 = vpop.f32.mrf.mxu0 }
 0x208   :  { %v1799_v56 = vrot.slane %v5001_v0, 5 }
 0x209   :  { %v6738_v13 = vpop.f32.mrf.mxu1  ;;  %v6740_v24 = vpop.f32.mrf.mxu0 }
 0x20a   :  { %v1798_v3 = vrot.slane %v6738_v13, 5 }
 0x20b   :  { %v5004_v57 = vpop.f32.mrf.mxu1 }
 0x20c   :  { %v1816_v14 = vsel %vm537_vm3, %v1798_v3, %v1799_v56  ;;  %v5035_v11 = vpop.f32.mrf.mxu0  ;;  %v1801_v42 = vrot.slane %v5004_v57, 5 }
 0x20d   :  { %v1900_v2 = vadd.f32 %v5032_v19, %v1816_v14  ;;  %v1759_v43 = vpop.f32.mrf.mxu1 }
 0x20e   :  { %v1800_v16 = vrot.slane %v1759_v43, 5  ;;  %v1904_v28 = vpop.f32.mrf.mxu0 }
 0x210   :  { %v1814_v5 = vsel %vm537_vm3, %v1800_v16, %v1801_v42  ;;  %v1815_v30 = vsel %vm537_vm3, %v1799_v56, %v1800_v16  ;;  %v6751_v20 = vpop.f32.mrf.mxu1  ;;  %v6753_v17 = vpop.f32.mrf.mxu0 }
 0x211   :  { %v1910_v23 = vadd.f32 %v5035_v11, %v1814_v5  ;;  %v1905_v29 = vadd.f32 %v1904_v28, %v1815_v30  ;;  %v1803_v54 = vrot.slane %v6751_v20, 5 }
 0x212   :  { %v6755_v40 = vpop.f32.mrf.mxu1  ;;  %v1914_v22 = vpop.f32.mrf.mxu0 }
 0x213   :  { %v1802_v26 = vrot.slane %v6755_v40, 5 }
 0x215   :  { %v1813_v48 = vsel %vm537_vm3, %v1801_v42, %v1802_v26  ;;  %v5010_v58 = vpop.f32.mrf.mxu1 }
 0x216   :  { %v1915_v25 = vadd.f32 %v1914_v22, %v1813_v48  ;;  %v5041_v1 = vpop.f32.mrf.mxu0  ;;  %v1805_v55 = vrot.slane %v5010_v58, 5 }
 0x217   :  { %v1779_v33 = vpop.f32.mrf.mxu1 }
 0x218   :  { %v1804_v8 = vrot.slane %v1779_v33, 5  ;;  %v1924_v45 = vpop.f32.mrf.mxu0 }
 0x21a   :  { %v1810_v53 = vsel %vm537_vm3, %v1804_v8, %v1805_v55  ;;  %v1811_v27 = vsel %vm537_vm3, %v1803_v54, %v1804_v8 }
 0x21b   :  { %v1930_v50 = vadd.f32 %v5041_v1, %v1810_v53  ;;  %v6769_v4 = vadd.f32 %v1924_v45, %v1811_v27  ;;  %v6771_v35 = vpop.f32.mrf.mxu1  ;;  %v5044_v36 = vpop.f32.mrf.mxu0 }
 0x21c   :  { %v1807_v21 = vrot.slane %v6771_v35, 5 }
 0x21d   :  { %v1789_v18 = vpop.f32.mrf.mxu1  ;;  %v1934_v47 = vpop.f32.mrf.mxu0 }
 0x21e   :  { %v1806_v7 = vrot.slane %v1789_v18, 5 }
 0x220   :  { %v1808_v12 = vsel %vm537_vm3, %v1806_v7, %v1807_v21  ;;  %v1809_v37 = vsel %vm537_vm3, %v1805_v55, %v1806_v7  ;;  %v5063_v61 = vpop.f32.mrf.mxu1 }
 0x221   :  { %v1940_v51 = vadd.f32 %v5044_v36, %v1808_v12  ;;  %v1935_v59 = vadd.f32 %v1934_v47, %v1809_v37  ;;  %v6780_v9 = vpop.f32.mrf.mxu0  ;;  %v2068_v31 = vrot.slane %v5063_v61, 6 }
 0x222   :  { %v6782_v10 = vpop.f32.mrf.mxu1  ;;  %v2232_v19 = vrot.slane %v6780_v9, 7 }
 0x223   :  { %v2067_v49 = vrot.slane %v6782_v10, 6  ;;  %v6785_v41 = vpop.f32.mrf.mxu0 }
 0x224   :  { %v5066_v52 = vpop.f32.mrf.mxu1 }
 0x225   :  { %v2085_v60 = vsel %vm708_vm7, %v2067_v49, %v2068_v31  ;;  %v5097_v44 = vpop.f32.mrf.mxu0  ;;  %v2070_v15 = vrot.slane %v5066_v52, 6 }
 0x226   :  { %v6791_v63 = vadd.f32 %v2085_v60, %v1900_v2  ;;  %v2028_v32 = vpop.f32.mrf.mxu1  ;;  %v2234_v62 = vrot.slane %v5097_v44, 7 }
 0x227   :  { %v2069_v39 = vrot.slane %v2028_v32, 6  ;;  %v2192_v34 = vpop.f32.mrf.mxu0 }
 0x228   :  { %v2233_v0 = vrot.slane %v2192_v34, 7 }
 0x229   :  { %v2083_v56 = vsel %vm708_vm7, %v2069_v39, %v2070_v15  ;;  %v2084_v57 = vsel %vm708_vm7, %v2068_v31, %v2069_v39  ;;  %v6798_v14 = vpop.f32.mrf.mxu1 }
 0x22a   :  { %v2099_v11 = vadd.f32 %v2084_v57, %v1905_v29  ;;  %v2100_v43 = vadd.f32 %v2083_v56, %v1910_v23  ;;  %v2247_v2 = vsel %vm879_vm6, %v2233_v0, %v2234_v62  ;;  %v6802_v42 = vpop.f32.mrf.mxu0  ;;  %v2248_v16 = vsel %vm879_vm6, %v2232_v19, %v2233_v0 }
 0x22b   :  { %v2038_v28 = vpop.f32.mrf.mxu1 }
 0x22c   :  { %v6808_v5 = vadd.f32 %v2248_v16, %v2099_v11  ;;  %v6810_v30 = vadd.f32 %v2247_v2, %v2100_v43  ;;  %v2071_v22 = vrot.slane %v2038_v28, 6  ;;  %v6812_v48 = vpop.f32.mrf.mxu0  ;;  %v1812_v16 = vsel %vm537_vm3, %v1802_v26, %v1803_v54 }
 0x22d   :  { %v2235_v23 = vrot.slane %v6812_v48, 7  ;;  %v1823_v40 = vsel %vm548_vm5, %v1812_v16, 0.0  ;;  %v2072_v26 = vrot.slane %v6798_v14, 6 }
 0x22e   :  { %v2082_v29 = vsel %vm708_vm7, %v2070_v15, %v2071_v22 }
 0x22f   :  { %v2101_v58 = vadd.f32 %v2082_v29, %v1915_v25  ;;  %v2246_v1 = vsel %vm879_vm6, %v2234_v62, %v2235_v23  ;;  %v5072_v33 = vpop.f32.mrf.mxu1 }
 0x230   :  { %v5103_v55 = vpop.f32.mrf.mxu0  ;;  %v2074_v53 = vrot.slane %v5072_v33, 6  ;;  %v2081_v33 = vsel %vm708_vm7, %v2071_v22, %v2072_v26 }
 0x231   :  { %v6821_v8 = vadd.f32 %v2246_v1, %v2101_v58  ;;  %v6823_v45 = vpop.f32.mrf.mxu1  ;;  %v2238_v47 = vrot.slane %v5103_v55, 7  ;;  %v1920_v55 = vadd.f32 %v6753_v17, %v1823_v40  ;;  %v2236_v17 = vrot.slane %v6802_v42, 7 }
 0x232   :  { %v2073_v27 = vrot.slane %v6823_v45, 6  ;;  %v6826_v36 = vpop.f32.mrf.mxu0 }
 0x233   :  { %v2237_v18 = vrot.slane %v6826_v36, 7  ;;  %v2245_v42 = vsel %vm879_vm6, %v2235_v23, %v2236_v17 }
 0x234   :  { %v2079_v25 = vsel %vm708_vm7, %v2073_v27, %v2074_v53 }
 0x235   :  { %v2104_v7 = vadd.f32 %v2079_v25, %v1930_v50  ;;  %v5075_v12 = vpop.f32.mrf.mxu1  ;;  %v5106_v37 = vpop.f32.mrf.mxu0  ;;  %v2243_v61 = vsel %vm879_vm6, %v2237_v18, %v2238_v47 }
 0x236   :  { %v2076_v44 = vrot.slane %v5075_v12, 6  ;;  %v2240_v32 = vrot.slane %v5106_v37, 7  ;;  %v2092_v37 = vsel %vm719_vm9, %v2081_v33, 0.0 }
 0x237   :  { %v6837_v31 = vadd.f32 %v2243_v61, %v2104_v7  ;;  %v2058_v52 = vpop.f32.mrf.mxu1  ;;  %v2222_v60 = vpop.f32.mrf.mxu0  ;;  %v2231_v7 = vrot.slane %v6785_v41, 7 }
 0x238   :  { %v2075_v15 = vrot.slane %v2058_v52, 6  ;;  %v2239_v39 = vrot.slane %v2222_v60, 7  ;;  %v2086_v13 = vsel %vm708_vm7, %v2076_v44, %v2067_v49 }
 0x239   :  { %v2087_v22 = vsel %vm719_vm9, %v2086_v13, 0.0 }
 0x23a   :  { %v2077_v34 = vsel %vm708_vm7, %v2075_v15, %v2076_v44  ;;  %v2078_v50 = vsel %vm708_vm7, %v2074_v53, %v2075_v15  ;;  %v2241_v62 = vsel %vm879_vm6, %v2239_v39, %v2240_v32  ;;  %v6845_v0 = vpop.f32.mrf.mxu1  ;;  %v2242_v11 = vsel %vm879_vm6, %v2238_v47, %v2239_v39 }
 0x23b   :  { %v2105_v56 = vadd.f32 %v2078_v50, %v1935_v59  ;;  %v2106_v57 = vadd.f32 %v2077_v34, %v1940_v51  ;;  %v6849_v43 = vpop.f32.mrf.mxu0  ;;  %v1817_v51 = vsel %vm537_vm3, %v1807_v21, %v1798_v3  ;;  %v2080_v39 = vsel %vm708_vm7, %v2072_v26, %v2073_v27 }
 0x23c   :  { %v6851_v2 = vpop.f32.mrf.mxu1  ;;  %v1818_v1 = vsel %vm548_vm5, %v1817_v51, 0.0  ;;  %v2250_v50 = vsel %vm879_vm6, %v2240_v32, %v2231_v7  ;;  %v2249_v32 = vsel %vm879_vm6, %v2231_v7, %v2232_v19  ;;  %v2103_v40 = vadd.f32 %v2080_v39, %v6769_v4 }
 0x23d   :  { %v6859_v28 = vadd.f32 %v2242_v11, %v2105_v56  ;;  %v6861_v29 = vadd.f32 %v2241_v62, %v2106_v57  ;;  %v6863_v59 = vpop.f32.mrf.mxu0  ;;  %v1895_v25 = vadd.f32 %v6740_v24, %v1818_v1  ;;  %v2395_v57 = vrot.slane %v6851_v2, 1 }
 0x23e   :  { %v5128_v58 = vpop.f32.mrf.mxu1  ;;  %v2251_v19 = vsel %vm890_vm8, %v2250_v50, 0.0  ;;  %v2396_v2 = vrot.slane %v6845_v0, 1  ;;  %v2559_v33 = vrot.slane %v6863_v59, 2  ;;  %v2560_v59 = vrot.slane %v6849_v43, 2 }
 0x23f   :  { %v5159_v20 = vpop.f32.mrf.mxu0  ;;  %v2398_v35 = vrot.slane %v5128_v58, 1  ;;  %v2097_v34 = vadd.f32 %v2087_v22, %v1895_v25  ;;  %v2102_v58 = vadd.f32 %v2092_v37, %v1920_v55  ;;  %v2262_v25 = vadd.f32 %v2249_v32, %v6791_v63 }
 0x240   :  { %v6874_v54 = vpop.f32.mrf.mxu1  ;;  %v2562_v53 = vrot.slane %v5159_v20, 2  ;;  %v2256_v20 = vsel %vm890_vm8, %v2245_v42, 0.0  ;;  %v2413_v0 = vsel %vm1050_vm11, %v2395_v57, %v2396_v2  ;;  %vm3103_vm3 = vcmask 1041409  }
 0x241   :  { %v2397_v3 = vrot.slane %v6874_v54, 1  ;;  %v6883_v21 = vpop.f32.mrf.mxu0  ;;  %v2266_v7 = vadd.f32 %v2256_v20, %v2102_v58 }
 0x242   :  { %v2561_v14 = vrot.slane %v6883_v21, 2 }
 0x243   :  { %v2411_v10 = vsel %vm1050_vm11, %v2397_v3, %v2398_v35  ;;  %v6893_v47 = vpop.f32.mrf.mxu1  ;;  %v6895_v49 = vpop.f32.mrf.mxu0  ;;  %v2412_v63 = vsel %vm1050_vm11, %v2396_v2, %v2397_v3 }
 0x244   :  { %v2427_v12 = vadd.f32 %v2411_v10, %v6808_v5  ;;  %v2575_v61 = vsel %vm1226_vm10, %v2561_v14, %v2562_v53  ;;  %v2400_v52 = vrot.slane %v6893_v47, 1  ;;  %v2564_v44 = vrot.slane %v6895_v49, 2 }
 0x245   :  { %v2366_v24 = vpop.f32.mrf.mxu1  ;;  %v2530_v60 = vpop.f32.mrf.mxu0  ;;  %v2426_v32 = vadd.f32 %v2412_v63, %v2262_v25 }
 0x246   :  { %v6910_v41 = vadd.f32 %v2575_v61, %v2427_v12  ;;  %v2399_v15 = vrot.slane %v2366_v24, 1  ;;  %v2563_v5 = vrot.slane %v2530_v60, 2  ;;  %v2577_v24 = vsel %vm1226_vm10, %v2559_v33, %v2560_v59 }
 0x247   :  { %v6923_v62 = vpop.f32.mrf.mxu0 }
 0x248   :  { %v2409_v56 = vsel %vm1050_vm11, %v2399_v15, %v2400_v52  ;;  %v2410_v48 = vsel %vm1050_vm11, %v2398_v35, %v2399_v15  ;;  %v2573_v23 = vsel %vm1226_vm10, %v2563_v5, %v2564_v44  ;;  %v2574_v45 = vsel %vm1226_vm10, %v2562_v53, %v2563_v5  ;;  %v5134_v27 = vpop.f32.mrf.mxu1 }
 0x249   :  { %v2419_v11 = vsel %vm1070_vm13, %v2409_v56, 0.0  ;;  %v2428_v16 = vadd.f32 %v2410_v48, %v6810_v30  ;;  %v6943_v51 = vpop.f32.mrf.mxu0  ;;  %v2583_v1 = vsel %vm1241_vm12, %v2573_v23, 0.0  ;;  %v2261_v35 = vadd.f32 %v2251_v19, %v2097_v34 }
 0x24a   :  { %v2429_v9 = vadd.f32 %v2419_v11, %v6821_v8  ;;  %v2376_v26 = vpop.f32.mrf.mxu1  ;;  %v2244_v8 = vsel %vm879_vm6, %v2236_v17, %v2237_v18  ;;  %v2402_v37 = vrot.slane %v5134_v27, 1 }
 0x24b   :  { %v6954_v30 = vadd.f32 %v2574_v45, %v2428_v16  ;;  %v5168_v13 = vpop.f32.mrf.mxu0  ;;  %v2401_v10 = vrot.slane %v2376_v26, 1  ;;  %v2267_v22 = vadd.f32 %v2244_v8, %v2103_v40  ;;  %v2425_v17 = vadd.f32 %v2413_v0, %v2261_v35 }
 0x24c   :  { %v6957_v55 = vadd.f32 %v2583_v1, %v2429_v9  ;;  %v5137_v4 = vpop.f32.mrf.mxu1  ;;  %v2568_v53 = vrot.slane %v5168_v13, 2  ;;  %v7009_v9 = vsub.s32 0, %v6031_v38  ;;  %v2576_v26 = vsel %vm1226_vm10, %v2560_v59, %v2561_v14 }
 0x24d   :  { %v2404_v47 = vrot.slane %v5137_v4, 1  ;;  %v2408_v15 = vsel %vm1050_vm11, %v2400_v52, %v2401_v10  ;;  %v2407_v54 = vsel %vm1050_vm11, %v2401_v10, %v2402_v37  ;;  %v2550_v56 = vpop.f32.mrf.mxu0  ;;  %v2589_v27 = vadd.f32 %v2577_v24, %v2425_v17 }
 0x24e   :  { %v2386_v12 = vpop.f32.mrf.mxu1  ;;  %v2578_v36 = vsel %vm1226_vm10, %v2568_v53, %v2559_v33  ;;  %v2431_v16 = vadd.f32 %v2407_v54, %v2267_v22  ;;  %v2567_v58 = vrot.slane %v2550_v56, 2  ;;  %v2590_v13 = vadd.f32 %v2576_v26, %v2426_v32 }
 0x24f   :  { %v2414_v61 = vsel %vm1050_vm11, %v2404_v47, %v2395_v57  ;;  %v2403_v18 = vrot.slane %v2386_v12, 1  ;;  %v2588_v3 = vsel %vm1241_vm12, %v2578_v36, 0.0  ;;  %v2430_v57 = vadd.f32 %v2408_v15, %v2266_v7 }
 0x250   :  { %v2424_v43 = vsel %vm1070_vm13, %v2414_v61, 0.0  ;;  %v5187_v60 = vpop.f32.mrf.mxu1  ;;  %v2569_v21 = vsel %vm1226_vm10, %v2567_v58, %v2568_v53 }
 0x251   :  { %v2434_v5 = vadd.f32 %v2424_v43, %v6861_v29  ;;  %v2405_v42 = vsel %vm1050_vm11, %v2403_v18, %v2404_v47  ;;  %v2406_v39 = vsel %vm1050_vm11, %v2402_v37, %v2403_v18  ;;  %v2565_v29 = vrot.slane %v6943_v51, 2 }
 0x252   :  { %v2432_v34 = vadd.f32 %v2406_v39, %v6837_v31  ;;  %v2433_v50 = vadd.f32 %v2405_v42, %v6859_v28  ;;  %v6992_v52 = vpop.f32.mrf.mxu1  ;;  %v2724_v23 = vrot.slane %v5187_v60, 3  ;;  %v7005_v28 = vld [vmem:[%s7354_s4] ss:$0 sm:$0xff]  ;;  %v2566_v51 = vrot.slane %v6923_v62, 2 }
 0x253   :  { %v6995_v48 = vadd.f32 %v2588_v3, %v2434_v5  ;;  %v2723_v45 = vrot.slane %v6992_v52, 3  ;;  %v2572_v19 = vsel %vm1226_vm10, %v2564_v44, %v2565_v29 }
 0x254   :  { %v5190_v11 = vpop.f32.mrf.mxu1  ;;  %v2571_v62 = vsel %vm1226_vm10, %v2565_v29, %v2566_v51  ;;  %v2594_v35 = vadd.f32 %v2572_v19, %v2430_v57  ;;  %v2570_v44 = vsel %vm1226_vm10, %v2566_v51, %v2567_v58  ;;  %v2597_v22 = vadd.f32 %v2569_v21, %v2433_v50 }
 0x255   :  { %v2741_v31 = vsel %vm1397_vm14, %v2723_v45, %v2724_v23  ;;  %v2726_v2 = vrot.slane %v5190_v11, 3  ;;  %v2595_v8 = vadd.f32 %v2571_v62, %v2431_v16  ;;  %v2596_v7 = vadd.f32 %v2570_v44, %v2432_v34 }
 0x256   :  { %v2753_v20 = vadd.f32 %v2741_v31, %v2589_v27  ;;  %v2684_v40 = vpop.f32.mrf.mxu1 }
 0x257   :  { %v2725_v1 = vrot.slane %v2684_v40, 3 }
 0x258   :  { %v2770_v33 = vadd.f32 %v7005_v28, %v2753_v20  ;;  %v5193_v4 = vpop.f32.mrf.mxu1 }
 0x259   :  { %v2739_v14 = vsel %vm1397_vm14, %v2725_v1, %v2726_v2  ;;  %v2740_v49 = vsel %vm1397_vm14, %v2724_v23, %v2725_v1  ;;  %v2728_v59 = vrot.slane %v5193_v4, 3 }
 0x25a   :  { %v2780_v0 = vmax.f32 %v2770_v33, 0.0  ;;  %v2754_v10 = vadd.f32 %v2740_v49, %v2590_v13  ;;  %v2755_v47 = vadd.f32 %v2739_v14, %v6910_v41  ;;  %v2694_v25 = vpop.f32.mrf.mxu1 }
 0x25b   :  { %v2727_v12 = vrot.slane %v2694_v25, 3 }
 0x25c   :  { %v2800_v37 = vcombine.high %v2780_v0, %v2780_v0  ;;  %v2771_v53 = vadd.f32 %v7005_v28, %v2754_v10  ;;  %v2772_v61 = vadd.f32 %v7005_v28, %v2755_v47  ;;  %v5196_v36 = vpop.f32.mrf.mxu1  ;;  %v4356_v18 = vrot.slane %v2780_v0, 9 }
 0x25d   :  { %v2737_v17 = vsel %vm1397_vm14, %v2727_v12, %v2728_v59  ;;  %v2738_v24 = vsel %vm1397_vm14, %v2726_v2, %v2727_v12  ;;  %v2730_v63 = vrot.slane %v5196_v36, 3  ;;  %v4376_v41 = vrot.slane %v2780_v0, 10 }
 0x25e   :  { %v7037_v43 = vmax.f32 %v2771_v53, 0.0  ;;  %v7039_v60 = vmax.f32 %v2772_v61, 0.0  ;;  %v2747_v15 = vsel %vm1412_vm0, %v2737_v17, 0.0  ;;  %v2756_v5 = vadd.f32 %v2738_v24, %v6954_v30  ;;  %v2704_v42 = vpop.f32.mrf.mxu1 }
 0x25f   :  { %v2757_v39 = vadd.f32 %v2747_v15, %v6957_v55  ;;  %v2729_v54 = vrot.slane %v2704_v42, 3  ;;  %v2880_v3 = vmax.f32 %v2780_v0, %v4356_v18  ;;  %v4396_v34 = vrot.slane %v2780_v0, 11 }
 0x260   :  { %v2773_v50 = vadd.f32 %v7005_v28, %v2756_v5  ;;  %v5199_v56 = vpop.f32.mrf.mxu1  ;;  %v4357_v29 = vrot.slane %v2800_v37, 9  ;;  %v4377_v23 = vrot.slane %v2800_v37, 10  ;;  %v4397_v27 = vrot.slane %v2800_v37, 11 }
 0x261   :  { %v2774_v32 = vadd.f32 %v7005_v28, %v2757_v39  ;;  %v2735_v57 = vsel %vm1397_vm14, %v2729_v54, %v2730_v63  ;;  %v2736_v30 = vsel %vm1397_vm14, %v2728_v59, %v2729_v54  ;;  %v2732_v11 = vrot.slane %v5199_v56, 3 }
 0x262   :  { %v7051_v16 = vmax.f32 %v2773_v50, 0.0  ;;  %v2758_v55 = vadd.f32 %v2736_v30, %v2594_v35  ;;  %v2759_v58 = vadd.f32 %v2735_v57, %v2595_v8  ;;  %v2714_v31 = vpop.f32.mrf.mxu1  ;;  %v2960_v51 = vmax.f32 %v2880_v3, %v4376_v41 }
 0x263   :  { %v7053_v20 = vmax.f32 %v2774_v32, 0.0  ;;  %v2742_v40 = vsel %vm1397_vm14, %v2732_v11, %v2723_v45  ;;  %v2731_v26 = vrot.slane %v2714_v31, 3  ;;  %v2881_v19 = vmax.f32 %v2800_v37, %v4357_v29 }
 0x264   :  { %v2775_v2 = vadd.f32 %v7005_v28, %v2758_v55  ;;  %v2776_v1 = vadd.f32 %v7005_v28, %v2759_v58  ;;  %v2752_v13 = vsel %vm1412_vm0, %v2742_v40, 0.0  ;;  %v3040_v62 = vmax.f32 %v2960_v51, %v4396_v34  ;;  %v3374_v58 = vld [vmem:[#allocation5 + $0x1f8] sm:$0xff] }
 0x265   :  { %v2762_v35 = vadd.f32 %v2752_v13, %v6995_v48  ;;  %v2733_v33 = vsel %vm1397_vm14, %v2731_v26, %v2732_v11  ;;  %v2734_v52 = vsel %vm1397_vm14, %v2730_v63, %v2731_v26  ;;  %v2961_v4 = vmax.f32 %v2881_v19, %v4377_v23 }
 0x266   :  { %v2785_v45 = vmax.f32 %v2775_v2, 0.0  ;;  %v7068_v8 = vmax.f32 %v2776_v1, 0.0  ;;  %v2760_v21 = vadd.f32 %v2734_v52, %v2596_v7  ;;  %v2761_v14 = vadd.f32 %v2733_v33, %v2597_v22 }
 0x267   :  { %v2779_v49 = vadd.f32 %v7005_v28, %v2762_v35  ;;  %v3181_v46 = vrot.slane %v3040_v62, %v7009_v9  ;;  %v3041_v44 = vmax.f32 %v2961_v4, %v4397_v27  ;;  %v2801_v48 = vcombine.high %v7037_v43, %v7037_v43  ;;  %v3274_v62 = vld [vmem:[#allocation5 + $0x178] sm:$0xff]  ;;  %v3373_v35 = vld [vmem:[#allocation5 + $0x1f0] sm:$0xff] }
 0x268   :  { %v2805_v0 = vcombine.high %v2785_v45, %v2785_v45  ;;  %v2777_v10 = vadd.f32 %v7005_v28, %v2760_v21  ;;  %v2778_v38 = vadd.f32 %v7005_v28, %v2761_v14  ;;  %v4366_v47 = vrot.slane %v2785_v45, 9 }
 0x269   :  { %v7076_v25 = vmax.f32 %v2779_v49, 0.0  ;;  %v4386_v59 = vrot.slane %v2785_v45, 10  ;;  %v4406_v7 = vrot.slane %v2785_v45, 11  ;;  %v3098_v22 = vrot.slane %v3041_v44, %v7009_v9  ;;  %v3273_v49 = vld [vmem:[#allocation5 + $0x170] sm:$0xff] }
 0x26a   :  { %v7079_v12 = vmax.f32 %v2777_v10, 0.0  ;;  %v7081_v37 = vmax.f32 %v2778_v38, 0.0  ;;  %v2890_v53 = vmax.f32 %v2785_v45, %v4366_v47  ;;  %v4367_v61 = vrot.slane %v2805_v0, 9 }
 0x26b   :  { %v4387_v36 = vrot.slane %v2805_v0, 10  ;;  %v4407_v18 = vrot.slane %v2805_v0, 11  ;;  %v2806_v17 = vcombine.high %v7068_v8, %v7068_v8  ;;  %v4359_v24 = vrot.slane %v2801_v48, 9 }
 0x26c   :  { %v2970_v28 = vmax.f32 %v2890_v53, %v4386_v59  ;;  %v2891_v63 = vmax.f32 %v2805_v0, %v4367_v61  ;;  %v4379_v41 = vrot.slane %v2801_v48, 10  ;;  %v4399_v15 = vrot.slane %v2801_v48, 11  ;;  %v3371_v53 = vld [vmem:[#allocation5 + $0x1e0] sm:$0xff] }
 0x26d   :  { %v4369_v5 = vrot.slane %v2806_v17, 9  ;;  %v2883_v42 = vmax.f32 %v2801_v48, %v4359_v24  ;;  %v4389_v39 = vrot.slane %v2806_v17, 10  ;;  %v4409_v54 = vrot.slane %v2806_v17, 11 }
 0x26e   :  { %v3050_v3 = vmax.f32 %v2970_v28, %v4406_v7  ;;  %v2971_v34 = vmax.f32 %v2891_v63, %v4387_v36  ;;  %v4358_v50 = vrot.slane %v7037_v43, 9  ;;  %v4368_v56 = vrot.slane %v7068_v8, 9 }
 0x26f   :  { %v2893_v29 = vmax.f32 %v2806_v17, %v4369_v5  ;;  %v2963_v23 = vmax.f32 %v2883_v42, %v4379_v41  ;;  %v4378_v27 = vrot.slane %v7037_v43, 10  ;;  %v4388_v32 = vrot.slane %v7068_v8, 10  ;;  %v3370_v5 = vld [vmem:[#allocation5 + $0x1d8] sm:$0xff] }
 0x270   :  { %v3185_v57 = vrot.slane %v3050_v3, %v7009_v9  ;;  %v3051_v30 = vmax.f32 %v2971_v34, %v4407_v18  ;;  %v2882_v11 = vmax.f32 %v7037_v43, %v4358_v50  ;;  %v2892_v55 = vmax.f32 %v7068_v8, %v4368_v56 }
 0x271   :  { %v2973_v31 = vmax.f32 %v2893_v29, %v4389_v39  ;;  %v3043_v51 = vmax.f32 %v2963_v23, %v4399_v15  ;;  %v4398_v40 = vrot.slane %v7037_v43, 11  ;;  %v4408_v26 = vrot.slane %v7068_v8, 11  ;;  %v3271_v15 = vld [vmem:[#allocation5 + $0x160] sm:$0xff]  ;;  %v3270_v23 = vld [vmem:[#allocation5 + $0x158] sm:$0xff] }
 0x272   :  { %v3186_v19 = vsel %vm3103_vm3, %v3185_v57, %v3181_v46  ;;  %v3102_v2 = vrot.slane %v3051_v30, %v7009_v9  ;;  %v2962_v1 = vmax.f32 %v2882_v11, %v4378_v27  ;;  %v2972_v13 = vmax.f32 %v2892_v55, %v4388_v32  ;;  %v3372_v46 = vld [vmem:[#allocation5 + $0x1e8] sm:$0xff]  ;;  %v3369_v27 = vld [vmem:[#allocation5 + $0x1d0] sm:$0xff] }
 0x273   :  { %5268 = vmatmul.mubr.f32.vlgmr.msra.gmra.mxu1 %v3186_v19  ;;  %v3053_v33 = vmax.f32 %v2973_v31, %v4409_v54  ;;  %v3380_v52 = vrot.slane %v3043_v51, %v7009_v9  ;;  %v2802_v4 = vcombine.high %v7039_v60, %v7039_v60  ;;  %v2807_v43 = vcombine.high %v7079_v12, %v7079_v12  ;;  %v3269_v31 = vld [vmem:[#allocation5 + $0x150] sm:$0xff]  ;;  %v3368_v51 = vld [vmem:[#allocation5 + $0x1c8] sm:$0xff] }
 0x274   :  { %5306 = vmatpush3.msra.mxu1 %v3374_v58  ;;  %v3104_v45 = vsel %vm3103_vm3, %v3102_v2, %v3098_v22  ;;  %5337 = vmatprep.mubr.msk.f32.mxu1 %vm5687_vm2, %v5686_v6  ;;  %v3042_v8 = vmax.f32 %v2962_v1, %v4398_v40  ;;  %v3052_v21 = vmax.f32 %v2972_v13, %v4408_v26  ;;  %v4360_v14 = vrot.slane %v7039_v60, 9  ;;  %v3272_v22 = vld [vmem:[#allocation5 + $0x168] sm:$0xff] }
 0x275   :  { %5307 = vmatprep.subr.mxu1 %v5686_v6  ;;  %5233 = vmatmul.mubr.f32.vlgmr.msra.gmra.mxu0 %v3104_v45  ;;  %v3384_v44 = vrot.slane %v3053_v33, %v7009_v9  ;;  %v4361_v48 = vrot.slane %v2802_v4, 9  ;;  %v4371_v0 = vrot.slane %v2807_v43, 9  ;;  %v4381_v10 = vrot.slane %v2802_v4, 10  ;;  %v3268_v33 = vld [vmem:[#allocation5 + $0x148] sm:$0xff] }
 0x276   :  { %5271 = vmatpush3.msra.mxu0 %v3274_v62  ;;  %5308 = vmatpush3.msra.mxu1 %v3373_v35  ;;  %v3280_v38 = vrot.slane %v3042_v8, %v7009_v9  ;;  %v3284_v47 = vrot.slane %v3052_v21, %v7009_v9  ;;  %v4391_v59 = vrot.slane %v2807_v43, 10  ;;  %v4401_v7 = vrot.slane %v2802_v4, 11 }
 0x277   :  { %5272 = vmatprep.subr.mxu0 %v5686_v6  ;;  %5309 = vmatprep.subr.mxu1 %v5686_v6  ;;  %v7112_v61 = vsel %vm3103_vm3, %v3384_v44, %v3380_v52  ;;  %v2885_v36 = vmax.f32 %v2802_v4, %v4361_v48  ;;  %v2895_v18 = vmax.f32 %v2807_v43, %v4371_v0  ;;  %v4411_v17 = vrot.slane %v2807_v43, 11  ;;  %v3367_v52 = vld [vmem:[#allocation5 + $0x1c0] sm:$0xff]  ;;  %v3366_v48 = vld [vmem:[#allocation5 + $0x1b8] sm:$0xff] }
 0x278   :  { %5273 = vmatpush3.msra.mxu0 %v3273_v49  ;;  %5310 = vmatpush3.msra.mxu1 %v3372_v46  ;;  %v7115_v24 = vsel %vm3103_vm3, %v3284_v47, %v3280_v38  ;;  %v4370_v28 = vrot.slane %v7079_v12, 9  ;;  %v2884_v63 = vmax.f32 %v7039_v60, %v4360_v14  ;;  %v4380_v41 = vrot.slane %v7039_v60, 10  ;;  %v3267_v44 = vld [vmem:[#allocation5 + $0x140] sm:$0xff] }
 0x279   :  { %5274 = vmatprep.subr.mxu0 %v5686_v6  ;;  %5311 = vmatprep.subr.mxu1 %v5686_v6  ;;  %v2965_v42 = vmax.f32 %v2885_v36, %v4381_v10  ;;  %v2975_v39 = vmax.f32 %v2895_v18, %v4391_v59  ;;  %v4390_v54 = vrot.slane %v7079_v12, 10  ;;  %v4400_v3 = vrot.slane %v7039_v60, 11  ;;  %v3266_v36 = vld [vmem:[#allocation5 + $0x138] sm:$0xff]  ;;  %v3365_v18 = vld [vmem:[#allocation5 + $0x1b0] sm:$0xff] }
 0x27a   :  { %5275 = vmatpush3.msra.mxu0 %v3272_v22  ;;  %5312 = vmatpush3.msra.mxu1 %v3371_v53  ;;  %v2894_v34 = vmax.f32 %v7079_v12, %v4370_v28  ;;  %v2964_v50 = vmax.f32 %v2884_v63, %v4380_v41  ;;  %v4410_v56 = vrot.slane %v7079_v12, 11  ;;  %v2803_v29 = vcombine.high %v7051_v16, %v7051_v16 }
 0x27b   :  { %5276 = vmatprep.subr.mxu0 %v5686_v6  ;;  %5313 = vmatprep.subr.mxu1 %v5686_v6  ;;  %v3045_v32 = vmax.f32 %v2965_v42, %v4401_v7  ;;  %v3055_v57 = vmax.f32 %v2975_v39, %v4411_v17  ;;  %v2808_v60 = vcombine.high %v7081_v37, %v7081_v37  ;;  %v4362_v30 = vrot.slane %v7051_v16, 9  ;;  %v3265_v42 = vld [vmem:[#allocation5 + $0x130] sm:$0xff]  ;;  %v3364_v39 = vld [vmem:[#allocation5 + $0x1a8] sm:$0xff] }
 0x27c   :  { %5277 = vmatpush3.msra.mxu0 %v3271_v15  ;;  %5314 = vmatpush3.msra.mxu1 %v3370_v5  ;;  %v2974_v11 = vmax.f32 %v2894_v34, %v4390_v54  ;;  %v3044_v12 = vmax.f32 %v2964_v50, %v4400_v3  ;;  %v4363_v55 = vrot.slane %v2803_v29, 9  ;;  %v4383_v58 = vrot.slane %v2803_v29, 10 }
 0x27d   :  { %5278 = vmatprep.subr.mxu0 %v5686_v6  ;;  %5315 = vmatprep.subr.mxu1 %v5686_v6  ;;  %v3580_v40 = vrot.slane %v3045_v32, %v7009_v9  ;;  %v3584_v26 = vrot.slane %v3055_v57, %v7009_v9  ;;  %v4373_v19 = vrot.slane %v2808_v60, 9  ;;  %v4393_v2 = vrot.slane %v2808_v60, 10 }
 0x27e   :  { %5279 = vmatpush3.msra.mxu0 %v3270_v23  ;;  %5316 = vmatpush3.msra.mxu1 %v3369_v27  ;;  %v3054_v1 = vmax.f32 %v2974_v11, %v4410_v56  ;;  %v3480_v13 = vrot.slane %v3044_v12, %v7009_v9  ;;  %v2887_v62 = vmax.f32 %v2803_v29, %v4363_v55  ;;  %v4403_v35 = vrot.slane %v2803_v29, 11  ;;  %v3264_v23 = vld [vmem:[#allocation5 + $0x128] sm:$0xff]  ;;  %v3363_v27 = vld [vmem:[#allocation5 + $0x1a0] sm:$0xff] }
 0x27f   :  { %5280 = vmatprep.subr.mxu0 %v5686_v6  ;;  %5317 = vmatprep.subr.mxu1 %v5686_v6  ;;  %v7141_v4 = vsel %vm3103_vm3, %v3584_v26, %v3580_v40  ;;  %v2897_v43 = vmax.f32 %v2808_v60, %v4373_v19  ;;  %v4413_v45 = vrot.slane %v2808_v60, 11  ;;  %v4372_v8 = vrot.slane %v7081_v37, 9 }
 0x280   :  { %5281 = vmatpush3.msra.mxu0 %v3269_v31  ;;  %5318 = vmatpush3.msra.mxu1 %v3368_v51  ;;  %v3484_v21 = vrot.slane %v3054_v1, %v7009_v9  ;;  %v2967_v14 = vmax.f32 %v2887_v62, %v4383_v58  ;;  %v2886_v49 = vmax.f32 %v7051_v16, %v4362_v30  ;;  %v4382_v46 = vrot.slane %v7051_v16, 10  ;;  %v3263_v31 = vld [vmem:[#allocation5 + $0x120] sm:$0xff]  ;;  %v3362_v51 = vld [vmem:[#allocation5 + $0x198] sm:$0xff] }
 0x281   :  { %5282 = vmatprep.subr.mxu0 %v5686_v6  ;;  %5319 = vmatprep.subr.mxu1 %v5686_v6  ;;  %v2977_v0 = vmax.f32 %v2897_v43, %v4393_v2  ;;  %v2896_v10 = vmax.f32 %v7081_v37, %v4372_v8  ;;  %v4392_v38 = vrot.slane %v7081_v37, 10  ;;  %v4402_v47 = vrot.slane %v7051_v16, 11 }
 0x282   :  { %5283 = vmatpush3.msra.mxu0 %v3268_v33  ;;  %5320 = vmatpush3.msra.mxu1 %v3367_v52  ;;  %v7153_v59 = vsel %vm3103_vm3, %v3484_v21, %v3480_v13  ;;  %v3047_v7 = vmax.f32 %v2967_v14, %v4403_v35  ;;  %v2966_v22 = vmax.f32 %v2886_v49, %v4382_v46  ;;  %v4412_v53 = vrot.slane %v7081_v37, 11  ;;  %v3262_v33 = vld [vmem:[#allocation5 + $0x118] sm:$0xff]  ;;  %v3361_v52 = vld [vmem:[#allocation5 + $0x190] sm:$0xff] }
 0x283   :  { %5284 = vmatprep.subr.mxu0 %v5686_v6  ;;  %5321 = vmatprep.subr.mxu1 %v5686_v6  ;;  %v3057_v17 = vmax.f32 %v2977_v0, %v4413_v45  ;;  %v2976_v28 = vmax.f32 %v2896_v10, %v4392_v38  ;;  %v2804_v16 = vcombine.high %v7053_v20, %v7053_v20  ;;  %v4364_v63 = vrot.slane %v7053_v20, 9  ;;  %v3261_v49 = vld [vmem:[#allocation5 + $0x110] sm:$0xff]  ;;  %v3359_v10 = vld [vmem:[#allocation5 + $0x180] sm:$0xff] }
 0x284   :  { %5285 = vmatpush3.msra.mxu0 %v3267_v44  ;;  %5322 = vmatpush3.msra.mxu1 %v3366_v48  ;;  %v3780_v41 = vrot.slane %v3047_v7, %v7009_v9  ;;  %v3046_v15 = vmax.f32 %v2966_v22, %v4402_v47  ;;  %v2809_v37 = vcombine.high %v7076_v25, %v7076_v25  ;;  %v4374_v5 = vrot.slane %v7076_v25, 9  ;;  %v3259_v7 = vld [vmem:[#allocation5 + $0x100] sm:$0xff] }
 0x285   :  { %5286 = vmatprep.subr.mxu0 %v5686_v6  ;;  %5323 = vmatprep.subr.mxu1 %v5686_v6  ;;  %v3784_v54 = vrot.slane %v3057_v17, %v7009_v9  ;;  %v3056_v3 = vmax.f32 %v2976_v28, %v4412_v53  ;;  %v4365_v34 = vrot.slane %v2804_v16, 9  ;;  %v4385_v29 = vrot.slane %v2804_v16, 10  ;;  %v3574_v53 = vld [vmem:[#allocation5 + $0x2f8] sm:$0xff]  ;;  %v3572_v17 = vld [vmem:[#allocation5 + $0x2e8] sm:$0xff]  ;;  %v3571_v28 = vld [vmem:[#allocation5 + $0x2e0] sm:$0xff] }
 0x286   :  { %5287 = vmatpush3.msra.mxu0 %v3266_v36  ;;  %5324 = vmatpush3.msra.mxu1 %v3365_v18  ;;  %v3680_v50 = vrot.slane %v3046_v15, %v7009_v9  ;;  %v4375_v56 = vrot.slane %v2809_v37, 9  ;;  %v4395_v30 = vrot.slane %v2809_v37, 10  ;;  %v2888_v12 = vmax.f32 %v7053_v20, %v4364_v63  ;;  %v3573_v36 = vld [vmem:[#allocation5 + $0x2f0] sm:$0xff]  ;;  %v3470_v63 = vld [vmem:[#allocation5 + $0x258] sm:$0xff] }
 0x287   :  { %5288 = vmatprep.subr.mxu0 %v5686_v6  ;;  %5325 = vmatprep.subr.mxu1 %v5686_v6  ;;  %v7172_v32 = vsel %vm3103_vm3, %v3784_v54, %v3780_v41  ;;  %v3684_v57 = vrot.slane %v3056_v3, %v7009_v9  ;;  %v2889_v60 = vmax.f32 %v2804_v16, %v4365_v34  ;;  %v4384_v58 = vrot.slane %v7053_v20, 10  ;;  %v3473_v18 = vld [vmem:[#allocation5 + $0x270] sm:$0xff]  ;;  %v3566_v54 = vld [vmem:[#allocation5 + $0x2b8] sm:$0xff] }
 0x288   :  { %5289 = vmatpush3.msra.mxu0 %v3265_v42  ;;  %5326 = vmatpush3.msra.mxu1 %v3364_v39  ;;  %v2899_v11 = vmax.f32 %v2809_v37, %v4375_v56  ;;  %v2898_v55 = vmax.f32 %v7076_v25, %v4374_v5  ;;  %v4405_v19 = vrot.slane %v2804_v16, 11  ;;  %v4394_v2 = vrot.slane %v7076_v25, 10  ;;  %v3471_v16 = vld [vmem:[#allocation5 + $0x260] sm:$0xff]  ;;  %v3569_v41 = vld [vmem:[#allocation5 + $0x2d0] sm:$0xff]  ;;  %v3468_v5 = vld [vmem:[#allocation5 + $0x248] sm:$0xff] }
 0x289   :  { %5290 = vmatprep.subr.mxu0 %v5686_v6  ;;  %5327 = vmatprep.subr.mxu1 %v5686_v6  ;;  %v7181_v40 = vsel %vm3103_vm3, %v3684_v57, %v3680_v50  ;;  %v2969_v26 = vmax.f32 %v2889_v60, %v4385_v29  ;;  %v4415_v13 = vrot.slane %v2809_v37, 11  ;;  %v2968_v62 = vmax.f32 %v2888_v12, %v4384_v58  ;;  %v3469_v15 = vld [vmem:[#allocation5 + $0x250] sm:$0xff]  ;;  %v3568_v37 = vld [vmem:[#allocation5 + $0x2c8] sm:$0xff]  ;;  %v3567_v42 = vld [vmem:[#allocation5 + $0x2c0] sm:$0xff] }
 0x28a   :  { %5291 = vmatpush3.msra.mxu0 %v3264_v23  ;;  %5328 = vmatpush3.msra.mxu1 %v3363_v27  ;;  %v2979_v1 = vmax.f32 %v2899_v11, %v4395_v30  ;;  %v4404_v35 = vrot.slane %v7053_v20, 11  ;;  %v2978_v45 = vmax.f32 %v2898_v55, %v4394_v2  ;;  %v4414_v8 = vrot.slane %v7076_v25, 11  ;;  %v3360_v20 = vld [vmem:[#allocation5 + $0x188] sm:$0xff]  ;;  %v3467_v39 = vld [vmem:[#allocation5 + $0x240] sm:$0xff]  ;;  %v3466_v3 = vld [vmem:[#allocation5 + $0x238] sm:$0xff] }
 0x28b   :  { %5292 = vmatprep.subr.mxu0 %v5686_v6  ;;  %5329 = vmatprep.subr.mxu1 %v5686_v6  ;;  %v3049_v43 = vmax.f32 %v2969_v26, %v4405_v19  ;;  %v3260_v25 = vld [vmem:[#allocation5 + $0x108] sm:$0xff]  ;;  %v3565_v34 = vld [vmem:[#allocation5 + $0x2b0] sm:$0xff]  ;;  %v3563_v23 = vld [vmem:[#allocation5 + $0x2a0] sm:$0xff] }
 0x28c   :  { %5293 = vmatpush3.msra.mxu0 %v3263_v31  ;;  %5330 = vmatpush3.msra.mxu1 %v3362_v51  ;;  %v3059_v21 = vmax.f32 %v2979_v1, %v4415_v13  ;;  %v3048_v14 = vmax.f32 %v2968_v62, %v4404_v35  ;;  %v3058_v44 = vmax.f32 %v2978_v45, %v4414_v8  ;;  %v3465_v50 = vld [vmem:[#allocation5 + $0x230] sm:$0xff]  ;;  %v3564_v56 = vld [vmem:[#allocation5 + $0x2a8] sm:$0xff]  ;;  %v3463_v27 = vld [vmem:[#allocation5 + $0x220] sm:$0xff] }
 0x28d   :  { %5294 = vmatprep.subr.mxu0 %v5686_v6  ;;  %5331 = vmatprep.subr.mxu1 %v5686_v6  ;;  %v3980_v46 = vrot.slane %v3049_v43, %v7009_v9  ;;  %v3464_v29 = vld [vmem:[#allocation5 + $0x228] sm:$0xff]  ;;  %v3562_v57 = vld [vmem:[#allocation5 + $0x298] sm:$0xff]  ;;  %v3561_v30 = vld [vmem:[#allocation5 + $0x290] sm:$0xff] }
 0x28e   :  { %5295 = vmatpush3.msra.mxu0 %v3262_v33  ;;  %5332 = vmatpush3.msra.mxu1 %v3361_v52  ;;  %v3984_v48 = vrot.slane %v3059_v21, %v7009_v9  ;;  %v3880_v0 = vrot.slane %v3048_v14, %v7009_v9  ;;  %v3884_v38 = vrot.slane %v3058_v44, %v7009_v9  ;;  %v3474_v9 = vld [vmem:[#allocation5 + $0x278] sm:$0xff]  ;;  %v3461_v11 = vld [vmem:[#allocation5 + $0x210] sm:$0xff]  ;;  %v3560_v12 = vld [vmem:[#allocation5 + $0x288] sm:$0xff] }
 0x28f   :  { %5296 = vmatprep.subr.mxu0 %v5686_v6  ;;  %5333 = vmatprep.subr.mxu1 %v5686_v6  ;;  %v3462_v60 = vld [vmem:[#allocation5 + $0x218] sm:$0xff]  ;;  %v3460_v55 = vld [vmem:[#allocation5 + $0x208] sm:$0xff]  ;;  %v3559_v58 = vld [vmem:[#allocation5 + $0x280] sm:$0xff] }
 0x290   :  { %5297 = vmatpush3.msra.mxu0 %v3261_v49  ;;  %5334 = vmatpush3.msra.mxu1 %v3360_v20  ;;  %v7197_v47 = vsel %vm3103_vm3, %v3984_v48, %v3980_v46  ;;  %v7202_v22 = vsel %vm3103_vm3, %v3884_v38, %v3880_v0  ;;  %v3459_v31 = vld [vmem:[#allocation5 + $0x200] sm:$0xff]  ;;  %v3774_v51 = vld [vmem:[#allocation5 + $0x3f8] sm:$0xff]  ;;  %v3773_v19 = vld [vmem:[#allocation5 + $0x3f0] sm:$0xff] }
 0x291   :  { %5298 = vmatprep.subr.mxu0 %v5686_v6  ;;  %5335 = vmatprep.subr.mxu1 %v5686_v6  ;;  %v3674_v26 = vld [vmem:[#allocation5 + $0x378] sm:$0xff]  ;;  %v3673_v2 = vld [vmem:[#allocation5 + $0x370] sm:$0xff]  ;;  %v3772_v1 = vld [vmem:[#allocation5 + $0x3e8] sm:$0xff] }
 0x292   :  { %5299 = vmatpush3.msra.mxu0 %v3260_v25  ;;  %5336 = vmatpush3.msra.mxu1 %v3359_v10  ;;  %v3771_v13 = vld [vmem:[#allocation5 + $0x3e0] sm:$0xff]  ;;  %v3670_v35 = vld [vmem:[#allocation5 + $0x358] sm:$0xff]  ;;  %v3769_v33 = vld [vmem:[#allocation5 + $0x3d0] sm:$0xff] }
 0x293   :  { %5300 = vmatprep.subr.mxu0 %v5686_v6  ;;  %5338 = vmatmul.mubr.f32.vlgmr.msra.gmra.mxu1 %v7112_v61  ;;  %v3472_v61 = vld [vmem:[#allocation5 + $0x268] sm:$0xff]  ;;  %v3671_v62 = vld [vmem:[#allocation5 + $0x360] sm:$0xff]  ;;  %v3669_v52 = vld [vmem:[#allocation5 + $0x350] sm:$0xff] }
 0x294   :  { %5375 = vmatprep.subr.mxu1 %v5686_v6  ;;  %5301 = vmatpush3.msra.mxu0 %v3259_v7  ;;  %v3768_v43 = vld [vmem:[#allocation5 + $0x3c8] sm:$0xff]  ;;  %v3767_v8 = vld [vmem:[#allocation5 + $0x3c0] sm:$0xff]  ;;  %v3766_v14 = vld [vmem:[#allocation5 + $0x3b8] sm:$0xff] }
 0x295   :  { %5302 = vmatprep.mubr.msk.f32.mxu0 %vm5687_vm2, %v5686_v6  ;;  %5376 = vmatpush3.msra.mxu1 %v3574_v53  ;;  %v3668_v45 = vld [vmem:[#allocation5 + $0x348] sm:$0xff]  ;;  %v3667_v21 = vld [vmem:[#allocation5 + $0x340] sm:$0xff]  ;;  %v3666_v49 = vld [vmem:[#allocation5 + $0x338] sm:$0xff] }
 0x296   :  { %5303 = vmatmul.mubr.f32.vlgmr.msra.gmra.mxu0 %v7115_v24  ;;  %5340 = vmatprep.subr.mxu0 %v5686_v6  ;;  %v3570_v24 = vld [vmem:[#allocation5 + $0x2d8] sm:$0xff]  ;;  %v3765_v20 = vld [vmem:[#allocation5 + $0x3b0] sm:$0xff]  ;;  %v3764_v44 = vld [vmem:[#allocation5 + $0x3a8] sm:$0xff] }
 0x297   :  { %5377 = vmatprep.subr.mxu1 %v5686_v6  ;;  %5341 = vmatpush3.msra.mxu0 %v3474_v9  ;;  %v3665_v46 = vld [vmem:[#allocation5 + $0x330] sm:$0xff]  ;;  %v3664_v48 = vld [vmem:[#allocation5 + $0x328] sm:$0xff]  ;;  %v3763_v0 = vld [vmem:[#allocation5 + $0x3a0] sm:$0xff] }
 0x298   :  { %5378 = vmatpush3.msra.mxu1 %v3573_v36  ;;  %5342 = vmatprep.subr.mxu0 %v5686_v6  ;;  %v3663_v25 = vld [vmem:[#allocation5 + $0x320] sm:$0xff]  ;;  %v3762_v10 = vld [vmem:[#allocation5 + $0x398] sm:$0xff]  ;;  %v3761_v7 = vld [vmem:[#allocation5 + $0x390] sm:$0xff] }
 0x299   :  { %5379 = vmatprep.subr.mxu1 %v5686_v6  ;;  %5343 = vmatpush3.msra.mxu0 %v3473_v18  ;;  %v3662_v38 = vld [vmem:[#allocation5 + $0x318] sm:$0xff]  ;;  %v3661_v53 = vld [vmem:[#allocation5 + $0x310] sm:$0xff]  ;;  %v3760_v9 = vld [vmem:[#allocation5 + $0x388] sm:$0xff] }
 0x29a   :  { %5380 = vmatpush3.msra.mxu1 %v3572_v17  ;;  %5344 = vmatprep.subr.mxu0 %v5686_v6  ;;  %v3660_v36 = vld [vmem:[#allocation5 + $0x308] sm:$0xff]  ;;  %v3759_v18 = vld [vmem:[#allocation5 + $0x380] sm:$0xff] }
 0x29b   :  { %5381 = vmatprep.subr.mxu1 %v5686_v6  ;;  %5345 = vmatpush3.msra.mxu0 %v3472_v61  ;;  %v3659_v17 = vld [vmem:[#allocation5 + $0x300] sm:$0xff]  ;;  %v3974_v61 = vld [vmem:[#allocation5 + $0x4f8] sm:$0xff] }
 0x29c   :  { %5382 = vmatpush3.msra.mxu1 %v3571_v28  ;;  %5346 = vmatprep.subr.mxu0 %v5686_v6  ;;  %v3874_v28 = vld [vmem:[#allocation5 + $0x478] sm:$0xff] }
 0x29d   :  { %5383 = vmatprep.subr.mxu1 %v5686_v6  ;;  %5347 = vmatpush3.msra.mxu0 %v3471_v16  ;;  %v3973_v16 = vld [vmem:[#allocation5 + $0x4f0] sm:$0xff] }
 0x29e   :  { %5384 = vmatpush3.msra.mxu1 %v3570_v24  ;;  %5348 = vmatprep.subr.mxu0 %v5686_v6  ;;  %v3873_v24 = vld [vmem:[#allocation5 + $0x470] sm:$0xff] }
 0x29f   :  { %5385 = vmatprep.subr.mxu1 %v5686_v6  ;;  %5349 = vmatpush3.msra.mxu0 %v3470_v63  ;;  %v3972_v63 = vld [vmem:[#allocation5 + $0x4e8] sm:$0xff] }
 0x2a0   :  { %5386 = vmatpush3.msra.mxu1 %v3569_v41  ;;  %5350 = vmatprep.subr.mxu0 %v5686_v6  ;;  %v3971_v41 = vld [vmem:[#allocation5 + $0x4e0] sm:$0xff] }
 0x2a1   :  { %5387 = vmatprep.subr.mxu1 %v5686_v6  ;;  %5351 = vmatpush3.msra.mxu0 %v3469_v15  ;;  %v3871_v15 = vld [vmem:[#allocation5 + $0x460] sm:$0xff] }
 0x2a2   :  { %5388 = vmatpush3.msra.mxu1 %v3568_v37  ;;  %5352 = vmatprep.subr.mxu0 %v5686_v6  ;;  %v3870_v37 = vld [vmem:[#allocation5 + $0x458] sm:$0xff] }
 0x2a3   :  { %5389 = vmatprep.subr.mxu1 %v5686_v6  ;;  %5353 = vmatpush3.msra.mxu0 %v3468_v5  ;;  %v3969_v5 = vld [vmem:[#allocation5 + $0x4d0] sm:$0xff] }
 0x2a4   :  { %5390 = vmatpush3.msra.mxu1 %v3567_v42  ;;  %5354 = vmatprep.subr.mxu0 %v5686_v6  ;;  %v3869_v42 = vld [vmem:[#allocation5 + $0x450] sm:$0xff] }
 0x2a5   :  { %5391 = vmatprep.subr.mxu1 %v5686_v6  ;;  %5355 = vmatpush3.msra.mxu0 %v3467_v39  ;;  %v3968_v39 = vld [vmem:[#allocation5 + $0x4c8] sm:$0xff] }
 0x2a6   :  { %5392 = vmatpush3.msra.mxu1 %v3566_v54  ;;  %5356 = vmatprep.subr.mxu0 %v5686_v6  ;;  %v3868_v54 = vld [vmem:[#allocation5 + $0x448] sm:$0xff] }
 0x2a7   :  { %5393 = vmatprep.subr.mxu1 %v5686_v6  ;;  %5357 = vmatpush3.msra.mxu0 %v3466_v3  ;;  %v3967_v3 = vld [vmem:[#allocation5 + $0x4c0] sm:$0xff] }
 0x2a8   :  { %5394 = vmatpush3.msra.mxu1 %v3565_v34  ;;  %5358 = vmatprep.subr.mxu0 %v5686_v6  ;;  %v3867_v34 = vld [vmem:[#allocation5 + $0x440] sm:$0xff] }
 0x2a9   :  { %5395 = vmatprep.subr.mxu1 %v5686_v6  ;;  %5359 = vmatpush3.msra.mxu0 %v3465_v50  ;;  %v3966_v50 = vld [vmem:[#allocation5 + $0x4b8] sm:$0xff] }
 0x2aa   :  { %5396 = vmatpush3.msra.mxu1 %v3564_v56  ;;  %5360 = vmatprep.subr.mxu0 %v5686_v6  ;;  %v3866_v56 = vld [vmem:[#allocation5 + $0x438] sm:$0xff] }
 0x2ab   :  { %5397 = vmatprep.subr.mxu1 %v5686_v6  ;;  %5361 = vmatpush3.msra.mxu0 %v3464_v29  ;;  %v3965_v29 = vld [vmem:[#allocation5 + $0x4b0] sm:$0xff] }
 0x2ac   :  { %5398 = vmatpush3.msra.mxu1 %v3563_v23  ;;  %5362 = vmatprep.subr.mxu0 %v5686_v6  ;;  %v3865_v23 = vld [vmem:[#allocation5 + $0x430] sm:$0xff] }
 0x2ad   :  { %5399 = vmatprep.subr.mxu1 %v5686_v6  ;;  %5363 = vmatpush3.msra.mxu0 %v3463_v27  ;;  %v3964_v27 = vld [vmem:[#allocation5 + $0x4a8] sm:$0xff] }
 0x2ae   :  { %5400 = vmatpush3.msra.mxu1 %v3562_v57  ;;  %5364 = vmatprep.subr.mxu0 %v5686_v6  ;;  %v3864_v57 = vld [vmem:[#allocation5 + $0x428] sm:$0xff] }
 0x2af   :  { %5401 = vmatprep.subr.mxu1 %v5686_v6  ;;  %5365 = vmatpush3.msra.mxu0 %v3462_v60  ;;  %v3963_v60 = vld [vmem:[#allocation5 + $0x4a0] sm:$0xff] }
 0x2b0   :  { %5402 = vmatpush3.msra.mxu1 %v3561_v30  ;;  %5366 = vmatprep.subr.mxu0 %v5686_v6  ;;  %v3863_v30 = vld [vmem:[#allocation5 + $0x420] sm:$0xff] }
 0x2b1   :  { %5403 = vmatprep.subr.mxu1 %v5686_v6  ;;  %5367 = vmatpush3.msra.mxu0 %v3461_v11  ;;  %v3962_v11 = vld [vmem:[#allocation5 + $0x498] sm:$0xff] }
 0x2b2   :  { %5404 = vmatpush3.msra.mxu1 %v3560_v12  ;;  %5368 = vmatprep.subr.mxu0 %v5686_v6  ;;  %v3862_v12 = vld [vmem:[#allocation5 + $0x418] sm:$0xff] }
 0x2b3   :  { %5405 = vmatprep.subr.mxu1 %v5686_v6  ;;  %5369 = vmatpush3.msra.mxu0 %v3460_v55  ;;  %v3961_v55 = vld [vmem:[#allocation5 + $0x490] sm:$0xff] }
 0x2b4   :  { %5406 = vmatpush3.msra.mxu1 %v3559_v58  ;;  %5407 = vmatprep.mubr.msk.f32.mxu1 %vm5687_vm2, %v5686_v6  ;;  %v3861_v58 = vld [vmem:[#allocation5 + $0x410] sm:$0xff] }
 0x2b5   :  { %5370 = vmatprep.subr.mxu0 %v5686_v6  ;;  %5408 = vmatmul.mubr.f32.vlgmr.msra.gmra.mxu1 %v7141_v4  ;;  %v3672_v4 = vld [vmem:[#allocation5 + $0x368] sm:$0xff] }
 0x2b6   :  { %5445 = vmatprep.subr.mxu1 %v5686_v6  ;;  %5371 = vmatpush3.msra.mxu0 %v3459_v31  ;;  %v3960_v31 = vld [vmem:[#allocation5 + $0x488] sm:$0xff] }
 0x2b7   :  { %5372 = vmatprep.mubr.msk.f32.mxu0 %vm5687_vm2, %v5686_v6  ;;  %5446 = vmatpush3.msra.mxu1 %v3774_v51  ;;  %v3860_v51 = vld [vmem:[#allocation5 + $0x408] sm:$0xff] }
 0x2b8   :  { %5373 = vmatmul.mubr.f32.vlgmr.msra.gmra.mxu0 %v7153_v59  ;;  %5410 = vmatprep.subr.mxu0 %v5686_v6  ;;  %v3770_v59 = vld [vmem:[#allocation5 + $0x3d8] sm:$0xff] }
 0x2b9   :  { %5447 = vmatprep.subr.mxu1 %v5686_v6  ;;  %5411 = vmatpush3.msra.mxu0 %v3674_v26  ;;  %v3959_v26 = vld [vmem:[#allocation5 + $0x480] sm:$0xff] }
 0x2ba   :  { %5448 = vmatpush3.msra.mxu1 %v3773_v19  ;;  %5412 = vmatprep.subr.mxu0 %v5686_v6  ;;  %v3859_v19 = vld [vmem:[#allocation5 + $0x400] sm:$0xff] }
 0x2bb   :  { %5449 = vmatprep.subr.mxu1 %v5686_v6  ;;  %5413 = vmatpush3.msra.mxu0 %v3673_v2  ;;  %v4082_v2 = vld [vmem:[#allocation7 + $0x78] sm:$0xff] }
 0x2bc   :  { %5450 = vmatpush3.msra.mxu1 %v3772_v1  ;;  %5414 = vmatprep.subr.mxu0 %v5686_v6  ;;  %v4081_v1 = vld [vmem:[#allocation7 + $0x70] sm:$0xff] }
 0x2bd   :  { %5451 = vmatprep.subr.mxu1 %v5686_v6  ;;  %5415 = vmatpush3.msra.mxu0 %v3672_v4  ;;  %v4080_v4 = vld [vmem:[#allocation7 + $0x68] sm:$0xff] }
 0x2be   :  { %5452 = vmatpush3.msra.mxu1 %v3771_v13  ;;  %5416 = vmatprep.subr.mxu0 %v5686_v6  ;;  %v4078_v13 = vld [vmem:[#allocation7 + $0x58] sm:$0xff] }
 0x2bf   :  { %5453 = vmatprep.subr.mxu1 %v5686_v6  ;;  %5417 = vmatpush3.msra.mxu0 %v3671_v62  ;;  %v4076_v62 = vld [vmem:[#allocation7 + $0x48] sm:$0xff] }
 0x2c0   :  { %5454 = vmatpush3.msra.mxu1 %v3770_v59  ;;  %5418 = vmatprep.subr.mxu0 %v5686_v6  ;;  %v4075_v59 = vld [vmem:[#allocation7 + $0x40] sm:$0xff] }
 0x2c1   :  { %5455 = vmatprep.subr.mxu1 %v5686_v6  ;;  %5419 = vmatpush3.msra.mxu0 %v3670_v35  ;;  %v4074_v35 = vld [vmem:[#allocation7 + $0x38] sm:$0xff] }
 0x2c2   :  { %5456 = vmatpush3.msra.mxu1 %v3769_v33  ;;  %5420 = vmatprep.subr.mxu0 %v5686_v6  ;;  %v4073_v33 = vld [vmem:[#allocation7 + $0x30] sm:$0xff] }
 0x2c3   :  { %5457 = vmatprep.subr.mxu1 %v5686_v6  ;;  %5421 = vmatpush3.msra.mxu0 %v3669_v52 }
 0x2c4   :  { %5458 = vmatpush3.msra.mxu1 %v3768_v43  ;;  %5422 = vmatprep.subr.mxu0 %v5686_v6 }
 0x2c5   :  { %5459 = vmatprep.subr.mxu1 %v5686_v6  ;;  %5423 = vmatpush3.msra.mxu0 %v3668_v45 }
 0x2c6   :  { %5460 = vmatpush3.msra.mxu1 %v3767_v8  ;;  %5424 = vmatprep.subr.mxu0 %v5686_v6 }
 0x2c7   :  { %5461 = vmatprep.subr.mxu1 %v5686_v6  ;;  %5425 = vmatpush3.msra.mxu0 %v3667_v21 }
 0x2c8   :  { %5462 = vmatpush3.msra.mxu1 %v3766_v14  ;;  %5426 = vmatprep.subr.mxu0 %v5686_v6  ;;  %v4072_v14 = vld [vmem:[#allocation7 + $0x28] sm:$0xff] }
 0x2c9   :  { %5463 = vmatprep.subr.mxu1 %v5686_v6  ;;  %5427 = vmatpush3.msra.mxu0 %v3666_v49  ;;  %v4071_v49 = vld [vmem:[#allocation7 + $0x20] sm:$0xff] }
 0x2ca   :  { %5464 = vmatpush3.msra.mxu1 %v3765_v20  ;;  %5428 = vmatprep.subr.mxu0 %v5686_v6  ;;  %v4070_v20 = vld [vmem:[#allocation7 + $0x18] sm:$0xff] }
 0x2cb   :  { %5465 = vmatprep.subr.mxu1 %v5686_v6  ;;  %5429 = vmatpush3.msra.mxu0 %v3665_v46  ;;  %v4069_v46 = vld [vmem:[#allocation7 + $0x10] sm:$0xff] }
 0x2cc   :  { %5466 = vmatpush3.msra.mxu1 %v3764_v44  ;;  %5430 = vmatprep.subr.mxu0 %v5686_v6  ;;  %v4068_v44 = vld [vmem:[#allocation7 + $0x8] sm:$0xff] }
 0x2cd   :  { %5467 = vmatprep.subr.mxu1 %v5686_v6  ;;  %5431 = vmatpush3.msra.mxu0 %v3664_v48  ;;  %v4067_v48 = vld [vmem:[#allocation7] sm:$0xff] }
 0x2ce   :  { %5468 = vmatpush3.msra.mxu1 %v3763_v0  ;;  %5432 = vmatprep.subr.mxu0 %v5686_v6 }
 0x2cf   :  { %5469 = vmatprep.subr.mxu1 %v5686_v6  ;;  %5433 = vmatpush3.msra.mxu0 %v3663_v25 }
 0x2d0   :  { %5470 = vmatpush3.msra.mxu1 %v3762_v10  ;;  %5434 = vmatprep.subr.mxu0 %v5686_v6 }
 0x2d1   :  { %5471 = vmatprep.subr.mxu1 %v5686_v6  ;;  %5435 = vmatpush3.msra.mxu0 %v3662_v38 }
 0x2d2   :  { %5472 = vmatpush3.msra.mxu1 %v3761_v7  ;;  %5436 = vmatprep.subr.mxu0 %v5686_v6 }
 0x2d3   :  { %5473 = vmatprep.subr.mxu1 %v5686_v6  ;;  %5437 = vmatpush3.msra.mxu0 %v3661_v53 }
 0x2d4   :  { %5474 = vmatpush3.msra.mxu1 %v3760_v9  ;;  %5438 = vmatprep.subr.mxu0 %v5686_v6 }
 0x2d5   :  { %5475 = vmatprep.subr.mxu1 %v5686_v6  ;;  %5439 = vmatpush3.msra.mxu0 %v3660_v36 }
 0x2d6   :  { %5476 = vmatpush3.msra.mxu1 %v3759_v18  ;;  %5477 = vmatprep.mubr.msk.f32.mxu1 %vm5687_vm2, %v5686_v6 }
 0x2d7   :  { %5440 = vmatprep.subr.mxu0 %v5686_v6  ;;  %5478 = vmatmul.mubr.f32.vlgmr.msra.gmra.mxu1 %v7172_v32  ;;  %v3872_v32 = vld [vmem:[#allocation5 + $0x468] sm:$0xff] }
 0x2d8   :  { %5515 = vmatprep.subr.mxu1 %v5686_v6  ;;  %5441 = vmatpush3.msra.mxu0 %v3659_v17 }
 0x2d9   :  { %5442 = vmatprep.mubr.msk.f32.mxu0 %vm5687_vm2, %v5686_v6  ;;  %5516 = vmatpush3.msra.mxu1 %v3974_v61 }
 0x2da   :  { %5443 = vmatmul.mubr.f32.vlgmr.msra.gmra.mxu0 %v7181_v40  ;;  %5480 = vmatprep.subr.mxu0 %v5686_v6  ;;  %v3970_v40 = vld [vmem:[#allocation5 + $0x4d8] sm:$0xff] }
 0x2db   :  { %5517 = vmatprep.subr.mxu1 %v5686_v6  ;;  %5481 = vmatpush3.msra.mxu0 %v3874_v28 }
 0x2dc   :  { %5518 = vmatpush3.msra.mxu1 %v3973_v16  ;;  %5482 = vmatprep.subr.mxu0 %v5686_v6 }
 0x2dd   :  { %5519 = vmatprep.subr.mxu1 %v5686_v6  ;;  %5483 = vmatpush3.msra.mxu0 %v3873_v24 }
 0x2de   :  { %5520 = vmatpush3.msra.mxu1 %v3972_v63  ;;  %5484 = vmatprep.subr.mxu0 %v5686_v6 }
 0x2df   :  { %5521 = vmatprep.subr.mxu1 %v5686_v6  ;;  %5485 = vmatpush3.msra.mxu0 %v3872_v32 }
 0x2e0   :  { %5522 = vmatpush3.msra.mxu1 %v3971_v41  ;;  %5486 = vmatprep.subr.mxu0 %v5686_v6 }
 0x2e1   :  { %5523 = vmatprep.subr.mxu1 %v5686_v6  ;;  %5487 = vmatpush3.msra.mxu0 %v3871_v15 }
 0x2e2   :  { %5524 = vmatpush3.msra.mxu1 %v3970_v40  ;;  %5488 = vmatprep.subr.mxu0 %v5686_v6 }
 0x2e3   :  { %5525 = vmatprep.subr.mxu1 %v5686_v6  ;;  %5489 = vmatpush3.msra.mxu0 %v3870_v37 }
 0x2e4   :  { %5526 = vmatpush3.msra.mxu1 %v3969_v5  ;;  %5490 = vmatprep.subr.mxu0 %v5686_v6 }
 0x2e5   :  { %5527 = vmatprep.subr.mxu1 %v5686_v6  ;;  %5491 = vmatpush3.msra.mxu0 %v3869_v42  ;;  %v4416_v42 = vld [vmem:[%s7356_s6] ss:$0 sm:$0xff] }
 0x2e6   :  { %5528 = vmatpush3.msra.mxu1 %v3968_v39  ;;  %5492 = vmatprep.subr.mxu0 %v5686_v6 }
 0x2e7   :  { %5529 = vmatprep.subr.mxu1 %v5686_v6  ;;  %5493 = vmatpush3.msra.mxu0 %v3868_v54 }
 0x2e8   :  { %5530 = vmatpush3.msra.mxu1 %v3967_v3  ;;  %5494 = vmatprep.subr.mxu0 %v5686_v6 }
 0x2e9   :  { %5531 = vmatprep.subr.mxu1 %v5686_v6  ;;  %5495 = vmatpush3.msra.mxu0 %v3867_v34 }
 0x2ea   :  { %5532 = vmatpush3.msra.mxu1 %v3966_v50  ;;  %5496 = vmatprep.subr.mxu0 %v5686_v6  ;;  %v4417_v50 = vld [vmem:[%s7358_s8] ss:$0 sm:$0xff] }
 0x2eb   :  { %5533 = vmatprep.subr.mxu1 %v5686_v6  ;;  %5497 = vmatpush3.msra.mxu0 %v3866_v56 }
 0x2ec   :  { %5534 = vmatpush3.msra.mxu1 %v3965_v29  ;;  %5498 = vmatprep.subr.mxu0 %v5686_v6 }
 0x2ed   :  { %5535 = vmatprep.subr.mxu1 %v5686_v6  ;;  %5499 = vmatpush3.msra.mxu0 %v3865_v23 }
 0x2ee   :  { %5536 = vmatpush3.msra.mxu1 %v3964_v27  ;;  %5500 = vmatprep.subr.mxu0 %v5686_v6 }
 0x2ef   :  { %5537 = vmatprep.subr.mxu1 %v5686_v6  ;;  %5501 = vmatpush3.msra.mxu0 %v3864_v57 }
 0x2f0   :  { %5538 = vmatpush3.msra.mxu1 %v3963_v60  ;;  %5502 = vmatprep.subr.mxu0 %v5686_v6 }
 0x2f1   :  { %5539 = vmatprep.subr.mxu1 %v5686_v6  ;;  %5503 = vmatpush3.msra.mxu0 %v3863_v30 }
 0x2f2   :  { %5540 = vmatpush3.msra.mxu1 %v3962_v11  ;;  %5504 = vmatprep.subr.mxu0 %v5686_v6 }
 0x2f3   :  { %5541 = vmatprep.subr.mxu1 %v5686_v6  ;;  %5505 = vmatpush3.msra.mxu0 %v3862_v12 }
 0x2f4   :  { %5542 = vmatpush3.msra.mxu1 %v3961_v55  ;;  %5506 = vmatprep.subr.mxu0 %v5686_v6 }
 0x2f5   :  { %5543 = vmatprep.subr.mxu1 %v5686_v6  ;;  %5507 = vmatpush3.msra.mxu0 %v3861_v58 }
 0x2f6   :  { %5544 = vmatpush3.msra.mxu1 %v3960_v31  ;;  %5508 = vmatprep.subr.mxu0 %v5686_v6 }
 0x2f7   :  { %5545 = vmatprep.subr.mxu1 %v5686_v6  ;;  %5509 = vmatpush3.msra.mxu0 %v3860_v51 }
 0x2f8   :  { %5546 = vmatpush3.msra.mxu1 %v3959_v26  ;;  %5547 = vmatprep.mubr.msk.f32.mxu1 %vm5687_vm2, %v5686_v6 }
 0x2f9   :  { %5510 = vmatprep.subr.mxu0 %v5686_v6  ;;  %5548 = vmatmul.mubr.f32.vlgmr.msra.gmra.mxu1 %v7197_v47  ;;  %v4079_v47 = vld [vmem:[#allocation7 + $0x60] sm:$0xff] }
 0x2fa   :  { %5511 = vmatpush3.msra.mxu0 %v3859_v19  ;;  %5512 = vmatprep.mubr.msk.f32.mxu0 %vm5687_vm2, %v5686_v6 }
 0x2fb   :  { %5513 = vmatmul.mubr.f32.vlgmr.msra.gmra.mxu0 %v7202_v22  ;;  %5550 = vmatprep.subr.mxu0 %v5686_v6  ;;  %v4077_v22 = vld [vmem:[#allocation7 + $0x50] sm:$0xff] }
 0x2fc   :  { %5582 = vmatprep.mubr.msk.f32.mxu0 %vm5687_vm2, %v5686_v6  ;;  %5551 = vmatpush3.msra.mxu0 %v4082_v2 }
 0x2fd   :  { %5552 = vmatprep.subr.mxu0 %v5686_v6 }
 0x2fe   :  { %5553 = vmatpush3.msra.mxu0 %v4081_v1 }
 0x2ff   :  { %5554 = vmatprep.subr.mxu0 %v5686_v6 }
 0x300   :  { %5555 = vmatpush3.msra.mxu0 %v4080_v4 }
 0x301   :  { %5556 = vmatprep.subr.mxu0 %v5686_v6 }
 0x302   :  { %5557 = vmatpush3.msra.mxu0 %v4079_v47 }
 0x303   :  { %5558 = vmatprep.subr.mxu0 %v5686_v6 }
 0x304   :  { %5559 = vmatpush3.msra.mxu0 %v4078_v13 }
 0x305   :  { %5560 = vmatprep.subr.mxu0 %v5686_v6 }
 0x306   :  { %5561 = vmatpush3.msra.mxu0 %v4077_v22 }
 0x307   :  { %5562 = vmatprep.subr.mxu0 %v5686_v6 }
 0x308   :  { %5563 = vmatpush3.msra.mxu0 %v4076_v62 }
 0x309   :  { %5564 = vmatprep.subr.mxu0 %v5686_v6 }
 0x30a   :  { %5565 = vmatpush3.msra.mxu0 %v4075_v59 }
 0x30b   :  { %5566 = vmatprep.subr.mxu0 %v5686_v6 }
 0x30c   :  { %5567 = vmatpush3.msra.mxu0 %v4074_v35 }
 0x30d   :  { %5568 = vmatprep.subr.mxu0 %v5686_v6 }
 0x30e   :  { %5569 = vmatpush3.msra.mxu0 %v4073_v33 }
 0x30f   :  { %5570 = vmatprep.subr.mxu0 %v5686_v6 }
 0x310   :  { %5571 = vmatpush3.msra.mxu0 %v4072_v14 }
 0x311   :  { %5572 = vmatprep.subr.mxu0 %v5686_v6 }
 0x312   :  { %5573 = vmatpush3.msra.mxu0 %v4071_v49 }
 0x313   :  { %5574 = vmatprep.subr.mxu0 %v5686_v6 }
 0x314   :  { %5575 = vmatpush3.msra.mxu0 %v4070_v20 }
 0x315   :  { %5576 = vmatprep.subr.mxu0 %v5686_v6 }
 0x316   :  { %5577 = vmatpush3.msra.mxu0 %v4069_v46 }
 0x317   :  { %5578 = vmatprep.subr.mxu0 %v5686_v6 }
 0x318   :  { %5579 = vmatpush3.msra.mxu0 %v4068_v44 }
 0x319   :  { %5580 = vmatprep.subr.mxu0 %v5686_v6 }
 0x31a   :  { %5581 = vmatpush3.msra.mxu0 %v4067_v48 }
 0x333   :  { %v3254_v52 = vpop.f32.mrf.mxu1 }
 0x335   :  { %v3172_v43 = vpop.f32.mrf.mxu0  ;;  %v5269_v45 = vpop.f32.mrf.mxu1 }
 0x336   :  { %v3255_v8 = vadd.f32 %v3254_v52, %v3172_v43 }
 0x337   :  { %v5234_v21 = vpop.f32.mrf.mxu0 }
 0x353   :  { %v3453_v0 = vpop.f32.mrf.mxu1 }
 0x355   :  { %v5339_v25 = vpop.f32.mrf.mxu1 }
 0x356   :  { %v3353_v10 = vpop.f32.mrf.mxu0 }
 0x357   :  { %v3357_v38 = vadd.f32 %v3353_v10, %v3255_v8 }
 0x358   :  { %v5304_v7 = vpop.f32.mrf.mxu0 }
 0x359   :  { %v3457_v53 = vadd.f32 %v3453_v0, %v3357_v38 }
 0x375   :  { %v3653_v9 = vpop.f32.mrf.mxu1 }
 0x377   :  { %v5409_v36 = vpop.f32.mrf.mxu1 }
 0x378   :  { %v3553_v18 = vpop.f32.mrf.mxu0 }
 0x379   :  { %v3557_v17 = vadd.f32 %v3553_v18, %v3457_v53 }
 0x37a   :  { %v5374_v61 = vpop.f32.mrf.mxu0 }
 0x37b   :  { %v3657_v28 = vadd.f32 %v3653_v9, %v3557_v17 }
 0x397   :  { %v3853_v16 = vpop.f32.mrf.mxu1 }
 0x399   :  { %v5479_v24 = vpop.f32.mrf.mxu1 }
 0x39a   :  { %v3753_v63 = vpop.f32.mrf.mxu0 }
 0x39b   :  { %v3757_v41 = vadd.f32 %v3753_v63, %v3657_v28 }
 0x39c   :  { %v5444_v32 = vpop.f32.mrf.mxu0 }
 0x39d   :  { %v3857_v6 = vadd.f32 %v3853_v16, %v3757_v41 }
 0x3b9   :  { %v4053_v15 = vpop.f32.mrf.mxu1 }
 0x3bb   :  { %v3953_v40 = vpop.f32.mrf.mxu0  ;;  %v5549_v37 = vpop.f32.mrf.mxu1 }
 0x3bc   :  { %v3957_v5 = vadd.f32 %v3953_v40, %v3857_v6 }
 0x3bd   :  { %v5514_v39 = vpop.f32.mrf.mxu0 }
 0x3be   :  { %v4057_v54 = vadd.f32 %v4053_v15, %v3957_v5 }
 0x3c0   :  { %v4065_v3 = vadd.f32 %v4416_v42, %v4057_v54 }
 0x3c2   :  { %v4066_v34 = vmax.f32 %v4065_v3, 0.0 }
 0x3c4   :  { %5583 = vmatmul.mubr.f32.vlgmr.msra.gmra.mxu0 %v4066_v34 }
 0x484   :  { %v4156_v56 = vpop.f32.mrf.mxu0 }
 0x485   :  { %v4157_v29 = vadd.f32 %v4417_v50, %v4156_v56 }
 0x486   :  { %v5584_v23 = vpop.f32.mrf.mxu0 }
 0x487   :  { %4160 = vst [vmem:[#allocation8] sm:$0x3] %v4157_v29 }
 0x488   :  { %5666 = shalt.err (!%p5663_p5)
}
 0x489   :  { %4170 = dma.vmem_to_hbm [thread:$0]  %s4168_s21, 32, %s7359_s9, [#allocation4]  }
 0x48a   :  { %5679 = dma.done.wait [#allocation4], 32  }
 0x48b   :  { %5680 = vsyncadd [#allocation4], 4294967264 }
 0x48c   :  { %4174 = vsyncpa [#allocation3], 1 }
 0x48d   :  { %4175 = vsyncpa [#allocation6], 1 }
 0x48e   :  { %4176 = vsyncpa [#allocation4], 1 }

</bundles_post_ra>
